<compile_context>
chip_gen: v6e
topology: v6e:2x2x1
jax: 0.10.0
libtpu: 0.0.40
codegen_flags: <defaults>
</compile_context>

<pallas_src>
import math

import jax
import jax.numpy as jnp
from jax.experimental import pallas as pl
from jax.experimental.pallas import tpu as pltpu

_HALF_LOG_2PI = 0.5 * math.log(2.0 * math.pi)


# ----------------------------- Pallas kernel -------------------------------


def _vae_forward_kernel(
    x_ref,                         # (TB, D)   f32 flattened image tile
    e1w_ref, e1b_ref,              # (D, H) bf16, (1, H) f32
    e2w_ref, e2b_ref,              # (H, H) bf16, (1, H) f32
    msw_ref, msb_ref,              # (H, 2Z) bf16, (1, 2Z) f32  (fused mu|log_sigma)
    d1w_ref, d1b_ref,              # (Z, H) bf16, (1, H) f32
    d2w_ref, d2b_ref,              # (H, H) bf16, (1, H) f32
    d3w_ref, d3b_ref,              # (H, D) bf16, (1, D) f32
    eps1_ref, eps2_ref,            # (TB, Z) f32 N(0,1) noise
    elbo_ref,                      # (1, TB) f32 output (lane-dense)
):
    z_dim = eps1_ref.shape[-1]
    d_dim = x_ref.shape[-1]

    x = x_ref[...]
    eps1 = eps1_ref[...]
    eps2 = eps2_ref[...]

    # Load weights / biases once (encode and decode are each invoked twice).
    e1w, e1b = e1w_ref[...], e1b_ref[...]
    e2w, e2b = e2w_ref[...], e2b_ref[...]
    msw, msb = msw_ref[...], msb_ref[...]
    d1w, d1b = d1w_ref[...], d1b_ref[...]
    d2w, d2b = d2w_ref[...], d2b_ref[...]
    d3w, d3b = d3w_ref[...], d3b_ref[...]

    def bdot(a, w):
        # bf16 MXU inputs, f32 accumulation.
        return jnp.dot(a.astype(jnp.bfloat16), w,
                       preferred_element_type=jnp.float32)

    def encode(inp):
        h = jnp.tanh(bdot(inp, e1w) + e1b)
        h = jnp.tanh(bdot(h, e2w) + e2b)
        ms = bdot(h, msw) + msb                  # (TB, 2Z): [mu | log_sigma]
        return ms[:, :z_dim], ms[:, z_dim:]

    def decode(z):
        h = jnp.tanh(bdot(z, d1w) + d1b)
        h = jnp.tanh(bdot(h, d2w) + d2b)
        return bdot(h, d3w) + d3b

    # --- first stochastic layer ---
    z1_mu, z1_ls = encode(x)
    z1_sigma = jnp.exp(z1_ls)
    z1_hat = z1_mu + z1_sigma * eps1
    x1_mu = decode(z1_hat)                       # flattened reconstruction

    # res = x - x1_mu;  x - res == x1_mu  (as in the PyTorch forward)
    z2_mu, z2_ls = encode(x1_mu)
    z2_sigma = jnp.exp(z2_ls)
    z2_hat = z2_mu + z2_sigma * eps2
    x2_mu = decode(z2_hat)

    # --- log p(x | z1, z2) under Normal(x1_mu + x2_mu, 1) ---
    # Constant 0.5*log(2*pi) hoisted out of the per-element path:
    #   sum_d (-0.5*diff^2 - c) == -0.5*sum_d diff^2 - D*c
    diff = x - (x1_mu + x2_mu)
    sum_log_p_x = -0.5 * jnp.sum(diff * diff, axis=-1) - (d_dim * _HALF_LOG_2PI)

    # --- analytic KL terms (mode == 'sgvb2'), single combined reduction ---
    # 2*log(sigma) == 2*log_sigma_logits (exact, no exp->log round trip).
    kl_int = (2.0
              + 2.0 * (z1_ls + z2_ls)
              - z1_mu * z1_mu - z2_mu * z2_mu
              - z1_sigma * z1_sigma - z2_sigma * z2_sigma)
    kl = 0.5 * jnp.sum(kl_int, axis=-1)          # (TB,)

    elbo_ref[...] = (sum_log_p_x + kl)[None, :]  # lane-dense (1, TB) write


# ------------------------------ wrapper -------------------------------------


def prepare_params(p):
    """Fuse mu|sigma heads and pre-cast matmul weights to bf16 (done once)."""
    return {
        "e1w": p["e1w"].astype(jnp.bfloat16), "e1b": p["e1b"],
        "e2w": p["e2w"].astype(jnp.bfloat16), "e2b": p["e2b"],
        "msw": jnp.concatenate([p["muw"], p["sgw"]], axis=1).astype(jnp.bfloat16),
        "msb": jnp.concatenate([p["mub"], p["sgb"]], axis=1),
        "d1w": p["d1w"].astype(jnp.bfloat16), "d1b": p["d1b"],
        "d2w": p["d2w"].astype(jnp.bfloat16), "d2b": p["d2b"],
        "d3w": p["d3w"].astype(jnp.bfloat16), "d3b": p["d3b"],
    }


def vae_two_layer_alt_forward(x_nchw, fp, eps1, eps2, *, tile_b=128):
    """Runs the sgvb2 forward pass. Returns elbo of shape (B,)."""
    B = x_nchw.shape[0]
    D = x_nchw.shape[1] * x_nchw.shape[2] * x_nchw.shape[3]
    Z = eps1.shape[1]

    x_flat = x_nchw.reshape(B, D).astype(jnp.float32)
    eps1 = eps1.astype(jnp.float32)
    eps2 = eps2.astype(jnp.float32)

    # Batch tile size: 128 rows per grid step (pad small batches to 8-multiple).
    tb = tile_b if B >= tile_b else ((B + 7) // 8) * 8
    b_pad = pl.cdiv(B, tb) * tb
    if b_pad != B:
        pad = b_pad - B
        x_flat = jnp.pad(x_flat, ((0, pad), (0, 0)))
        eps1 = jnp.pad(eps1, ((0, pad), (0, 0)))
        eps2 = jnp.pad(eps2, ((0, pad), (0, 0)))
    nb = b_pad // tb

    operands = (
        x_flat,
        fp["e1w"], fp["e1b"], fp["e2w"], fp["e2b"],
        fp["msw"], fp["msb"],
        fp["d1w"], fp["d1b"], fp["d2w"], fp["d2b"], fp["d3w"], fp["d3b"],
        eps1, eps2,
    )

    def resident(a):   # full-array block, constant across the batch grid
        return pl.BlockSpec(a.shape, lambda i: (0, 0))

    in_specs = [pl.BlockSpec((tb, D), lambda i: (i, 0))]
    in_specs += [resident(a) for a in operands[1:13]]
    in_specs += [pl.BlockSpec((tb, Z), lambda i: (i, 0))] * 2

    grid_spec = pltpu.PrefetchScalarGridSpec(
        num_scalar_prefetch=0,
        grid=(nb,),
        in_specs=in_specs,
        out_specs=pl.BlockSpec((1, tb), lambda i: (0, i)),
    )

    elbo_row = pl.pallas_call(
        _vae_forward_kernel,
        out_shape=jax.ShapeDtypeStruct((1, b_pad), jnp.float32),
        grid_spec=grid_spec,
        compiler_params=pltpu.CompilerParams(
            dimension_semantics=("parallel",)),
    )(*operands)
    return elbo_row[0, :B]


# --------------------------- parameter init ----------------------------------


def _linear_params(key, fan_in, fan_out):
    """PyTorch-style U(-1/sqrt(fan_in), 1/sqrt(fan_in)); weight stored (in, out)."""
    kw, kb = jax.random.split(key)
    bound = 1.0 / math.sqrt(fan_in)
    w = jax.random.uniform(kw, (fan_in, fan_out), jnp.float32, -bound, bound)
    b = jax.random.uniform(kb, (1, fan_out), jnp.float32, -bound, bound)
    return w, b


def init_params(key, d, h_dim, z1_dim):
    keys = jax.random.split(key, 7)
    p = {}
    p["e1w"], p["e1b"] = _linear_params(keys[0], d, h_dim)
    p["e2w"], p["e2b"] = _linear_params(keys[1], h_dim, h_dim)
    p["muw"], p["mub"] = _linear_params(keys[2], h_dim, z1_dim)
    p["sgw"], p["sgb"] = _linear_params(keys[3], h_dim, z1_dim)
    p["d1w"], p["d1b"] = _linear_params(keys[4], z1_dim, h_dim)
    p["d2w"], p["d2b"] = _linear_params(keys[5], h_dim, h_dim)
    p["d3w"], p["d3b"] = _linear_params(keys[6], h_dim, d)
    return p


# --------------------------- pure-JAX reference ------------------------------


def _reference_forward(x_nchw, p, eps1, eps2, *, bf16_dots):
    B = x_nchw.shape[0]
    d = x_nchw.shape[1] * x_nchw.shape[2] * x_nchw.shape[3]
    x = x_nchw.reshape(B, d).astype(jnp.float32)

    cast = (lambda a: a.astype(jnp.bfloat16)) if bf16_dots else (lambda a: a)

    def dot(a, w):
        return jnp.dot(cast(a), cast(w), preferred_element_type=jnp.float32)

    def enc(inp):
        h = jnp.tanh(dot(inp, p["e1w"]) + p["e1b"])
        h = jnp.tanh(dot(h, p["e2w"]) + p["e2b"])
        return dot(h, p["muw"]) + p["mub"], dot(h, p["sgw"]) + p["sgb"]

    def dec(z):
        h = jnp.tanh(dot(z, p["d1w"]) + p["d1b"])
        h = jnp.tanh(dot(h, p["d2w"]) + p["d2b"])
        return dot(h, p["d3w"]) + p["d3b"]

    z1_mu, z1_ls = enc(x)
    z1_sigma = jnp.exp(z1_ls)
    z1_hat = z1_mu + z1_sigma * eps1
    x1_mu = dec(z1_hat)
    z2_mu, z2_ls = enc(x1_mu)
    z2_sigma = jnp.exp(z2_ls)
    z2_hat = z2_mu + z2_sigma * eps2
    x2_mu = dec(z2_hat)

    diff = x - (x1_mu + x2_mu)
    log_p_x = -0.5 * diff * diff - _HALF_LOG_2PI
    kl1 = 0.5 * jnp.sum(1.0 + 2.0 * z1_ls - z1_mu**2 - z1_sigma**2, -1)
    kl2 = 0.5 * jnp.sum(1.0 + 2.0 * z2_ls - z2_mu**2 - z2_sigma**2, -1)
    return jnp.sum(log_p_x, -1) + kl2 + kl1


# ------------------------------- main ----------------------------------------


if __name__ == "__main__":
    # Shapes consistent with the module: im_shape=(1, 16, 16), h_dim=32,
    # z1_dim=16. Batch 256 = two 128-row grid tiles so the batch-tiled grid
    # path is exercised while keeping the test small.
    B, C, Him, Wim = 256, 1, 16, 16
    D = C * Him * Wim
    H_DIM, Z1_DIM = 32, 16

    root = jax.random.PRNGKey(0)
    k_param, k_x, k_e1, k_e2 = jax.random.split(root, 4)

    params = init_params(k_param, D, H_DIM, Z1_DIM)
    x = jax.random.normal(k_x, (B, C, Him, Wim), jnp.float32)        # NCHW input
    eps1 = jax.random.normal(k_e1, (B, Z1_DIM), jnp.float32)
    eps2 = jax.random.normal(k_e2, (B, Z1_DIM), jnp.float32)

    fused = prepare_params(params)
    elbo = vae_two_layer_alt_forward(x, fused, eps1, eps2, tile_b=128)
    elbo = jax.block_until_ready(elbo)
    assert elbo.shape == (B,)
    assert bool(jnp.all(jnp.isfinite(elbo)))

    # Tight check against a reference that mirrors the kernel's bf16 matmuls.
    ref_bf16 = _reference_forward(x, params, eps1, eps2, bf16_dots=True)
    assert jnp.allclose(elbo, ref_bf16, rtol=5e-3, atol=2.5e-1), (elbo, ref_bf16)

    # Loose check against the full-f32 reference (bounds the bf16 deviation).
    ref_f32 = _reference_forward(x, params, eps1, eps2, bf16_dots=False)
    assert jnp.allclose(elbo, ref_f32, rtol=2e-2, atol=1.0), (elbo, ref_f32)

    print("KERNEL_OK")
</pallas_src>

<mosaic_0001>
module attributes {stable_mosaic.version = 11 : i64} {
  func.func @_vae_forward_kernel(%arg0: i32, %arg1: memref<128x256xf32, #tpu.memory_space<vmem>>, %arg2: memref<256x32xbf16, #tpu.memory_space<vmem>>, %arg3: memref<1x32xf32, #tpu.memory_space<vmem>>, %arg4: memref<32x32xbf16, #tpu.memory_space<vmem>>, %arg5: memref<1x32xf32, #tpu.memory_space<vmem>>, %arg6: memref<32x32xbf16, #tpu.memory_space<vmem>>, %arg7: memref<1x32xf32, #tpu.memory_space<vmem>>, %arg8: memref<16x32xbf16, #tpu.memory_space<vmem>>, %arg9: memref<1x32xf32, #tpu.memory_space<vmem>>, %arg10: memref<32x32xbf16, #tpu.memory_space<vmem>>, %arg11: memref<1x32xf32, #tpu.memory_space<vmem>>, %arg12: memref<32x256xbf16, #tpu.memory_space<vmem>>, %arg13: memref<1x256xf32, #tpu.memory_space<vmem>>, %arg14: memref<128x16xf32, #tpu.memory_space<vmem>>, %arg15: memref<128x16xf32, #tpu.memory_space<vmem>>, %arg16: memref<1x128xf32, #tpu.memory_space<vmem>>) attributes {dimension_semantics = [#tpu.dimension_semantics<parallel>], iteration_bounds = array<i64: 2>, scalar_prefetch = 0 : i64, scratch_operands = 0 : i64, tpu.core_type = #tpu.core_type<tc>, window_params = [{transform_indices = @transform_0, window_bounds = array<i64: 128, 256>}, {pipeline_mode = #tpu.pipeline_mode<synchronous>, transform_indices = @transform_1, window_bounds = array<i64: 256, 32>}, {pipeline_mode = #tpu.pipeline_mode<synchronous>, transform_indices = @transform_2, window_bounds = array<i64: 1, 32>}, {pipeline_mode = #tpu.pipeline_mode<synchronous>, transform_indices = @transform_3, window_bounds = array<i64: 32, 32>}, {pipeline_mode = #tpu.pipeline_mode<synchronous>, transform_indices = @transform_4, window_bounds = array<i64: 1, 32>}, {pipeline_mode = #tpu.pipeline_mode<synchronous>, transform_indices = @transform_5, window_bounds = array<i64: 32, 32>}, {pipeline_mode = #tpu.pipeline_mode<synchronous>, transform_indices = @transform_6, window_bounds = array<i64: 1, 32>}, {pipeline_mode = #tpu.pipeline_mode<synchronous>, transform_indices = @transform_7, window_bounds = array<i64: 16, 32>}, {pipeline_mode = #tpu.pipeline_mode<synchronous>, transform_indices = @transform_8, window_bounds = array<i64: 1, 32>}, {pipeline_mode = #tpu.pipeline_mode<synchronous>, transform_indices = @transform_9, window_bounds = array<i64: 32, 32>}, {pipeline_mode = #tpu.pipeline_mode<synchronous>, transform_indices = @transform_10, window_bounds = array<i64: 1, 32>}, {pipeline_mode = #tpu.pipeline_mode<synchronous>, transform_indices = @transform_11, window_bounds = array<i64: 32, 256>}, {pipeline_mode = #tpu.pipeline_mode<synchronous>, transform_indices = @transform_12, window_bounds = array<i64: 1, 256>}, {transform_indices = @transform_13, window_bounds = array<i64: 128, 16>}, {transform_indices = @transform_14, window_bounds = array<i64: 128, 16>}, {transform_indices = @transform_15, window_bounds = array<i64: 1, 128>}]} {
    %c0 = arith.constant 0 : index
    %c0_0 = arith.constant 0 : index
    %0 = vector.load %arg1[%c0, %c0_0] : memref<128x256xf32, #tpu.memory_space<vmem>>, vector<128x256xf32>
    %c0_1 = arith.constant 0 : index
    %c0_2 = arith.constant 0 : index
    %1 = vector.load %arg14[%c0_1, %c0_2] : memref<128x16xf32, #tpu.memory_space<vmem>>, vector<128x16xf32>
    %c0_3 = arith.constant 0 : index
    %c0_4 = arith.constant 0 : index
    %2 = vector.load %arg15[%c0_3, %c0_4] : memref<128x16xf32, #tpu.memory_space<vmem>>, vector<128x16xf32>
    %c0_5 = arith.constant 0 : index
    %c0_6 = arith.constant 0 : index
    %3 = vector.load %arg2[%c0_5, %c0_6] : memref<256x32xbf16, #tpu.memory_space<vmem>>, vector<256x32xbf16>
    %c0_7 = arith.constant 0 : index
    %c0_8 = arith.constant 0 : index
    %4 = vector.load %arg3[%c0_7, %c0_8] : memref<1x32xf32, #tpu.memory_space<vmem>>, vector<1x32xf32>
    %c0_9 = arith.constant 0 : index
    %c0_10 = arith.constant 0 : index
    %5 = vector.load %arg4[%c0_9, %c0_10] : memref<32x32xbf16, #tpu.memory_space<vmem>>, vector<32x32xbf16>
    %c0_11 = arith.constant 0 : index
    %c0_12 = arith.constant 0 : index
    %6 = vector.load %arg5[%c0_11, %c0_12] : memref<1x32xf32, #tpu.memory_space<vmem>>, vector<1x32xf32>
    %c0_13 = arith.constant 0 : index
    %c0_14 = arith.constant 0 : index
    %7 = vector.load %arg6[%c0_13, %c0_14] : memref<32x32xbf16, #tpu.memory_space<vmem>>, vector<32x32xbf16>
    %c0_15 = arith.constant 0 : index
    %c0_16 = arith.constant 0 : index
    %8 = vector.load %arg7[%c0_15, %c0_16] : memref<1x32xf32, #tpu.memory_space<vmem>>, vector<1x32xf32>
    %c0_17 = arith.constant 0 : index
    %c0_18 = arith.constant 0 : index
    %9 = vector.load %arg8[%c0_17, %c0_18] : memref<16x32xbf16, #tpu.memory_space<vmem>>, vector<16x32xbf16>
    %c0_19 = arith.constant 0 : index
    %c0_20 = arith.constant 0 : index
    %10 = vector.load %arg9[%c0_19, %c0_20] : memref<1x32xf32, #tpu.memory_space<vmem>>, vector<1x32xf32>
    %c0_21 = arith.constant 0 : index
    %c0_22 = arith.constant 0 : index
    %11 = vector.load %arg10[%c0_21, %c0_22] : memref<32x32xbf16, #tpu.memory_space<vmem>>, vector<32x32xbf16>
    %c0_23 = arith.constant 0 : index
    %c0_24 = arith.constant 0 : index
    %12 = vector.load %arg11[%c0_23, %c0_24] : memref<1x32xf32, #tpu.memory_space<vmem>>, vector<1x32xf32>
    %c0_25 = arith.constant 0 : index
    %c0_26 = arith.constant 0 : index
    %13 = vector.load %arg12[%c0_25, %c0_26] : memref<32x256xbf16, #tpu.memory_space<vmem>>, vector<32x256xbf16>
    %c0_27 = arith.constant 0 : index
    %c0_28 = arith.constant 0 : index
    %14 = vector.load %arg13[%c0_27, %c0_28] : memref<1x256xf32, #tpu.memory_space<vmem>>, vector<1x256xf32>
    %15 = arith.truncf %0 : vector<128x256xf32> to vector<128x256xbf16>
    %cst = arith.constant dense<0.000000e+00> : vector<128x32xf32>
    %16 = tpu.matmul %15, %3, %cst {dimension_numbers = #tpu.dot_dimension_numbers<[1], [0], [0], [1], [0, 0, 1, 1], [], []>} : vector<128x256xbf16>, vector<256x32xbf16>, vector<128x32xf32> -> vector<128x32xf32>
    %17 = vector.broadcast %4 : vector<1x32xf32> to vector<128x32xf32>
    %18 = arith.addf %16, %17 : vector<128x32xf32>
    %19 = math.tanh %18 : vector<128x32xf32>
    %20 = arith.truncf %19 : vector<128x32xf32> to vector<128x32xbf16>
    %cst_29 = arith.constant dense<0.000000e+00> : vector<128x32xf32>
    %21 = tpu.matmul %20, %5, %cst_29 {dimension_numbers = #tpu.dot_dimension_numbers<[1], [0], [0], [1], [0, 0, 1, 1], [], []>} : vector<128x32xbf16>, vector<32x32xbf16>, vector<128x32xf32> -> vector<128x32xf32>
    %22 = vector.broadcast %6 : vector<1x32xf32> to vector<128x32xf32>
    %23 = arith.addf %21, %22 : vector<128x32xf32>
    %24 = math.tanh %23 : vector<128x32xf32>
    %25 = arith.truncf %24 : vector<128x32xf32> to vector<128x32xbf16>
    %cst_30 = arith.constant dense<0.000000e+00> : vector<128x32xf32>
    %26 = tpu.matmul %25, %7, %cst_30 {dimension_numbers = #tpu.dot_dimension_numbers<[1], [0], [0], [1], [0, 0, 1, 1], [], []>} : vector<128x32xbf16>, vector<32x32xbf16>, vector<128x32xf32> -> vector<128x32xf32>
    %27 = vector.broadcast %8 : vector<1x32xf32> to vector<128x32xf32>
    %28 = arith.addf %26, %27 : vector<128x32xf32>
    %29 = vector.extract_strided_slice %28 {offsets = [0, 0], sizes = [128, 16], strides = [1, 1]} : vector<128x32xf32> to vector<128x16xf32>
    %30 = vector.extract_strided_slice %28 {offsets = [0, 16], sizes = [128, 16], strides = [1, 1]} : vector<128x32xf32> to vector<128x16xf32>
    %31 = math.exp %30 : vector<128x16xf32>
    %32 = arith.mulf %31, %1 : vector<128x16xf32>
    %33 = arith.addf %29, %32 : vector<128x16xf32>
    %34 = arith.truncf %33 : vector<128x16xf32> to vector<128x16xbf16>
    %cst_31 = arith.constant dense<0.000000e+00> : vector<128x32xf32>
    %35 = tpu.matmul %34, %9, %cst_31 {dimension_numbers = #tpu.dot_dimension_numbers<[1], [0], [0], [1], [0, 0, 1, 1], [], []>} : vector<128x16xbf16>, vector<16x32xbf16>, vector<128x32xf32> -> vector<128x32xf32>
    %36 = vector.broadcast %10 : vector<1x32xf32> to vector<128x32xf32>
    %37 = arith.addf %35, %36 : vector<128x32xf32>
    %38 = math.tanh %37 : vector<128x32xf32>
    %39 = arith.truncf %38 : vector<128x32xf32> to vector<128x32xbf16>
    %cst_32 = arith.constant dense<0.000000e+00> : vector<128x32xf32>
    %40 = tpu.matmul %39, %11, %cst_32 {dimension_numbers = #tpu.dot_dimension_numbers<[1], [0], [0], [1], [0, 0, 1, 1], [], []>} : vector<128x32xbf16>, vector<32x32xbf16>, vector<128x32xf32> -> vector<128x32xf32>
    %41 = vector.broadcast %12 : vector<1x32xf32> to vector<128x32xf32>
    %42 = arith.addf %40, %41 : vector<128x32xf32>
    %43 = math.tanh %42 : vector<128x32xf32>
    %44 = arith.truncf %43 : vector<128x32xf32> to vector<128x32xbf16>
    %cst_33 = arith.constant dense<0.000000e+00> : vector<128x256xf32>
    %45 = tpu.matmul %44, %13, %cst_33 {dimension_numbers = #tpu.dot_dimension_numbers<[1], [0], [0], [1], [0, 0, 1, 1], [], []>} : vector<128x32xbf16>, vector<32x256xbf16>, vector<128x256xf32> -> vector<128x256xf32>
    %46 = vector.broadcast %14 : vector<1x256xf32> to vector<128x256xf32>
    %47 = arith.addf %45, %46 : vector<128x256xf32>
    %48 = arith.truncf %47 : vector<128x256xf32> to vector<128x256xbf16>
    %cst_34 = arith.constant dense<0.000000e+00> : vector<128x32xf32>
    %49 = tpu.matmul %48, %3, %cst_34 {dimension_numbers = #tpu.dot_dimension_numbers<[1], [0], [0], [1], [0, 0, 1, 1], [], []>} : vector<128x256xbf16>, vector<256x32xbf16>, vector<128x32xf32> -> vector<128x32xf32>
    %50 = vector.broadcast %4 : vector<1x32xf32> to vector<128x32xf32>
    %51 = arith.addf %49, %50 : vector<128x32xf32>
    %52 = math.tanh %51 : vector<128x32xf32>
    %53 = arith.truncf %52 : vector<128x32xf32> to vector<128x32xbf16>
    %cst_35 = arith.constant dense<0.000000e+00> : vector<128x32xf32>
    %54 = tpu.matmul %53, %5, %cst_35 {dimension_numbers = #tpu.dot_dimension_numbers<[1], [0], [0], [1], [0, 0, 1, 1], [], []>} : vector<128x32xbf16>, vector<32x32xbf16>, vector<128x32xf32> -> vector<128x32xf32>
    %55 = vector.broadcast %6 : vector<1x32xf32> to vector<128x32xf32>
    %56 = arith.addf %54, %55 : vector<128x32xf32>
    %57 = math.tanh %56 : vector<128x32xf32>
    %58 = arith.truncf %57 : vector<128x32xf32> to vector<128x32xbf16>
    %cst_36 = arith.constant dense<0.000000e+00> : vector<128x32xf32>
    %59 = tpu.matmul %58, %7, %cst_36 {dimension_numbers = #tpu.dot_dimension_numbers<[1], [0], [0], [1], [0, 0, 1, 1], [], []>} : vector<128x32xbf16>, vector<32x32xbf16>, vector<128x32xf32> -> vector<128x32xf32>
    %60 = vector.broadcast %8 : vector<1x32xf32> to vector<128x32xf32>
    %61 = arith.addf %59, %60 : vector<128x32xf32>
    %62 = vector.extract_strided_slice %61 {offsets = [0, 0], sizes = [128, 16], strides = [1, 1]} : vector<128x32xf32> to vector<128x16xf32>
    %63 = vector.extract_strided_slice %61 {offsets = [0, 16], sizes = [128, 16], strides = [1, 1]} : vector<128x32xf32> to vector<128x16xf32>
    %64 = math.exp %63 : vector<128x16xf32>
    %65 = arith.mulf %64, %2 : vector<128x16xf32>
    %66 = arith.addf %62, %65 : vector<128x16xf32>
    %67 = arith.truncf %66 : vector<128x16xf32> to vector<128x16xbf16>
    %cst_37 = arith.constant dense<0.000000e+00> : vector<128x32xf32>
    %68 = tpu.matmul %67, %9, %cst_37 {dimension_numbers = #tpu.dot_dimension_numbers<[1], [0], [0], [1], [0, 0, 1, 1], [], []>} : vector<128x16xbf16>, vector<16x32xbf16>, vector<128x32xf32> -> vector<128x32xf32>
    %69 = vector.broadcast %10 : vector<1x32xf32> to vector<128x32xf32>
    %70 = arith.addf %68, %69 : vector<128x32xf32>
    %71 = math.tanh %70 : vector<128x32xf32>
    %72 = arith.truncf %71 : vector<128x32xf32> to vector<128x32xbf16>
    %cst_38 = arith.constant dense<0.000000e+00> : vector<128x32xf32>
    %73 = tpu.matmul %72, %11, %cst_38 {dimension_numbers = #tpu.dot_dimension_numbers<[1], [0], [0], [1], [0, 0, 1, 1], [], []>} : vector<128x32xbf16>, vector<32x32xbf16>, vector<128x32xf32> -> vector<128x32xf32>
    %74 = vector.broadcast %12 : vector<1x32xf32> to vector<128x32xf32>
    %75 = arith.addf %73, %74 : vector<128x32xf32>
    %76 = math.tanh %75 : vector<128x32xf32>
    %77 = arith.truncf %76 : vector<128x32xf32> to vector<128x32xbf16>
    %cst_39 = arith.constant dense<0.000000e+00> : vector<128x256xf32>
    %78 = tpu.matmul %77, %13, %cst_39 {dimension_numbers = #tpu.dot_dimension_numbers<[1], [0], [0], [1], [0, 0, 1, 1], [], []>} : vector<128x32xbf16>, vector<32x256xbf16>, vector<128x256xf32> -> vector<128x256xf32>
    %79 = vector.broadcast %14 : vector<1x256xf32> to vector<128x256xf32>
    %80 = arith.addf %78, %79 : vector<128x256xf32>
    %81 = arith.addf %47, %80 : vector<128x256xf32>
    %82 = arith.subf %0, %81 : vector<128x256xf32>
    %83 = arith.mulf %82, %82 : vector<128x256xf32>
    %cst_40 = arith.constant dense<0.000000e+00> : vector<128xf32>
    %84 = vector.multi_reduction <add>, %83, %cst_40 [1] : vector<128x256xf32> to vector<128xf32>
    %cst_41 = arith.constant -5.000000e-01 : f32
    %85 = vector.broadcast %cst_41 : f32 to vector<128xf32>
    %86 = arith.mulf %85, %84 : vector<128xf32>
    %cst_42 = arith.constant 235.24826 : f32
    %87 = vector.broadcast %cst_42 : f32 to vector<128xf32>
    %88 = arith.subf %86, %87 : vector<128xf32>
    %89 = arith.addf %30, %63 : vector<128x16xf32>
    %cst_43 = arith.constant 2.000000e+00 : f32
    %90 = vector.broadcast %cst_43 : f32 to vector<128x16xf32>
    %91 = arith.mulf %90, %89 : vector<128x16xf32>
    %cst_44 = arith.constant 2.000000e+00 : f32
    %92 = vector.broadcast %cst_44 : f32 to vector<128x16xf32>
    %93 = arith.addf %92, %91 : vector<128x16xf32>
    %94 = arith.mulf %29, %29 : vector<128x16xf32>
    %95 = arith.subf %93, %94 : vector<128x16xf32>
    %96 = arith.mulf %62, %62 : vector<128x16xf32>
    %97 = arith.subf %95, %96 : vector<128x16xf32>
    %98 = arith.mulf %31, %31 : vector<128x16xf32>
    %99 = arith.subf %97, %98 : vector<128x16xf32>
    %100 = arith.mulf %64, %64 : vector<128x16xf32>
    %101 = arith.subf %99, %100 : vector<128x16xf32>
    %cst_45 = arith.constant dense<0.000000e+00> : vector<128xf32>
    %102 = vector.multi_reduction <add>, %101, %cst_45 [1] : vector<128x16xf32> to vector<128xf32>
    %cst_46 = arith.constant 5.000000e-01 : f32
    %103 = vector.broadcast %cst_46 : f32 to vector<128xf32>
    %104 = arith.mulf %103, %102 : vector<128xf32>
    %105 = arith.addf %88, %104 : vector<128xf32>
    %106 = vector.shape_cast %105 : vector<128xf32> to vector<1x128xf32>
    %c0_47 = arith.constant 0 : index
    %c0_48 = arith.constant 0 : index
    %107 = vector.load %arg16[%c0_47, %c0_48] : memref<1x128xf32, #tpu.memory_space<vmem>>, vector<1x128xf32>
    tpu.vector_store %arg16[%c0_47, %c0_48], %106 {strides = array<i32>} : memref<1x128xf32, #tpu.memory_space<vmem>>, vector<1x128xf32>,
    return
  }
  func.func @transform_0(%arg0: i32) -> (i32, i32) {
    %c0_i32 = arith.constant 0 : i32
    %c0_i32_0 = arith.constant 0 : i32
    return %arg0, %c0_i32 : i32, i32
  }
  func.func @transform_1(%arg0: i32) -> (i32, i32) {
    %c0_i32 = arith.constant 0 : i32
    %c0_i32_0 = arith.constant 0 : i32
    %c0_i32_1 = arith.constant 0 : i32
    return %c0_i32, %c0_i32_0 : i32, i32
  }
  func.func @transform_2(%arg0: i32) -> (i32, i32) {
    %c0_i32 = arith.constant 0 : i32
    %c0_i32_0 = arith.constant 0 : i32
    %c0_i32_1 = arith.constant 0 : i32
    return %c0_i32, %c0_i32_0 : i32, i32
  }
  func.func @transform_3(%arg0: i32) -> (i32, i32) {
    %c0_i32 = arith.constant 0 : i32
    %c0_i32_0 = arith.constant 0 : i32
    %c0_i32_1 = arith.constant 0 : i32
    return %c0_i32, %c0_i32_0 : i32, i32
  }
  func.func @transform_4(%arg0: i32) -> (i32, i32) {
    %c0_i32 = arith.constant 0 : i32
    %c0_i32_0 = arith.constant 0 : i32
    %c0_i32_1 = arith.constant 0 : i32
    return %c0_i32, %c0_i32_0 : i32, i32
  }
  func.func @transform_5(%arg0: i32) -> (i32, i32) {
    %c0_i32 = arith.constant 0 : i32
    %c0_i32_0 = arith.constant 0 : i32
    %c0_i32_1 = arith.constant 0 : i32
    return %c0_i32, %c0_i32_0 : i32, i32
  }
  func.func @transform_6(%arg0: i32) -> (i32, i32) {
    %c0_i32 = arith.constant 0 : i32
    %c0_i32_0 = arith.constant 0 : i32
    %c0_i32_1 = arith.constant 0 : i32
    return %c0_i32, %c0_i32_0 : i32, i32
  }
  func.func @transform_7(%arg0: i32) -> (i32, i32) {
    %c0_i32 = arith.constant 0 : i32
    %c0_i32_0 = arith.constant 0 : i32
    %c0_i32_1 = arith.constant 0 : i32
    return %c0_i32, %c0_i32_0 : i32, i32
  }
  func.func @transform_8(%arg0: i32) -> (i32, i32) {
    %c0_i32 = arith.constant 0 : i32
    %c0_i32_0 = arith.constant 0 : i32
    %c0_i32_1 = arith.constant 0 : i32
    return %c0_i32, %c0_i32_0 : i32, i32
  }
  func.func @transform_9(%arg0: i32) -> (i32, i32) {
    %c0_i32 = arith.constant 0 : i32
    %c0_i32_0 = arith.constant 0 : i32
    %c0_i32_1 = arith.constant 0 : i32
    return %c0_i32, %c0_i32_0 : i32, i32
  }
  func.func @transform_10(%arg0: i32) -> (i32, i32) {
    %c0_i32 = arith.constant 0 : i32
    %c0_i32_0 = arith.constant 0 : i32
    %c0_i32_1 = arith.constant 0 : i32
    return %c0_i32, %c0_i32_0 : i32, i32
  }
  func.func @transform_11(%arg0: i32) -> (i32, i32) {
    %c0_i32 = arith.constant 0 : i32
    %c0_i32_0 = arith.constant 0 : i32
    %c0_i32_1 = arith.constant 0 : i32
    return %c0_i32, %c0_i32_0 : i32, i32
  }
  func.func @transform_12(%arg0: i32) -> (i32, i32) {
    %c0_i32 = arith.constant 0 : i32
    %c0_i32_0 = arith.constant 0 : i32
    %c0_i32_1 = arith.constant 0 : i32
    return %c0_i32, %c0_i32_0 : i32, i32
  }
  func.func @transform_13(%arg0: i32) -> (i32, i32) {
    %c0_i32 = arith.constant 0 : i32
    %c0_i32_0 = arith.constant 0 : i32
    return %arg0, %c0_i32 : i32, i32
  }
  func.func @transform_14(%arg0: i32) -> (i32, i32) {
    %c0_i32 = arith.constant 0 : i32
    %c0_i32_0 = arith.constant 0 : i32
    return %arg0, %c0_i32 : i32, i32
  }
  func.func @transform_15(%arg0: i32) -> (i32, i32) {
    %c0_i32 = arith.constant 0 : i32
    %c0_i32_0 = arith.constant 0 : i32
    return %c0_i32, %arg0 : i32, i32
  }
}

</mosaic_0001>

<bundles_post_ra>
// kernel: tpu_custom_call.1
= control target key start
LH: loop header
LB: loop body
LE: loop exit
PB: predicated region body
PF: predicated region fallthrough
CT: control target
= control target key end

     0   :  { %20 = vsyncpa [#allocation3], 0  ;;  %s6407_s0 = inlined_call_operand.vmem [shape: f32[256,256], index: 0, kind: input, shape index: {}]   ;;  %s6408_s1 = inlined_call_operand.vmem [shape: bf16[256,32], index: 1, kind: input, shape index: {}]   ;;  %s6409_s2 = inlined_call_operand.vmem [shape: f32[1,32], index: 2, kind: input, shape index: {}]   ;;  %s6410_s3 = inlined_call_operand.vmem [shape: bf16[32,32], index: 3, kind: input, shape index: {}]   ;;  %s6411_s4 = inlined_call_operand.vmem [shape: f32[1,32], index: 4, kind: input, shape index: {}]   ;;  %s6412_s5 = inlined_call_operand.vmem [shape: bf16[32,32], index: 5, kind: input, shape index: {}]   ;;  %s6413_s6 = inlined_call_operand.vmem [shape: f32[1,32], index: 6, kind: input, shape index: {}]   ;;  %s6414_s7 = inlined_call_operand.vmem [shape: bf16[16,32], index: 7, kind: input, shape index: {}]   ;;  %s6415_s8 = inlined_call_operand.vmem [shape: f32[1,32], index: 8, kind: input, shape index: {}]   ;;  %s6416_s9 = inlined_call_operand.vmem [shape: bf16[32,32], index: 9, kind: input, shape index: {}]   ;;  %s6417_s10 = inlined_call_operand.vmem [shape: f32[1,32], index: 10, kind: input, shape index: {}]   ;;  %s6418_s11 = inlined_call_operand.vmem [shape: bf16[32,256], index: 11, kind: input, shape index: {}]   ;;  %s6419_s12 = inlined_call_operand.vmem [shape: f32[1,256], index: 12, kind: input, shape index: {}]   ;;  %s6420_s13 = inlined_call_operand.vmem [shape: f32[256,16], index: 13, kind: input, shape index: {}]   ;;  %s6421_s14 = inlined_call_operand.vmem [shape: f32[256,16], index: 14, kind: input, shape index: {}]   ;;  %s6422_s15 = inlined_call_operand.hbm [shape: f32[1,256], index: 15, kind: output, shape index: {}]  }
   0x1   :  { %22 = vsyncpa [#allocation3 + $0x1], 0  ;;  %s4875_s18 = smov 0   ;;  %s4877_s19 = smov 0  }
   0x2   :  { %s4879_s20 = smov 0   ;;  %s4881_s21 = smov 0  }
   0x3 LB: > { %6488 = sst [smem:[#allocation5_spill]] %s4777_s18  ;;  %s3767_s22 = sadd.s32 4294967295, %s4789_s21   ;;  %s4789_s21 = sphi %s4881_s21, %s6604_s21   ;;  %s4785_s20 = sphi %s4879_s20, %s6606_s20   ;;  %s4781_s19 = sphi %s4877_s19, %s6608_s19   ;;  %s4777_s18 = sphi %s4875_s18, %s6607_s18  }
   0x4   : > { %6489 = sst [smem:[#allocation6_spill]] %s4785_s20  ;;  %s3768_s23 = sadd.s32 4294967294, %s4789_s21  }
   0x5   : > { %6490 = sst [smem:[#allocation7_spill]] %s4789_s21  ;;  %s4898_s24 = sadd.s32 1, %s4789_s21  }
   0x6   : > { %6491 = sst [smem:[#allocation8_spill]] %s4898_s24  ;;  %s365_s25 = sadd.s32 1, %s4785_s20 }
   0x7   : > { %s362_s26 = ssub.s32 %s4789_s21, %s4898_s24  ;;  %p375_p0 = scmp.ne.s32.totalorder %s4785_s20, %s4781_s19 }
   0x8   : > { %p363_p1 = scmp.eq.s32.totalorder %s362_s26, 0  ;;  %p376_p2 = scmp.eq.s32.totalorder %s3767_s22, 1 }
   0x9   : > { %p381_p3 = scmp.ne.s32.totalorder %s4781_s19, %s4777_s18  ;;  %p382_p4 = scmp.eq.s32.totalorder %s3768_s23, 1 }
   0xa   : > { %s4908_s27 = scalar_select %p363_p1, %s4785_s20, %s365_s25  }
   0xb   : > { %p4910_p5 = por %p376_p2, %p375_p0  ;;  %p4914_p6 = por %p382_p4, %p381_p3 }
   0xc   : > { %6492 = sst [smem:[#allocation9_spill]] %s4908_s27  ;;  %p3771_p7 = scmp.ge.s32.totalorder %s4789_s21, 1 }
   0xd   : > { %s6494_s29 = scalar_select %p4914_p6, 1, 0 }
   0xe   : > { %p464_p8 = scmp.lt.s32.totalorder %s4789_s21, 3 }
   0xf   : > { %6495 = sst [smem:[#allocation10_spill]] %s6494_s29 }
  0x10   : > { %p465_p9 = pnand %p3771_p7, %p464_p8 }
  0x12   : > { %468 = sbr.rel (%p465_p9) target bundleno = 3132 (0xc3c), region = 80 }
  0x17   : > { %v4319_v0 = vld [vmem:[%s6408_s1 + $0x78] sm:$0xff]   ;;  %s4923_s17 = sshll.u32 %s3767_s22, 4  ;;  %v4321_v2 = vld [vmem:[%s6408_s1 + $0x70] sm:$0xff]   ;;  %v4323_v4 = vld [vmem:[%s6408_s1 + $0x68] sm:$0xff]   ;;  %vm919_vm0 = vcmask 261120   ;;  %s4791_s22 = smov 16  }
  0x18   : > { %v4320_v1 = vld [vmem:[%s6408_s1 + $0x38] sm:$0xff]   ;;  %3911 = vmatprep.subr.bf16.mxu0 %v4319_v0  ;;  %p523_p10 = scmp.lt.s32.totalorder %s4923_s17, 31  ;;  %v4322_v3 = vld [vmem:[%s6408_s1 + $0x30] sm:$0xff]   ;;  %v4324_v5 = vld [vmem:[%s6408_s1 + $0x28] sm:$0xff]   ;;  %vm1416_vm1 = vcmask 130048   ;;  %s6539_s27 = smov 112  }
  0x19   : > { %3912 = vmatpush3.bf16.msra.mxu0 %v4320_v1  ;;  %v4325_v6 = vld [vmem:[%s6408_s1 + $0x60] sm:$0xff]   ;;  %v4327_v8 = vld [vmem:[%s6408_s1 + $0x58] sm:$0xff]   ;;  %v4329_v10 = vld [vmem:[%s6408_s1 + $0x50] sm:$0xff]   ;;  %vm3574_vm2 = vcmask 130112   ;;  %vm3581_vm3 = vcmask 195712   ;;  %vm3588_vm4 = vcmask 261312   ;;  %s6370_s21 = scalar_lea.hbm %s6422_s15, %s4923_s17 }
  0x1a   : > { %3913 = vmatprep.subr.bf16.mxu0 %v4321_v2  ;;  %s4939_s16 = scalar_select %p523_p10, %s4923_s17, 31  ;;  %v4326_v7 = vld [vmem:[%s6408_s1 + $0x20] sm:$0xff]   ;;  %v4328_v9 = vld [vmem:[%s6408_s1 + $0x18] sm:$0xff]   ;;  %v4330_v14 = vld [vmem:[%s6408_s1 + $0x10] sm:$0xff]   ;;  %vm3595_vm5 = vcmask 326912   ;;  %vm3602_vm6 = vcmask 392512  }
  0x1b   : > { %v4331_v15 = vld [vmem:[%s6408_s1 + $0x48] sm:$0xff]   ;;  %v4333_v17 = vld [vmem:[%s6408_s1 + $0x40] sm:$0xff]   ;;  %vm3609_vm7 = vcmask 458112   ;;  %vm3616_vm8 = vcmask 523712   ;;  %vm3623_vm9 = vcmask 589312   ;;  %vm3630_vm10 = vcmask 654912  }
  0x1c   : > { %s3910_s20 = sshll.u32 %s4939_s16, 4  ;;  %v4332_v16 = vld [vmem:[%s6408_s1 + $0x8] sm:$0xff]   ;;  %v4334_v18 = vld [vmem:[%s6408_s1] sm:$0xff]   ;;  %s3776_s18 = sshll.u32 %s4939_s16, 3  ;;  %vm3637_vm11 = vcmask 720512   ;;  %vm3644_vm12 = vcmask 786112  }
  0x1d   : > { %3914 = vmatpush3.bf16.msra.mxu0 %v4322_v3  ;;  %s4957_s23 = scalar_lea.vmem %s6407_s0, %s3910_s20  ;;  %v4335_v23 = vld [vmem:[%s6410_s3 + $0x8] sm:$0xff]   ;;  %v4336_v1 = vld [vmem:[%s6410_s3] sm:$0xff]   ;;  %s5063_s24 = scalar_lea.vmem %s6420_s13, %s3776_s18  ;;  %vm3651_vm13 = vcmask 851712   ;;  %vm3658_vm14 = vcmask 917312   ;;  %vm3665_vm15 = vcmask 982912  }
  0x1e   : > { %3915 = vmatprep.subr.bf16.mxu0 %v4323_v4  ;;  %v543_v11 = vld [vmem:[%s4957_s23 + $0x8] sm:$0xff]  ;;  %v545_v12 = vld [vmem:[%s4957_s23 + $0x18] sm:$0xff]  ;;  %v542_v19 = vld [vmem:[%s4957_s23] sm:$0xff]  ;;  %4273 = vmatprep.subr.bf16.mxu1 %v4335_v23  ;;  %s6429_s20 = smov 112   ;;  %s4794_s16 = smov [#allocation2]  }
  0x1f   : > { %v663_v13 = vpack.c.bf16 %v545_v12, %v543_v11  ;;  %v544_v20 = vld [vmem:[%s4957_s23 + $0x10] sm:$0xff]  ;;  %v547_v21 = vld [vmem:[%s4957_s23 + $0x28] sm:$0xff]  ;;  %v549_v22 = vld [vmem:[%s4957_s23 + $0x38] sm:$0xff]  ;;  %4275 = vmatpush3.bf16.msra.mxu1 %v4335_v23 }
  0x20   : > { %v662_v24 = vpack.c.bf16 %v544_v20, %v542_v19  ;;  %v665_v25 = vpack.c.bf16 %v549_v22, %v547_v21  ;;  %v546_v26 = vld [vmem:[%s4957_s23 + $0x20] sm:$0xff]  ;;  %v548_v27 = vld [vmem:[%s4957_s23 + $0x30] sm:$0xff]  ;;  %v551_v28 = vld [vmem:[%s4957_s23 + $0x48] sm:$0xff]  ;;  %4274 = vmatprep.subr.bf16.mxu1 %v4336_v1 }
  0x21   : > { %3916 = vmatpush3.bf16.msra.mxu0 %v4324_v5  ;;  %812 = vmatprep.mubr.bf16.mxu0 %v663_v13  ;;  %v553_v29 = vld [vmem:[%s4957_s23 + $0x58] sm:$0xff]  ;;  %v664_v30 = vpack.c.bf16 %v548_v27, %v546_v26  ;;  %v550_v32 = vld [vmem:[%s4957_s23 + $0x40] sm:$0xff]  ;;  %v552_v33 = vld [vmem:[%s4957_s23 + $0x50] sm:$0xff] }
  0x22   : > { %3917 = vmatprep.subr.bf16.mxu0 %v4325_v6  ;;  %v667_v31 = vpack.c.bf16 %v553_v29, %v551_v28  ;;  %v555_v34 = vld [vmem:[%s4957_s23 + $0x68] sm:$0xff]  ;;  %v557_v35 = vld [vmem:[%s4957_s23 + $0x78] sm:$0xff]  ;;  %v666_v36 = vpack.c.bf16 %v552_v33, %v550_v32  ;;  %v554_v38 = vld [vmem:[%s4957_s23 + $0x60] sm:$0xff] }
  0x23   : > { %v669_v37 = vpack.c.bf16 %v557_v35, %v555_v34  ;;  %v556_v39 = vld [vmem:[%s4957_s23 + $0x70] sm:$0xff]  ;;  %v559_v40 = vld [vmem:[%s4957_s23 + $0x88] sm:$0xff]  ;;  %v561_v41 = vld [vmem:[%s4957_s23 + $0x98] sm:$0xff]  ;;  %4276 = vmatpush3.bf16.msra.mxu1 %v4336_v1 }
  0x24   : > { %v668_v42 = vpack.c.bf16 %v556_v39, %v554_v38  ;;  %v671_v43 = vpack.c.bf16 %v561_v41, %v559_v40  ;;  %v558_v44 = vld [vmem:[%s4957_s23 + $0x80] sm:$0xff]  ;;  %v560_v45 = vld [vmem:[%s4957_s23 + $0x90] sm:$0xff]  ;;  %v563_v46 = vld [vmem:[%s4957_s23 + $0xa8] sm:$0xff] }
  0x25   : > { %3918 = vmatpush3.bf16.msra.mxu0 %v4326_v7  ;;  %v565_v47 = vld [vmem:[%s4957_s23 + $0xb8] sm:$0xff]  ;;  %v670_v48 = vpack.c.bf16 %v560_v45, %v558_v44  ;;  %v562_v50 = vld [vmem:[%s4957_s23 + $0xa0] sm:$0xff]  ;;  %v564_v51 = vld [vmem:[%s4957_s23 + $0xb0] sm:$0xff] }
  0x26   : > { %3919 = vmatprep.subr.bf16.mxu0 %v4327_v8  ;;  %v673_v49 = vpack.c.bf16 %v565_v47, %v563_v46  ;;  %v567_v52 = vld [vmem:[%s4957_s23 + $0xc8] sm:$0xff]  ;;  %v569_v53 = vld [vmem:[%s4957_s23 + $0xd8] sm:$0xff]  ;;  %v672_v54 = vpack.c.bf16 %v564_v51, %v562_v50  ;;  %v566_v56 = vld [vmem:[%s4957_s23 + $0xc0] sm:$0xff] }
  0x27   : > { %v675_v55 = vpack.c.bf16 %v569_v53, %v567_v52  ;;  %v568_v57 = vld [vmem:[%s4957_s23 + $0xd0] sm:$0xff]  ;;  %v571_v58 = vld [vmem:[%s4957_s23 + $0xe8] sm:$0xff]  ;;  %v573_v59 = vld [vmem:[%s4957_s23 + $0xf8] sm:$0xff] }
  0x28   : > { %v674_v60 = vpack.c.bf16 %v568_v57, %v566_v56  ;;  %v677_v61 = vpack.c.bf16 %v573_v59, %v571_v58  ;;  %v570_v62 = vld [vmem:[%s4957_s23 + $0xe0] sm:$0xff]  ;;  %v572_v63 = vld [vmem:[%s4957_s23 + $0xf0] sm:$0xff] }
  0x29   : > { %3920 = vmatpush3.bf16.msra.mxu0 %v4328_v9  ;;  %v676_v0 = vpack.c.bf16 %v572_v63, %v570_v62  ;;  %v5021_v4 = vld [vmem:[%s6409_s2] ss:$0 sm:$0xff] }
  0x2a   : > { %3921 = vmatprep.subr.bf16.mxu0 %v4329_v10 }
  0x2d   : > { %3922 = vmatpush3.bf16.msra.mxu0 %v4330_v14 }
  0x2e   : > { %3923 = vmatprep.subr.bf16.mxu0 %v4331_v15 }
  0x31   : > { %3924 = vmatpush3.bf16.msra.mxu0 %v4332_v16 }
  0x32   : > { %3925 = vmatprep.subr.bf16.mxu0 %v4333_v17 }
  0x35   : > { %3926 = vmatpush3.bf16.msra.mxu0 %v4334_v18 }
  0x36   : > { %4117 = vmatprep.subr.bf16.mxu0 %v4335_v23 }
  0x38   : > { %813 = vmatmul.mubr.bf16.vlgmr.msra.gmra.mxu0 %v662_v24 }
  0x39   : > { %820 = vmatprep.mubr.bf16.mxu0 %v665_v25  ;;  %4118 = vmatpush3.bf16.msra.mxu0 %v4335_v23 }
  0x3a   : > { %4119 = vmatprep.subr.bf16.mxu0 %v4336_v1 }
  0x3d   : > { %4120 = vmatpush3.bf16.msra.mxu0 %v4336_v1 }
  0x40   : > { %821 = vmatmul.mubr.bf16.gmra.mxu0 %v664_v30 }
  0x41   : > { %828 = vmatprep.mubr.bf16.mxu0 %v667_v31 }
  0x48   : > { %829 = vmatmul.mubr.bf16.gmra.mxu0 %v666_v36 }
  0x49   : > { %836 = vmatprep.mubr.bf16.mxu0 %v669_v37 }
  0x50   : > { %837 = vmatmul.mubr.bf16.gmra.mxu0 %v668_v42 }
  0x51   : > { %844 = vmatprep.mubr.bf16.mxu0 %v671_v43 }
  0x58   : > { %845 = vmatmul.mubr.bf16.gmra.mxu0 %v670_v48 }
  0x59   : > { %852 = vmatprep.mubr.bf16.mxu0 %v673_v49 }
  0x60   : > { %853 = vmatmul.mubr.bf16.gmra.mxu0 %v672_v54 }
  0x61   : > { %860 = vmatprep.mubr.bf16.mxu0 %v675_v55 }
  0x68   : > { %861 = vmatmul.mubr.bf16.gmra.mxu0 %v674_v60 }
  0x69   : > { %868 = vmatprep.mubr.bf16.mxu0 %v677_v61 }
  0x70   : > { %869 = vmatmul.mubr.bf16.gmra.mxu0 %v676_v0 }
  0xf8   : > { %v3927_v2 = vpop.f32.mrf.mxu0 }
  0xfa   : > { %v3928_v3 = vpop.f32.mrf.mxu0 }
  0xfb   : > { %v3929_v5 = vadd.f32 %v3928_v3, %v3927_v2 }
  0xfc   : > { %v3930_v6 = vpop.f32.mrf.mxu0 }
  0xfd   : > { %v815_v7 = vadd.f32 %v3929_v5, %v5021_v4 }
  0xfe   : > { %v3931_v8 = vpop.f32.mrf.mxu0 }
  0xff   : > { %v3932_v9 = vadd.f32 %v3931_v8, %v3930_v6  ;;  %4348 = vtanh.f32 %v815_v7 }
 0x100   : > { %v3933_v10 = vpop.f32.mrf.mxu0 }
 0x101   : > { %v818_v11 = vadd.f32 %v3932_v9, %v5021_v4 }
 0x102   : > { %v3934_v12 = vpop.f32.mrf.mxu0 }
 0x103   : > { %4350 = vtanh.f32 %v818_v11  ;;  %v3935_v13 = vadd.f32 %v3934_v12, %v3933_v10 }
 0x104   : > { %v3936_v14 = vpop.f32.mrf.mxu0 }
 0x105   : > { %v823_v15 = vadd.f32 %v3935_v13, %v5021_v4 }
 0x106   : > { %v3937_v16 = vpop.f32.mrf.mxu0 }
 0x107   : > { %v3938_v17 = vadd.f32 %v3937_v16, %v3936_v14  ;;  %4352 = vtanh.f32 %v823_v15 }
 0x108   : > { %v3939_v18 = vpop.f32.mrf.mxu0 }
 0x109   : > { %v826_v19 = vadd.f32 %v3938_v17, %v5021_v4 }
 0x10a   : > { %v3940_v20 = vpop.f32.mrf.mxu0 }
 0x10b   : > { %4354 = vtanh.f32 %v826_v19  ;;  %v3941_v21 = vadd.f32 %v3940_v20, %v3939_v18 }
 0x10c   : > { %v3942_v22 = vpop.f32.mrf.mxu0  ;;  %v4349_v25 = vpop.eup %4348 }
 0x10d   : > { %v831_v23 = vadd.f32 %v3941_v21, %v5021_v4 }
 0x10e   : > { %v3943_v24 = vpop.f32.mrf.mxu0 }
 0x10f   : > { %v3944_v26 = vadd.f32 %v3943_v24, %v3942_v22  ;;  %4356 = vtanh.f32 %v831_v23 }
 0x110   : > { %v4351_v27 = vpop.eup %4350  ;;  %v3945_v28 = vpop.f32.mrf.mxu0 }
 0x111   : > { %v834_v29 = vadd.f32 %v3944_v26, %v5021_v4  ;;  %v893_v30 = vpack.c.bf16 %v4351_v27, %v4349_v25 }
 0x112   : > { %v3946_v31 = vpop.f32.mrf.mxu0 }
 0x113   : > { %4358 = vtanh.f32 %v834_v29  ;;  %v3947_v32 = vadd.f32 %v3946_v31, %v3945_v28  ;;  %4121 = vmatprep.mubr.msk.bf16.mxu0 %vm919_vm0, %v893_v30  ;;  %v4338_v28 = vld [vmem:[%s6412_s5] sm:$0xff]   ;;  %v576_v29 = vld [vmem:[%s5063_s24 + $0x10] sm:$0xff]  ;;  %v577_v31 = vld [vmem:[%s5063_s24 + $0x18] sm:$0xff] }
 0x114   : > { %v3948_v33 = vpop.f32.mrf.mxu0  ;;  %v4353_v36 = vpop.eup %4352  ;;  %v574_v30 = vld [vmem:[%s5063_s24] sm:$0xff]  ;;  %1256 = vrot.lane.b32.xlu1 %v576_v29, %s4791_s22 }
 0x115   : > { %v839_v34 = vadd.f32 %v3947_v32, %v5021_v4  ;;  %1252 = vrot.lane.b32.xlu0 %v574_v30, %s4791_s22  ;;  %v575_v32 = vld [vmem:[%s5063_s24 + $0x8] sm:$0xff] }
 0x116   : > { %v3949_v35 = vpop.f32.mrf.mxu0 }
 0x117   : > { %v3950_v37 = vadd.f32 %v3949_v35, %v3948_v33  ;;  %4360 = vtanh.f32 %v839_v34  ;;  %v578_v33 = vld [vmem:[%s5063_s24 + $0x20] sm:$0xff]  ;;  %v579_v34 = vld [vmem:[%s5063_s24 + $0x28] sm:$0xff]  ;;  %v580_v35 = vld [vmem:[%s5063_s24 + $0x30] sm:$0xff] }
 0x118   : > { %v4355_v38 = vpop.eup %4354  ;;  %v3951_v39 = vpop.f32.mrf.mxu0  ;;  %1258 = vrot.lane.b32.xlu1 %v577_v31, %s4791_s22 }
 0x119   : > { %v842_v40 = vadd.f32 %v3950_v37, %v5021_v4  ;;  %v894_v41 = vpack.c.bf16 %v4355_v38, %v4353_v36  ;;  %1254 = vrot.lane.b32.xlu0 %v575_v32, %s4791_s22  ;;  %v581_v36 = vld [vmem:[%s5063_s24 + $0x38] sm:$0xff]  ;;  %v582_v37 = vld [vmem:[%s5063_s24 + $0x40] sm:$0xff]  ;;  %v583_v38 = vld [vmem:[%s5063_s24 + $0x48] sm:$0xff] }
 0x11a   : > { %v3952_v42 = vpop.f32.mrf.mxu0 }
 0x11b   : > { %4362 = vtanh.f32 %v842_v40  ;;  %v3953_v43 = vadd.f32 %v3952_v42, %v3951_v39  ;;  %4122 = vmatmul.mubr.msk.bf16.vlgmr.msra.gmra.mxu0 %vm919_vm0, %v894_v41  ;;  %v584_v39 = vld [vmem:[%s5063_s24 + $0x50] sm:$0xff]  ;;  %v585_v40 = vld [vmem:[%s5063_s24 + $0x58] sm:$0xff]  ;;  %v586_v41 = vld [vmem:[%s5063_s24 + $0x60] sm:$0xff] }
 0x11c   : > { %v3954_v44 = vpop.f32.mrf.mxu0  ;;  %v4357_v47 = vpop.eup %4356  ;;  %1262 = vrot.lane.b32.xlu1 %v579_v34, %s4791_s22  ;;  %v587_v42 = vld [vmem:[%s5063_s24 + $0x68] sm:$0xff] }
 0x11d   : > { %v847_v45 = vadd.f32 %v3953_v43, %v5021_v4  ;;  %1260 = vrot.lane.b32.xlu0 %v578_v33, %s4791_s22  ;;  %v588_v43 = vld [vmem:[%s5063_s24 + $0x70] sm:$0xff] }
 0x11e   : > { %v3955_v46 = vpop.f32.mrf.mxu0 }
 0x11f   : > { %v3956_v48 = vadd.f32 %v3955_v46, %v3954_v44  ;;  %4364 = vtanh.f32 %v847_v45  ;;  %v589_v44 = vld [vmem:[%s5063_s24 + $0x78] sm:$0xff]  ;;  %v5100_v46 = vld [vmem:[%s6411_s4] ss:$0 sm:$0xff]  ;;  %s539_s24 = scalar_lea.vmem %s6421_s14, %s3776_s18  ;;  %s4733_s18 = sshll.u32 %s4794_s16, 4  ;;  %s4734_s18 = int_to_ptr.vmem [resolvable:$false] %s4733_s18 }
 0x120   : > { %v4359_v49 = vpop.eup %4358  ;;  %v3957_v50 = vpop.f32.mrf.mxu0  ;;  %1266 = vrot.lane.b32.xlu1 %v581_v36, %s4791_s22  ;;  %s4735_s30 = scalar_lea.vmem %s4734_s18, 32 }
 0x121   : > { %v850_v51 = vadd.f32 %v3956_v48, %v5021_v4  ;;  %v895_v52 = vpack.c.bf16 %v4359_v49, %v4357_v47  ;;  %1264 = vrot.lane.b32.xlu0 %v580_v35, %s4791_s22 }
 0x122   : > { %v3958_v53 = vpop.f32.mrf.mxu0 }
 0x123   : > { %4366 = vtanh.f32 %v850_v51  ;;  %v3959_v54 = vadd.f32 %v3958_v53, %v3957_v50  ;;  %4125 = vmatprep.mubr.msk.bf16.mxu0 %vm919_vm0, %v895_v52 }
 0x124   : > { %v3960_v55 = vpop.f32.mrf.mxu0  ;;  %v4361_v58 = vpop.eup %4360  ;;  %1270 = vrot.lane.b32.xlu1 %v583_v38, %s4791_s22 }
 0x125   : > { %v855_v56 = vadd.f32 %v3959_v54, %v5021_v4  ;;  %1268 = vrot.lane.b32.xlu0 %v582_v37, %s4791_s22 }
 0x126   : > { %v3961_v57 = vpop.f32.mrf.mxu0 }
 0x127   : > { %v3962_v59 = vadd.f32 %v3961_v57, %v3960_v55  ;;  %4368 = vtanh.f32 %v855_v56 }
 0x128   : > { %v4363_v60 = vpop.eup %4362  ;;  %v3963_v61 = vpop.f32.mrf.mxu0  ;;  %1274 = vrot.lane.b32.xlu1 %v585_v40, %s4791_s22  ;;  %v5136_v40 = vld [vmem:[%s6413_s6] ss:$0 sm:$0xff] }
 0x129   : > { %v858_v62 = vadd.f32 %v3962_v59, %v5021_v4  ;;  %v896_v63 = vpack.c.bf16 %v4363_v60, %v4361_v58  ;;  %1272 = vrot.lane.b32.xlu0 %v584_v39, %s4791_s22  ;;  %v5129_v39 = vld [vmem:[%s6414_s7] sm:$0xff]  }
 0x12a   : > { %v3964_v0 = vpop.f32.mrf.mxu0 }
 0x12b   : > { %4370 = vtanh.f32 %v858_v62  ;;  %v3965_v1 = vadd.f32 %v3964_v0, %v3963_v61  ;;  %4126 = vmatmul.mubr.msk.bf16.gmra.mxu0 %vm919_vm0, %v896_v63 }
 0x12c   : > { %v3966_v2 = vpop.f32.mrf.mxu0  ;;  %v4365_v6 = vpop.eup %4364  ;;  %1278 = vrot.lane.b32.xlu1 %v587_v42, %s4791_s22 }
 0x12d   : > { %v863_v3 = vadd.f32 %v3965_v1, %v5021_v4  ;;  %1276 = vrot.lane.b32.xlu0 %v586_v41, %s4791_s22 }
 0x12e   : > { %v3967_v5 = vpop.f32.mrf.mxu0 }
 0x12f   : > { %v3968_v7 = vadd.f32 %v3967_v5, %v3966_v2  ;;  %4372 = vtanh.f32 %v863_v3 }
 0x130   : > { %v4367_v8 = vpop.eup %4366  ;;  %v3969_v9 = vpop.f32.mrf.mxu0  ;;  %1282 = vrot.lane.b32.xlu1 %v589_v44, %s4791_s22 }
 0x131   : > { %v866_v10 = vadd.f32 %v3968_v7, %v5021_v4  ;;  %v897_v11 = vpack.c.bf16 %v4367_v8, %v4365_v6  ;;  %1280 = vrot.lane.b32.xlu0 %v588_v43, %s4791_s22 }
 0x132   : > { %v3970_v12 = vpop.f32.mrf.mxu0 }
 0x133   : > { %4374 = vtanh.f32 %v866_v10  ;;  %v3971_v13 = vadd.f32 %v3970_v12, %v3969_v9  ;;  %4129 = vmatprep.mubr.msk.bf16.mxu0 %vm919_vm0, %v897_v11 }
 0x134   : > { %v3972_v14 = vpop.f32.mrf.mxu0  ;;  %v4369_v17 = vpop.eup %4368 }
 0x135   : > { %v871_v15 = vadd.f32 %v3971_v13, %v5021_v4 }
 0x136   : > { %v3973_v16 = vpop.f32.mrf.mxu0 }
 0x137   : > { %v3974_v18 = vadd.f32 %v3973_v16, %v3972_v14  ;;  %4376 = vtanh.f32 %v871_v15 }
 0x138   : > { %v4371_v19 = vpop.eup %4370 }
 0x139   : > { %v874_v20 = vadd.f32 %v3974_v18, %v5021_v4  ;;  %v898_v21 = vpack.c.bf16 %v4371_v19, %v4369_v17  ;;  %v5050_v4 = vld [vmem:[%s6412_s5 + $0x8] sm:$0xff]  }
 0x13a   : > { %4137 = vmatprep.subr.bf16.mxu1 %v5050_v4 }
 0x13b   : > { %4378 = vtanh.f32 %v874_v20  ;;  %4130 = vmatmul.mubr.msk.bf16.gmra.mxu0 %vm919_vm0, %v898_v21 }
 0x13c   : > { %v4373_v22 = vpop.eup %4372 }
 0x140   : > { %v4375_v23 = vpop.eup %4374 }
 0x141   : > { %v899_v24 = vpack.c.bf16 %v4375_v23, %v4373_v22 }
 0x143   : > { %4133 = vmatprep.mubr.msk.bf16.mxu1 %vm919_vm0, %v899_v24 }
 0x144   : > { %v4377_v25 = vpop.eup %4376 }
 0x148   : > { %v4379_v26 = vpop.eup %4378 }
 0x149   : > { %v900_v27 = vpack.c.bf16 %v4379_v26, %v4377_v25 }
 0x14b   : > { %4134 = vmatmul.mubr.msk.bf16.vlgmr.msra.gmra.mxu1 %vm919_vm0, %v900_v27 }
 0x14c   : > { %4138 = vmatpush3.bf16.msra.mxu1 %v5050_v4 }
 0x14d   : > { %4139 = vmatprep.subr.bf16.mxu1 %v4338_v28 }
 0x150   : > { %4140 = vmatpush3.bf16.msra.mxu1 %v4338_v28 }
 0x151   : > { %4157 = vmatprep.subr.bf16.mxu1 %v5129_v39 }
 0x1db   : > { %v4123_v45 = vpop.f32.mrf.mxu0 }
 0x1dc   : > { %v987_v51 = vadd.f32 %v4123_v45, %v5100_v46 }
 0x1dd   : > { %v978_v47 = vpop.f32.mrf.mxu0 }
 0x1de   : > { %v979_v48 = vadd.f32 %v5100_v46, %v978_v47 }
 0x1df   : > { %v4124_v49 = vpop.f32.mrf.mxu0 }
 0x1e0   : > { %v990_v50 = vadd.f32 %v4124_v49, %v5100_v46  ;;  %4380 = vtanh.f32 %v979_v48 }
 0x1e1   : > { %v981_v52 = vpop.f32.mrf.mxu0 }
 0x1e2   : > { %v982_v53 = vadd.f32 %v5100_v46, %v981_v52  ;;  %4382 = vtanh.f32 %v990_v50 }
 0x1e4   : > { %4384 = vtanh.f32 %v982_v53 }
 0x1e5   : > { %4386 = vtanh.f32 %v987_v51 }
 0x1eb   : > { %v4127_v54 = vpop.f32.mrf.mxu0 }
 0x1ec   : > { %v1003_v62 = vadd.f32 %v4127_v54, %v5100_v46  ;;  %v1253_v54 = vpop.permute.xlu0 %1252 }
 0x1ed   : > { %v994_v55 = vpop.f32.mrf.mxu0  ;;  %v4381_v57 = vpop.eup %4380 }
 0x1ee   : > { %v995_v56 = vadd.f32 %v5100_v46, %v994_v55 }
 0x1ef   : > { %v4128_v58 = vpop.f32.mrf.mxu0  ;;  %v4383_v59 = vpop.eup %4382 }
 0x1f0   : > { %v1006_v60 = vadd.f32 %v4128_v58, %v5100_v46  ;;  %4388 = vtanh.f32 %v995_v56 }
 0x1f1   : > { %v4385_v61 = vpop.eup %4384  ;;  %v997_v63 = vpop.f32.mrf.mxu0 }
 0x1f2   : > { %v4387_v0 = vpop.eup %4386  ;;  %v998_v1 = vadd.f32 %v5100_v46, %v997_v63  ;;  %v1057_v2 = vpack.c.bf16 %v4385_v61, %v4381_v57  ;;  %4390 = vtanh.f32 %v1006_v60 }
 0x1f3   : > { %v1058_v3 = vpack.c.bf16 %v4383_v59, %v4387_v0  ;;  %v1257_v59 = vpop.permute.xlu1 %1256 }
 0x1f4   : > { %4392 = vtanh.f32 %v998_v1  ;;  %4141 = vmatprep.mubr.msk.bf16.mxu1 %vm919_vm0, %v1057_v2 }
 0x1f5   : > { %4394 = vtanh.f32 %v1003_v62  ;;  %4142 = vmatmul.mubr.msk.bf16.vlgmr.msra.gmra.mxu1 %vm919_vm0, %v1058_v3  ;;  %v1255_v3 = vpop.permute.xlu0 %1254 }
 0x1f6   : > { %4158 = vmatpush3.bf16.msra.mxu1 %v5129_v39 }
 0x1fb   : > { %v4131_v5 = vpop.f32.mrf.mxu0 }
 0x1fc   : > { %v1019_v13 = vadd.f32 %v4131_v5, %v5100_v46 }
 0x1fd   : > { %v1010_v6 = vpop.f32.mrf.mxu0  ;;  %v4389_v8 = vpop.eup %4388 }
 0x1fe   : > { %v1011_v7 = vadd.f32 %v5100_v46, %v1010_v6 }
 0x1ff   : > { %v4132_v9 = vpop.f32.mrf.mxu0  ;;  %v4391_v10 = vpop.eup %4390 }
 0x200   : > { %v1022_v11 = vadd.f32 %v4132_v9, %v5100_v46  ;;  %4396 = vtanh.f32 %v1011_v7 }
 0x201   : > { %v4393_v12 = vpop.eup %4392  ;;  %v1013_v14 = vpop.f32.mrf.mxu0 }
 0x202   : > { %v4395_v15 = vpop.eup %4394  ;;  %v1014_v16 = vadd.f32 %v5100_v46, %v1013_v14  ;;  %v1059_v17 = vpack.c.bf16 %v4393_v12, %v4389_v8  ;;  %4398 = vtanh.f32 %v1022_v11  ;;  %v1259_v12 = vpop.permute.xlu1 %1258 }
 0x203   : > { %v1060_v18 = vpack.c.bf16 %v4391_v10, %v4395_v15  ;;  %v1261_v14 = vpop.permute.xlu0 %1260 }
 0x204   : > { %4400 = vtanh.f32 %v1014_v16  ;;  %4145 = vmatprep.mubr.msk.bf16.mxu1 %vm919_vm0, %v1059_v17 }
 0x205   : > { %4402 = vtanh.f32 %v1019_v13  ;;  %4146 = vmatmul.mubr.msk.bf16.gmra.mxu1 %vm919_vm0, %v1060_v18 }
 0x20b   : > { %v4135_v19 = vpop.f32.mrf.mxu1 }
 0x20c   : > { %v1035_v27 = vadd.f32 %v4135_v19, %v5100_v46 }
 0x20d   : > { %v1026_v20 = vpop.f32.mrf.mxu1  ;;  %v4397_v22 = vpop.eup %4396 }
 0x20e   : > { %v1027_v21 = vadd.f32 %v5100_v46, %v1026_v20 }
 0x20f   : > { %v4136_v23 = vpop.f32.mrf.mxu1  ;;  %v4399_v24 = vpop.eup %4398 }
 0x210   : > { %v1038_v25 = vadd.f32 %v4136_v23, %v5100_v46  ;;  %4404 = vtanh.f32 %v1027_v21  ;;  %v1263_v21 = vpop.permute.xlu1 %1262 }
 0x211   : > { %v4401_v26 = vpop.eup %4400  ;;  %v1029_v28 = vpop.f32.mrf.mxu1 }
 0x212   : > { %v4403_v29 = vpop.eup %4402  ;;  %v1030_v30 = vadd.f32 %v5100_v46, %v1029_v28  ;;  %v1061_v31 = vpack.c.bf16 %v4401_v26, %v4397_v22  ;;  %4406 = vtanh.f32 %v1038_v25 }
 0x213   : > { %v1062_v32 = vpack.c.bf16 %v4399_v24, %v4403_v29 }
 0x214   : > { %4408 = vtanh.f32 %v1030_v30  ;;  %4149 = vmatprep.mubr.msk.bf16.mxu1 %vm919_vm0, %v1061_v31 }
 0x215   : > { %4410 = vtanh.f32 %v1035_v27  ;;  %4150 = vmatmul.mubr.msk.bf16.gmra.mxu1 %vm919_vm0, %v1062_v32  ;;  %v1265_v27 = vpop.permute.xlu0 %1264 }
 0x21d   : > { %v4405_v33 = vpop.eup %4404 }
 0x21f   : > { %v4407_v34 = vpop.eup %4406 }
 0x221   : > { %v4409_v35 = vpop.eup %4408 }
 0x222   : > { %v4411_v36 = vpop.eup %4410  ;;  %v1063_v37 = vpack.c.bf16 %v4409_v35, %v4405_v33 }
 0x223   : > { %v1064_v38 = vpack.c.bf16 %v4407_v34, %v4411_v36  ;;  %v1267_v36 = vpop.permute.xlu1 %1266 }
 0x224   : > { %4153 = vmatprep.mubr.msk.bf16.mxu1 %vm919_vm0, %v1063_v37 }
 0x225   : > { %4154 = vmatmul.mubr.msk.bf16.gmra.mxu1 %vm919_vm0, %v1064_v38  ;;  %v1269_v38 = vpop.permute.xlu0 %1268 }
 0x2b5   : > { %v4143_v41 = vpop.f32.mrf.mxu1 }
 0x2b6   : > { %v5139_v42 = vadd.f32 %v4143_v41, %v5136_v40 }
 0x2b7   : > { %v1141_v43 = vpop.f32.mrf.mxu1 }
 0x2b8   : > { %v5142_v44 = vadd.f32 %v5136_v40, %v1141_v43  ;;  %v1208_v45 = vmul.f32 1.442695, %v5139_v42 }
 0x2b9   : > { %v4144_v46 = vpop.f32.mrf.mxu1 }
 0x2ba   : > { %v1204_v47 = vmul.f32 1.442695, %v5142_v44  ;;  %v5147_v48 = vadd.f32 %v4144_v46, %v5136_v40 }
 0x2bb   : > { %v1144_v49 = vpop.f32.mrf.mxu1 }
 0x2bc   : > { %4412 = vpow2.f32 %v1204_v47  ;;  %v5150_v50 = vadd.f32 %v5136_v40, %v1144_v49  ;;  %v1210_v51 = vmul.f32 1.442695, %v5147_v48  ;;  %v1271_v49 = vpop.permute.xlu1 %1270 }
 0x2bd   : > { %4414 = vpow2.f32 %v1208_v45 }
 0x2be   : > { %v1206_v52 = vmul.f32 1.442695, %v5150_v50 }
 0x2c0   : > { %4416 = vpow2.f32 %v1206_v52 }
 0x2c1   : > { %4418 = vpow2.f32 %v1210_v51 }
 0x2c5   : > { %v4147_v53 = vpop.f32.mrf.mxu1 }
 0x2c6   : > { %v5155_v55 = vadd.f32 %v4147_v53, %v5136_v40 }
 0x2c7   : > { %v1157_v56 = vpop.f32.mrf.mxu1 }
 0x2c8   : > { %v5158_v57 = vadd.f32 %v5136_v40, %v1157_v56  ;;  %v1216_v62 = vmul.f32 1.442695, %v5155_v55  ;;  %v1273_v56 = vpop.permute.xlu0 %1272 }
 0x2c9   : > { %v5160_v58 = vpop.eup %4412  ;;  %v4148_v60 = vpop.f32.mrf.mxu1 }
 0x2ca   : > { %v5162_v61 = vpop.eup %4414  ;;  %v1212_v63 = vmul.f32 1.442695, %v5158_v57  ;;  %v1300_v0 = vmul.f32 %v5160_v58, %v1253_v54  ;;  %v5168_v1 = vadd.f32 %v4148_v60, %v5136_v40 }
 0x2cb   : > { %v1160_v2 = vpop.f32.mrf.mxu1  ;;  %v1302_v7 = vmul.f32 %v5162_v61, %v1257_v59 }
 0x2cc   : > { %4420 = vpow2.f32 %v1212_v63  ;;  %v5171_v5 = vadd.f32 %v5136_v40, %v1160_v2  ;;  %1332 = vrot.lane.b32.xlu0 %v1300_v0, %s6429_s20  ;;  %v1218_v8 = vmul.f32 1.442695, %v5168_v1 }
 0x2cd   : > { %v5174_v6 = vpop.eup %4416  ;;  %4422 = vpow2.f32 %v1216_v62 }
 0x2ce   : > { %v1214_v9 = vmul.f32 1.442695, %v5171_v5  ;;  %v1301_v10 = vmul.f32 %v5174_v6, %v1255_v3  ;;  %v5180_v11 = vpop.eup %4418 }
 0x2cf   : > { %v1303_v13 = vmul.f32 %v5180_v11, %v1259_v12  ;;  %v1277_v12 = vpop.permute.xlu0 %1276 }
 0x2d0   : > { %4424 = vpow2.f32 %v1214_v9  ;;  %1334 = vrot.lane.b32.xlu1 %v1301_v10, %s6429_s20  ;;  %1336 = vrot.lane.b32.xlu0 %v1302_v7, %s6429_s20  ;;  %v1275_v10 = vpop.permute.xlu1 %1274 }
 0x2d1   : > { %4426 = vpow2.f32 %v1218_v8 }
 0x2d4   : > { %1338 = vrot.lane.b32.xlu1 %v1303_v13, %s6429_s20 }
 0x2d5   : > { %v4151_v15 = vpop.f32.mrf.mxu1 }
 0x2d6   : > { %v5187_v16 = vadd.f32 %v4151_v15, %v5136_v40 }
 0x2d7   : > { %v1173_v17 = vpop.f32.mrf.mxu1 }
 0x2d8   : > { %v5190_v18 = vadd.f32 %v5136_v40, %v1173_v17  ;;  %v1224_v20 = vmul.f32 1.442695, %v5187_v16 }
 0x2d9   : > { %v5192_v19 = vpop.eup %4420  ;;  %v4152_v22 = vpop.f32.mrf.mxu1 }
 0x2da   : > { %v1304_v23 = vmul.f32 %v5192_v19, %v1261_v14  ;;  %v1220_v24 = vmul.f32 1.442695, %v5190_v18  ;;  %v5198_v25 = vadd.f32 %v4152_v22, %v5136_v40  ;;  %v5200_v26 = vpop.eup %4422  ;;  %v1279_v14 = vpop.permute.xlu1 %1278 }
 0x2db   : > { %v1176_v28 = vpop.f32.mrf.mxu1  ;;  %v1306_v32 = vmul.f32 %v5200_v26, %v1265_v27 }
 0x2dc   : > { %4428 = vpow2.f32 %v1220_v24  ;;  %v5203_v29 = vadd.f32 %v5136_v40, %v1176_v28  ;;  %1340 = vrot.lane.b32.xlu0 %v1304_v23, %s6429_s20  ;;  %v1226_v33 = vmul.f32 1.442695, %v5198_v25 }
 0x2dd   : > { %v5206_v30 = vpop.eup %4424  ;;  %4430 = vpow2.f32 %v1224_v20  ;;  %v1281_v20 = vpop.permute.xlu0 %1280 }
 0x2de   : > { %v1305_v31 = vmul.f32 %v5206_v30, %v1263_v21  ;;  %v1222_v34 = vmul.f32 1.442695, %v5203_v29  ;;  %v5212_v35 = vpop.eup %4426  ;;  %v1283_v27 = vpop.permute.xlu1 %1282 }
 0x2df   : > { %v1307_v37 = vmul.f32 %v5212_v35, %v1267_v36 }
 0x2e0   : > { %4432 = vpow2.f32 %v1222_v34  ;;  %1342 = vrot.lane.b32.xlu1 %v1305_v31, %s6429_s20  ;;  %1344 = vrot.lane.b32.xlu0 %v1306_v32, %s6429_s20 }
 0x2e1   : > { %4434 = vpow2.f32 %v1226_v33 }
 0x2e4   : > { %1346 = vrot.lane.b32.xlu1 %v1307_v37, %s6429_s20 }
 0x2e5   : > { %v4155_v41 = vpop.f32.mrf.mxu1 }
 0x2e6   : > { %v5219_v43 = vadd.f32 %v4155_v41, %v5136_v40 }
 0x2e7   : > { %v1189_v45 = vpop.f32.mrf.mxu1 }
 0x2e8   : > { %v5222_v46 = vadd.f32 %v5136_v40, %v1189_v45  ;;  %v1232_v54 = vmul.f32 1.442695, %v5219_v43 }
 0x2e9   : > { %v5224_v47 = vpop.eup %4428  ;;  %v4156_v51 = vpop.f32.mrf.mxu1 }
 0x2ea   : > { %v5226_v52 = vpop.eup %4430  ;;  %v1308_v53 = vmul.f32 %v5224_v47, %v1269_v38  ;;  %v1228_v59 = vmul.f32 1.442695, %v5222_v46  ;;  %v5232_v60 = vadd.f32 %v4156_v51, %v5136_v40 }
 0x2eb   : > { %6496 = vst [vmem:[#allocation11_spill] sm:$0xff] %v5226_v52  ;;  %v1192_v62 = vpop.f32.mrf.mxu1  ;;  %v1310_v2 = vmul.f32 %v5226_v52, %v1273_v56 }
 0x2ec   : > { %6497 = vst [vmem:[#allocation12_spill] sm:$0xff] %v5232_v60  ;;  %4436 = vpow2.f32 %v1228_v59  ;;  %v5235_v63 = vadd.f32 %v5136_v40, %v1192_v62  ;;  %1348 = vrot.lane.b32.xlu0 %v1308_v53, %s6429_s20  ;;  %v1234_v7 = vmul.f32 1.442695, %v5232_v60 }
 0x2ed   : > { %v5238_v0 = vpop.eup %4432  ;;  %4438 = vpow2.f32 %v1232_v54 }
 0x2ee   : > { %6498 = vst [vmem:[#allocation13_spill] sm:$0xff] %v5238_v0  ;;  %v1309_v3 = vmul.f32 %v5238_v0, %v1271_v49  ;;  %v1230_v8 = vmul.f32 1.442695, %v5235_v63  ;;  %v5244_v9 = vpop.eup %4434 }
 0x2ef   : > { %6499 = vst [vmem:[#allocation14_spill] sm:$0xff] %v5244_v9  ;;  %v1311_v40 = vmul.f32 %v5244_v9, %v1275_v10 }
 0x2f0   : > { %4440 = vpow2.f32 %v1230_v8  ;;  %1350 = vrot.lane.b32.xlu1 %v1309_v3, %s6429_s20  ;;  %1352 = vrot.lane.b32.xlu0 %v1310_v2, %s6429_s20 }
 0x2f1   : > { %4442 = vpow2.f32 %v1234_v7 }
 0x2f4   : > { %1354 = vrot.lane.b32.xlu1 %v1311_v40, %s6429_s20 }
 0x2f9   : > { %v5250_v13 = vpop.eup %4436 }
 0x2fa   : > { %6500 = vst [vmem:[#allocation15_spill] sm:$0xff] %v5250_v13  ;;  %v1312_v15 = vmul.f32 %v5250_v13, %v1277_v12  ;;  %v5253_v17 = vpop.eup %4438 }
 0x2fb   : > { %6501 = vst [vmem:[#allocation16_spill] sm:$0xff] %v5253_v17  ;;  %v1314_v23 = vmul.f32 %v5253_v17, %v1281_v20 }
 0x2fc   : > { %1356 = vrot.lane.b32.xlu0 %v1312_v15, %s6429_s20 }
 0x2fd   : > { %v5256_v21 = vpop.eup %4440 }
 0x2fe   : > { %6502 = vst [vmem:[#allocation17_spill] sm:$0xff] %v5256_v21  ;;  %v1313_v22 = vmul.f32 %v5256_v21, %v1279_v14  ;;  %v5260_v24 = vpop.eup %4442 }
 0x2ff   : > { %6503 = vst [vmem:[#allocation18_spill] sm:$0xff] %v5260_v24  ;;  %v1315_v28 = vmul.f32 %v5260_v24, %v1283_v27 }
 0x300   : > { %1358 = vrot.lane.b32.xlu1 %v1313_v22, %s6429_s20  ;;  %1360 = vrot.lane.b32.xlu0 %v1314_v23, %s6429_s20 }
 0x304   : > { %1362 = vrot.lane.b32.xlu1 %v1315_v28, %s6429_s20 }
 0x33e   : > { %v1333_v31 = vpop.permute.xlu0 %1332 }
 0x33f   : > { %v1380_v33 = vadd.f32 %v1333_v31, %v5142_v44 }
 0x342   : > { %v1335_v32 = vpop.permute.xlu1 %1334  ;;  %v1337_v36 = vpop.permute.xlu0 %1336 }
 0x343   : > { %v1381_v34 = vadd.f32 %v1335_v32, %v5150_v50  ;;  %v1382_v41 = vadd.f32 %v1337_v36, %v5139_v42 }
 0x345   : > { %v1396_v37 = vpack.c.bf16 %v1381_v34, %v1380_v33 }
 0x346   : > { %v1339_v38 = vpop.permute.xlu1 %1338 }
 0x347   : > { %v1383_v45 = vadd.f32 %v1339_v38, %v5147_v48  ;;  %4159 = vmatprep.mubr.msk.bf16.mxu1 %vm1416_vm1, %v1396_v37 }
 0x349   : > { %v1397_v49 = vpack.c.bf16 %v1383_v45, %v1382_v41 }
 0x34b   : > { %4160 = vmatmul.mubr.msk.bf16.vlgmr.msra.gmra.mxu1 %vm1416_vm1, %v1397_v49 }
 0x34e   : > { %v1341_v51 = vpop.permute.xlu0 %1340 }
 0x34f   : > { %v1384_v54 = vadd.f32 %v1341_v51, %v5158_v57  ;;  %v5293_v51 = vld [vmem:[%s6416_s9 + $0x8] sm:$0xff]  }
 0x350   : > { %4175 = vmatprep.subr.bf16.mxu0 %v5293_v51 }
 0x351   : > { %4176 = vmatpush3.bf16.msra.mxu0 %v5293_v51 }
 0x352   : > { %v1343_v53 = vpop.permute.xlu1 %1342  ;;  %v1345_v59 = vpop.permute.xlu0 %1344 }
 0x353   : > { %v1385_v56 = vadd.f32 %v1343_v53, %v5171_v5  ;;  %v1386_v3 = vadd.f32 %v1345_v59, %v5155_v55  ;;  %v5300_v53 = vld [vmem:[%s6416_s9] sm:$0xff]   ;;  %v5313_v59 = vld [vmem:[%s6418_s11 + $0x14] ss:$8 sps:$4 sm:$0xff]  }
 0x354   : > { %4177 = vmatprep.subr.bf16.mxu0 %v5300_v53  ;;  %1792 = vmatprep.subr.bf16.mxu1 %v5313_v59 }
 0x355   : > { %v1398_v62 = vpack.c.bf16 %v1385_v56, %v1384_v54  ;;  %4178 = vmatpush3.bf16.msra.mxu0 %v5300_v53  ;;  %v4668_v54 = vld [vmem:[%s6408_s1 + $0x78] sm:$0xff]  }
 0x356   : > { %v1347_v2 = vpop.permute.xlu1 %1346  ;;  %4014 = vmatprep.subr.bf16.mxu0 %v4668_v54  ;;  %v4342_v56 = vld [vmem:[%s6418_s11 + $0x10] ss:$8 sps:$4 sm:$0xff]  }
 0x357   : > { %v1387_v7 = vadd.f32 %v1347_v2, %v5168_v1  ;;  %4163 = vmatprep.mubr.msk.bf16.mxu1 %vm1416_vm1, %v1398_v62  ;;  %1793 = vmatpush1.bf16.msra.mxu1 %v4342_v56  ;;  %v5319_v2 = vld [vmem:[%s6415_s8] ss:$0 sm:$0xff]  ;;  %v4671_v54 = vld [vmem:[%s6408_s1 + $0x30] sm:$0xff]  }
 0x359   : > { %v1399_v8 = vpack.c.bf16 %v1387_v7, %v1386_v3 }
 0x35b   : > { %4164 = vmatmul.mubr.msk.bf16.gmra.mxu1 %vm1416_vm1, %v1399_v8 }
 0x35e   : > { %v1349_v10 = vpop.permute.xlu0 %1348 }
 0x35f   : > { %v1388_v12 = vadd.f32 %v1349_v10, %v5190_v18 }
 0x362   : > { %v1351_v40 = vpop.permute.xlu1 %1350  ;;  %v1353_v15 = vpop.permute.xlu0 %1352 }
 0x363   : > { %v1389_v14 = vadd.f32 %v1351_v40, %v5203_v29  ;;  %v1390_v23 = vadd.f32 %v1353_v15, %v5187_v16 }
 0x365   : > { %v1400_v20 = vpack.c.bf16 %v1389_v14, %v1388_v12 }
 0x366   : > { %v1355_v22 = vpop.permute.xlu1 %1354 }
 0x367   : > { %v1391_v27 = vadd.f32 %v1355_v22, %v5198_v25  ;;  %4167 = vmatprep.mubr.msk.bf16.mxu1 %vm1416_vm1, %v1400_v20 }
 0x369   : > { %v1401_v28 = vpack.c.bf16 %v1391_v27, %v1390_v23 }
 0x36b   : > { %4168 = vmatmul.mubr.msk.bf16.gmra.mxu1 %vm1416_vm1, %v1401_v28 }
 0x36e   : > { %v1357_v31 = vpop.permute.xlu0 %1356 }
 0x36f   : > { %v1392_v33 = vadd.f32 %v1357_v31, %v5222_v46 }
 0x372   : > { %v1359_v32 = vpop.permute.xlu1 %1358  ;;  %v1361_v36 = vpop.permute.xlu0 %1360 }
 0x373   : > { %v1393_v34 = vadd.f32 %v1359_v32, %v5235_v63  ;;  %v1394_v41 = vadd.f32 %v1361_v36, %v5219_v43 }
 0x375   : > { %v1402_v37 = vpack.c.bf16 %v1393_v34, %v1392_v33 }
 0x376   : > { %v1363_v38 = vpop.permute.xlu1 %1362 }
 0x377   : > { %v1395_v45 = vadd.f32 %v1363_v38, %v5232_v60  ;;  %4171 = vmatprep.mubr.msk.bf16.mxu1 %vm1416_vm1, %v1402_v37 }
 0x379   : > { %v1403_v49 = vpack.c.bf16 %v1395_v45, %v1394_v41  ;;  %v4669_v45 = vld [vmem:[%s6408_s1 + $0x38] sm:$0xff]  }
 0x37b   : > { %4172 = vmatmul.mubr.msk.bf16.gmra.mxu1 %vm1416_vm1, %v1403_v49  ;;  %v4670_v49 = vld [vmem:[%s6408_s1 + $0x70] sm:$0xff]  }
 0x40b   : > { %v4161_v62 = vpop.f32.mrf.mxu1 }
 0x40c   : > { %v1484_v40 = vadd.f32 %v4161_v62, %v5319_v2  ;;  %v4672_v62 = vld [vmem:[%s6408_s1 + $0x68] sm:$0xff]  }
 0x40d   : > { %v1475_v3 = vpop.f32.mrf.mxu1 }
 0x40e   : > { %v1476_v7 = vadd.f32 %v5319_v2, %v1475_v3 }
 0x40f   : > { %v4162_v8 = vpop.f32.mrf.mxu1 }
 0x410   : > { %v1487_v10 = vadd.f32 %v4162_v8, %v5319_v2  ;;  %4444 = vtanh.f32 %v1476_v7  ;;  %v4673_v8 = vld [vmem:[%s6408_s1 + $0x28] sm:$0xff]  }
 0x411   : > { %v1478_v12 = vpop.f32.mrf.mxu1 }
 0x412   : > { %v1479_v14 = vadd.f32 %v5319_v2, %v1478_v12  ;;  %4446 = vtanh.f32 %v1487_v10  ;;  %v4674_v12 = vld [vmem:[%s6408_s1 + $0x60] sm:$0xff]  }
 0x414   : > { %4448 = vtanh.f32 %v1479_v14 }
 0x415   : > { %4450 = vtanh.f32 %v1484_v40 }
 0x41b   : > { %v4165_v15 = vpop.f32.mrf.mxu1 }
 0x41c   : > { %v1500_v33 = vadd.f32 %v4165_v15, %v5319_v2 }
 0x41d   : > { %v1491_v20 = vpop.f32.mrf.mxu1  ;;  %v4445_v23 = vpop.eup %4444 }
 0x41e   : > { %v1492_v22 = vadd.f32 %v5319_v2, %v1491_v20 }
 0x41f   : > { %v4166_v27 = vpop.f32.mrf.mxu1  ;;  %v4447_v28 = vpop.eup %4446 }
 0x420   : > { %v1503_v31 = vadd.f32 %v4166_v27, %v5319_v2  ;;  %4452 = vtanh.f32 %v1492_v22 }
 0x421   : > { %v4449_v32 = vpop.eup %4448  ;;  %v1494_v34 = vpop.f32.mrf.mxu1 }
 0x422   : > { %v4451_v36 = vpop.eup %4450  ;;  %v1495_v37 = vadd.f32 %v5319_v2, %v1494_v34  ;;  %v1554_v38 = vpack.c.bf16 %v4449_v32, %v4445_v23  ;;  %4454 = vtanh.f32 %v1503_v31  ;;  %v4675_v32 = vld [vmem:[%s6408_s1 + $0x20] sm:$0xff]   ;;  %v4676_v34 = vld [vmem:[%s6408_s1 + $0x58] sm:$0xff]  }
 0x423   : > { %v1555_v41 = vpack.c.bf16 %v4447_v28, %v4451_v36  ;;  %v4677_v36 = vld [vmem:[%s6408_s1 + $0x18] sm:$0xff]  }
 0x424   : > { %4456 = vtanh.f32 %v1495_v37  ;;  %4179 = vmatprep.mubr.msk.bf16.mxu0 %vm919_vm0, %v1554_v38  ;;  %v4678_v37 = vld [vmem:[%s6408_s1 + $0x50] sm:$0xff]  }
 0x425   : > { %4458 = vtanh.f32 %v1500_v33  ;;  %4180 = vmatmul.mubr.msk.bf16.vlgmr.msra.gmra.mxu0 %vm919_vm0, %v1555_v41  ;;  %v4679_v38 = vld [vmem:[%s6408_s1 + $0x10] sm:$0xff]  }
 0x426   : > { %4015 = vmatpush3.bf16.msra.mxu0 %v4669_v45  ;;  %v4680_v45 = vld [vmem:[%s6408_s1 + $0x48] sm:$0xff]  }
 0x427   : > { %4016 = vmatprep.subr.bf16.mxu0 %v4670_v49 }
 0x42a   : > { %4017 = vmatpush3.bf16.msra.mxu0 %v4671_v54 }
 0x42b   : > { %v4169_v56 = vpop.f32.mrf.mxu1  ;;  %4018 = vmatprep.subr.bf16.mxu0 %v4672_v62 }
 0x42c   : > { %v1516_v22 = vadd.f32 %v4169_v56, %v5319_v2  ;;  %v4681_v56 = vld [vmem:[%s6408_s1 + $0x8] sm:$0xff]  }
 0x42d   : > { %v1507_v3 = vpop.f32.mrf.mxu1  ;;  %v4453_v10 = vpop.eup %4452 }
 0x42e   : > { %v1508_v7 = vadd.f32 %v5319_v2, %v1507_v3  ;;  %4019 = vmatpush3.bf16.msra.mxu0 %v4673_v8 }
 0x42f   : > { %v4170_v40 = vpop.f32.mrf.mxu1  ;;  %4020 = vmatprep.subr.bf16.mxu0 %v4674_v12  ;;  %v4455_v14 = vpop.eup %4454 }
 0x430   : > { %v1519_v15 = vadd.f32 %v4170_v40, %v5319_v2  ;;  %4460 = vtanh.f32 %v1508_v7  ;;  %v4682_v7 = vld [vmem:[%s6408_s1 + $0x40] sm:$0xff]  }
 0x431   : > { %v4457_v20 = vpop.eup %4456  ;;  %v1510_v23 = vpop.f32.mrf.mxu1 }
 0x432   : > { %v4459_v27 = vpop.eup %4458  ;;  %v1511_v28 = vadd.f32 %v5319_v2, %v1510_v23  ;;  %v1556_v31 = vpack.c.bf16 %v4457_v20, %v4453_v10  ;;  %4021 = vmatpush3.bf16.msra.mxu0 %v4675_v32  ;;  %4462 = vtanh.f32 %v1519_v15  ;;  %v4683_v23 = vld [vmem:[%s6408_s1] sm:$0xff]  }
 0x433   : > { %v1557_v33 = vpack.c.bf16 %v4455_v14, %v4459_v27  ;;  %4022 = vmatprep.subr.bf16.mxu0 %v4676_v34 }
 0x434   : > { %4464 = vtanh.f32 %v1511_v28  ;;  %4183 = vmatprep.mubr.msk.bf16.mxu0 %vm919_vm0, %v1556_v31 }
 0x435   : > { %4466 = vtanh.f32 %v1516_v22  ;;  %4184 = vmatmul.mubr.msk.bf16.gmra.mxu0 %vm919_vm0, %v1557_v33 }
 0x436   : > { %4023 = vmatpush3.bf16.msra.mxu0 %v4677_v36  ;;  %v4345_v36 = vld [vmem:[%s6418_s11] ss:$8 sps:$4 sm:$0xff]  }
 0x437   : > { %4024 = vmatprep.subr.bf16.mxu0 %v4678_v37  ;;  %v4684_v37 = vld [vmem:[%s6410_s3 + $0x8] sm:$0xff]  }
 0x43a   : > { %4025 = vmatpush3.bf16.msra.mxu0 %v4679_v38  ;;  %v6432_v38 = vmov 0  }
 0x43b   : > { %v4173_v41 = vpop.f32.mrf.mxu1  ;;  %4026 = vmatprep.subr.bf16.mxu0 %v4680_v45  ;;  %1812 = vmatprep.mubr.bf16.mxu1 %v6432_v38 }
 0x43c   : > { %v1532_v12 = vadd.f32 %v4173_v41, %v5319_v2 }
 0x43d   : > { %v1523_v49 = vpop.f32.mrf.mxu1  ;;  %v4461_v62 = vpop.eup %4460 }
 0x43e   : > { %v1524_v54 = vadd.f32 %v5319_v2, %v1523_v49  ;;  %4027 = vmatpush3.bf16.msra.mxu0 %v4681_v56  ;;  %v5404_v49 = vld [vmem:[%s6417_s10] ss:$0 sm:$0xff] }
 0x43f   : > { %v4174_v3 = vpop.f32.mrf.mxu1  ;;  %4028 = vmatprep.subr.bf16.mxu0 %v4682_v7  ;;  %v4463_v8 = vpop.eup %4462 }
 0x440   : > { %v1535_v10 = vadd.f32 %v4174_v3, %v5319_v2  ;;  %4468 = vtanh.f32 %v1524_v54 }
 0x441   : > { %v4465_v40 = vpop.eup %4464  ;;  %v1526_v14 = vpop.f32.mrf.mxu1 }
 0x442   : > { %v4467_v15 = vpop.eup %4466  ;;  %v1527_v20 = vadd.f32 %v5319_v2, %v1526_v14  ;;  %v1558_v22 = vpack.c.bf16 %v4465_v40, %v4461_v62  ;;  %4029 = vmatpush3.bf16.msra.mxu0 %v4683_v23  ;;  %4470 = vtanh.f32 %v1535_v10 }
 0x443   : > { %v1559_v27 = vpack.c.bf16 %v4463_v8, %v4467_v15  ;;  %4215 = vmatprep.subr.bf16.mxu0 %v5050_v4  ;;  %v4347_v4 = vld [vmem:[%s6418_s11 + $0x4] ss:$8 sps:$4 sm:$0xff]  }
 0x444   : > { %4472 = vtanh.f32 %v1527_v20  ;;  %4187 = vmatprep.mubr.msk.bf16.mxu0 %vm919_vm0, %v1558_v22  ;;  %1794 = vmatprep.subr.bf16.mxu1 %v4347_v4 }
 0x445   : > { %4474 = vtanh.f32 %v1532_v12  ;;  %4188 = vmatmul.mubr.msk.bf16.gmra.mxu0 %vm919_vm0, %v1559_v27  ;;  %1795 = vmatpush1.bf16.msra.mxu1 %v4345_v36 }
 0x446   : > { %4195 = vmatprep.subr.bf16.mxu1 %v4684_v37 }
 0x44d   : > { %v4469_v28 = vpop.eup %4468 }
 0x44f   : > { %v4471_v31 = vpop.eup %4470 }
 0x451   : > { %v4473_v32 = vpop.eup %4472 }
 0x452   : > { %v4475_v2 = vpop.eup %4474  ;;  %v1560_v33 = vpack.c.bf16 %v4473_v32, %v4469_v28 }
 0x453   : > { %v1561_v34 = vpack.c.bf16 %v4471_v31, %v4475_v2  ;;  %v4685_v31 = vld [vmem:[%s6410_s3] sm:$0xff]  }
 0x454   : > { %4191 = vmatprep.mubr.msk.bf16.mxu0 %vm919_vm0, %v1560_v33 }
 0x455   : > { %4192 = vmatmul.mubr.msk.bf16.gmra.mxu0 %vm919_vm0, %v1561_v34 }
 0x4e5   : > { %v4181_v41 = vpop.f32.mrf.mxu0 }
 0x4e6   : > { %v1647_v8 = vadd.f32 %v4181_v41, %v5404_v49 }
 0x4e7   : > { %v1638_v45 = vpop.f32.mrf.mxu0 }
 0x4e8   : > { %v1639_v54 = vadd.f32 %v5404_v49, %v1638_v45 }
 0x4e9   : > { %v4182_v56 = vpop.f32.mrf.mxu0 }
 0x4ea   : > { %4476 = vtanh.f32 %v1639_v54  ;;  %v1650_v7 = vadd.f32 %v4182_v56, %v5404_v49 }
 0x4eb   : > { %v1641_v62 = vpop.f32.mrf.mxu0 }
 0x4ec   : > { %v1642_v3 = vadd.f32 %v5404_v49, %v1641_v62 }
 0x4ee   : > { %4478 = vtanh.f32 %v1642_v3 }
 0x4ef   : > { %4480 = vtanh.f32 %v1650_v7 }
 0x4f0   : > { %4482 = vtanh.f32 %v1647_v8 }
 0x4f5   : > { %v4185_v10 = vpop.f32.mrf.mxu0 }
 0x4f6   : > { %v1663_v2 = vadd.f32 %v4185_v10, %v5404_v49 }
 0x4f7   : > { %v1654_v40 = vpop.f32.mrf.mxu0  ;;  %v4477_v15 = vpop.eup %4476 }
 0x4f8   : > { %v1655_v12 = vadd.f32 %v5404_v49, %v1654_v40 }
 0x4f9   : > { %v4186_v14 = vpop.f32.mrf.mxu0 }
 0x4fa   : > { %4484 = vtanh.f32 %v1655_v12  ;;  %v1666_v28 = vadd.f32 %v4186_v14, %v5404_v49 }
 0x4fb   : > { %v4479_v20 = vpop.eup %4478  ;;  %v1657_v22 = vpop.f32.mrf.mxu0 }
 0x4fc   : > { %v1717_v23 = vpack.c.bf16 %v4479_v20, %v4477_v15  ;;  %v1658_v27 = vadd.f32 %v5404_v49, %v1657_v22  ;;  %v4481_v32 = vpop.eup %4480 }
 0x4fd   : > { %v4483_v33 = vpop.eup %4482 }
 0x4fe   : > { %4486 = vtanh.f32 %v1658_v27  ;;  %3843 = vmatmul.mubr.msk.bf16.vlgmr.msra.gmra.mxu1 %vm919_vm0, %v1717_v23  ;;  %v1718_v34 = vpack.c.bf16 %v4481_v32, %v4483_v33 }
 0x4ff   : > { %1822 = vmatprep.mubr.bf16.mxu1 %v6432_v38  ;;  %4196 = vmatpush3.bf16.msra.mxu1 %v4684_v37  ;;  %4488 = vtanh.f32 %v1666_v28 }
 0x500   : > { %4197 = vmatprep.subr.bf16.mxu1 %v4685_v31  ;;  %4490 = vtanh.f32 %v1663_v2 }
 0x503   : > { %4198 = vmatpush3.bf16.msra.mxu1 %v4685_v31 }
 0x504   : > { %4235 = vmatprep.subr.bf16.mxu1 %v5129_v39 }
 0x505   : > { %v4189_v4 = vpop.f32.mrf.mxu0 }
 0x506   : > { %3844 = vmatmul.mubr.msk.bf16.gmra.mxu1 %vm919_vm0, %v1718_v34  ;;  %v1679_v8 = vadd.f32 %v4189_v4, %v5404_v49 }
 0x507   : > { %v1670_v36 = vpop.f32.mrf.mxu0  ;;  %1832 = vmatprep.mubr.bf16.mxu1 %v6432_v38  ;;  %v4485_v45 = vpop.eup %4484 }
 0x508   : > { %v1671_v37 = vadd.f32 %v5404_v49, %v1670_v36 }
 0x509   : > { %v4190_v41 = vpop.f32.mrf.mxu0 }
 0x50a   : > { %4492 = vtanh.f32 %v1671_v37  ;;  %v1682_v39 = vadd.f32 %v4190_v41, %v5404_v49 }
 0x50b   : > { %v4487_v54 = vpop.eup %4486  ;;  %v1673_v56 = vpop.f32.mrf.mxu0 }
 0x50c   : > { %v1674_v62 = vadd.f32 %v5404_v49, %v1673_v56  ;;  %v1719_v3 = vpack.c.bf16 %v4487_v54, %v4485_v45  ;;  %v4489_v7 = vpop.eup %4488 }
 0x50d   : > { %v4491_v10 = vpop.eup %4490 }
 0x50e   : > { %4494 = vtanh.f32 %v1674_v62  ;;  %3845 = vmatmul.mubr.msk.bf16.gmra.mxu1 %vm919_vm0, %v1719_v3  ;;  %v1720_v40 = vpack.c.bf16 %v4489_v7, %v4491_v10 }
 0x50f   : > { %1842 = vmatprep.mubr.bf16.mxu1 %v6432_v38  ;;  %4496 = vtanh.f32 %v1682_v39 }
 0x510   : > { %4498 = vtanh.f32 %v1679_v8  ;;  %v661_v8 = vld [vmem:[%s6419_s12] sm:$0x3] }
 0x515   : > { %v4193_v12 = vpop.f32.mrf.mxu0 }
 0x516   : > { %3846 = vmatmul.mubr.msk.bf16.gmra.mxu1 %vm919_vm0, %v1720_v40  ;;  %v1695_v33 = vadd.f32 %v4193_v12, %v5404_v49 }
 0x517   : > { %v1686_v14 = vpop.f32.mrf.mxu0  ;;  %1852 = vmatprep.mubr.bf16.mxu1 %v6432_v38  ;;  %v4493_v22 = vpop.eup %4492 }
 0x518   : > { %v1687_v15 = vadd.f32 %v5404_v49, %v1686_v14 }
 0x519   : > { %v4194_v20 = vpop.f32.mrf.mxu0 }
 0x51a   : > { %4500 = vtanh.f32 %v1687_v15  ;;  %v1698_v32 = vadd.f32 %v4194_v20, %v5404_v49 }
 0x51b   : > { %v4495_v23 = vpop.eup %4494  ;;  %v1689_v27 = vpop.f32.mrf.mxu0 }
 0x51c   : > { %v1690_v28 = vadd.f32 %v5404_v49, %v1689_v27  ;;  %v1721_v31 = vpack.c.bf16 %v4495_v23, %v4493_v22  ;;  %v4497_v2 = vpop.eup %4496  ;;  %v6431_v49 = vlaneseq }
 0x51d   : > { %v4499_v34 = vpop.eup %4498 }
 0x51e   : > { %4502 = vtanh.f32 %v1690_v28  ;;  %3847 = vmatmul.mubr.msk.bf16.gmra.mxu1 %vm919_vm0, %v1721_v31  ;;  %v1722_v4 = vpack.c.bf16 %v4497_v2, %v4499_v34  ;;  %v5442_v62 = vshrl.u32 %v6431_v49, 7  ;;  %v4686_v34 = vld [vmem:[%s6412_s5 + $0x8] sm:$0xff]  }
 0x51f   : > { %1862 = vmatprep.mubr.bf16.mxu1 %v6432_v38  ;;  %4504 = vtanh.f32 %v1698_v32 }
 0x520   : > { %4506 = vtanh.f32 %v1695_v33  ;;  %6504 = vst [vmem:[#allocation19_spill] sm:$0xff] %v5442_v62  ;;  %v1732_v3 = vsub.s32 1, %v5442_v62  ;;  %v1728_v39 = vsub.s32 0, %v5442_v62 }
 0x522   : > { %v5449_v40 = vrot.slane %v661_v8, %v1732_v3  ;;  %v5451_v12 = vrot.slane %v661_v8, %v1728_v39 }
 0x524   : > { %6505 = vst [vmem:[#allocation20_spill] sm:$0xff] %v5449_v40  ;;  %6506 = vst [vmem:[#allocation21_spill] sm:$0xff] %v5451_v12 }
 0x526   : > { %3848 = vmatmul.mubr.msk.bf16.gmra.mxu1 %vm919_vm0, %v1722_v4 }
 0x527   : > { %1872 = vmatprep.mubr.bf16.mxu1 %v6432_v38  ;;  %v4501_v36 = vpop.eup %4500 }
 0x52b   : > { %v4503_v37 = vpop.eup %4502 }
 0x52c   : > { %v1723_v41 = vpack.c.bf16 %v4503_v37, %v4501_v36  ;;  %v4505_v45 = vpop.eup %4504  ;;  %v4687_v37 = vld [vmem:[%s6412_s5] sm:$0xff]  }
 0x52d   : > { %v4507_v54 = vpop.eup %4506 }
 0x52e   : > { %3849 = vmatmul.mubr.msk.bf16.gmra.mxu1 %vm919_vm0, %v1723_v41  ;;  %v1724_v56 = vpack.c.bf16 %v4505_v45, %v4507_v54 }
 0x52f   : > { %1882 = vmatprep.mubr.bf16.mxu1 %v6432_v38 }
 0x536   : > { %3850 = vmatmul.mubr.msk.bf16.gmra.mxu1 %vm919_vm0, %v1724_v56 }
 0x5be   : > { %v1814_v7 = vpop.f32.mrf.mxu1 }
 0x5bf   : > { %v5463_v27 = vadd.f32 %v1814_v7, %v5451_v12 }
 0x5c0   : > { %v1816_v10 = vpop.f32.mrf.mxu1 }
 0x5c1   : > { %v5457_v22 = vadd.f32 %v1816_v10, %v5449_v40  ;;  %6510 = vst [vmem:[#allocation25_spill] sm:$0xff] %v5463_v27 }
 0x5c2   : > { %v1818_v14 = vpop.f32.mrf.mxu1 }
 0x5c3   : > { %v5454_v15 = vadd.f32 %v1818_v14, %v5451_v12  ;;  %6508 = vst [vmem:[#allocation23_spill] sm:$0xff] %v5457_v22 }
 0x5c4   : > { %v1820_v20 = vpop.f32.mrf.mxu1 }
 0x5c5   : > { %6507 = vst [vmem:[#allocation22_spill] sm:$0xff] %v5454_v15  ;;  %v5460_v23 = vadd.f32 %v1820_v20, %v5449_v40  ;;  %v1893_v32 = vpack.c.bf16 %v5454_v15, %v5463_v27 }
 0x5c6   : > { %v1824_v28 = vpop.f32.mrf.mxu1 }
 0x5c7   : > { %6509 = vst [vmem:[#allocation24_spill] sm:$0xff] %v5460_v23  ;;  %v1894_v31 = vpack.c.bf16 %v5460_v23, %v5457_v22  ;;  %v5485_v54 = vadd.f32 %v1824_v28, %v5451_v12 }
 0x5c8   : > { %v1826_v2 = vpop.f32.mrf.mxu1 }
 0x5c9   : > { %1941 = vmatprep.mubr.bf16.mxu0 %v1894_v31  ;;  %v5479_v41 = vadd.f32 %v1826_v2, %v5449_v40  ;;  %6514 = vst [vmem:[#allocation29_spill] sm:$0xff] %v5485_v54 }
 0x5ca   : > { %v1828_v33 = vpop.f32.mrf.mxu1  ;;  %1942 = vmatmul.mubr.bf16.vlgmr.msra.gmra.mxu0 %v1893_v32 }
 0x5cb   : > { %4216 = vmatpush3.bf16.msra.mxu0 %v4686_v34  ;;  %v5473_v4 = vadd.f32 %v1828_v33, %v5451_v12  ;;  %6512 = vst [vmem:[#allocation27_spill] sm:$0xff] %v5479_v41 }
 0x5cc   : > { %v1830_v36 = vpop.f32.mrf.mxu1  ;;  %4217 = vmatprep.subr.bf16.mxu0 %v4687_v37 }
 0x5cd   : > { %6511 = vst [vmem:[#allocation26_spill] sm:$0xff] %v5473_v4  ;;  %v5482_v45 = vadd.f32 %v1830_v36, %v5449_v40  ;;  %v1895_v39 = vpack.c.bf16 %v5473_v4, %v5485_v54 }
 0x5ce   : > { %v1834_v56 = vpop.f32.mrf.mxu1 }
 0x5cf   : > { %6513 = vst [vmem:[#allocation28_spill] sm:$0xff] %v5482_v45  ;;  %v1896_v3 = vpack.c.bf16 %v5482_v45, %v5479_v41  ;;  %4218 = vmatpush3.bf16.msra.mxu0 %v4687_v37  ;;  %v5502_v31 = vadd.f32 %v1834_v56, %v5451_v12 }
 0x5d0   : > { %v1836_v7 = vpop.f32.mrf.mxu1  ;;  %4253 = vmatprep.subr.bf16.mxu0 %v5293_v51 }
 0x5d1   : > { %1949 = vmatprep.mubr.bf16.mxu0 %v1896_v3  ;;  %v5496_v20 = vadd.f32 %v1836_v7, %v5449_v40  ;;  %6518 = vst [vmem:[#allocation33_spill] sm:$0xff] %v5502_v31 }
 0x5d2   : > { %v1838_v8 = vpop.f32.mrf.mxu1  ;;  %1950 = vmatmul.mubr.bf16.gmra.mxu0 %v1895_v39 }
 0x5d3   : > { %v5493_v10 = vadd.f32 %v1838_v8, %v5451_v12  ;;  %6516 = vst [vmem:[#allocation31_spill] sm:$0xff] %v5496_v20 }
 0x5d4   : > { %v1840_v14 = vpop.f32.mrf.mxu1 }
 0x5d5   : > { %6515 = vst [vmem:[#allocation30_spill] sm:$0xff] %v5493_v10  ;;  %v5499_v28 = vadd.f32 %v1840_v14, %v5449_v40  ;;  %v1897_v33 = vpack.c.bf16 %v5493_v10, %v5502_v31 }
 0x5d6   : > { %v1844_v32 = vpop.f32.mrf.mxu1 }
 0x5d7   : > { %6517 = vst [vmem:[#allocation32_spill] sm:$0xff] %v5499_v28  ;;  %v1898_v2 = vpack.c.bf16 %v5499_v28, %v5496_v20  ;;  %v5518_v7 = vadd.f32 %v1844_v32, %v5451_v12 }
 0x5d8   : > { %v1846_v34 = vpop.f32.mrf.mxu1 }
 0x5d9   : > { %1957 = vmatprep.mubr.bf16.mxu0 %v1898_v2  ;;  %v5512_v39 = vadd.f32 %v1846_v34, %v5449_v40  ;;  %6522 = vst [vmem:[#allocation37_spill] sm:$0xff] %v5518_v7 }
 0x5da   : > { %v1848_v36 = vpop.f32.mrf.mxu1  ;;  %1958 = vmatmul.mubr.bf16.gmra.mxu0 %v1897_v33 }
 0x5db   : > { %v5509_v37 = vadd.f32 %v1848_v36, %v5451_v12  ;;  %6520 = vst [vmem:[#allocation35_spill] sm:$0xff] %v5512_v39 }
 0x5dc   : > { %v1850_v3 = vpop.f32.mrf.mxu1 }
 0x5dd   : > { %6519 = vst [vmem:[#allocation34_spill] sm:$0xff] %v5509_v37  ;;  %v5515_v56 = vadd.f32 %v1850_v3, %v5449_v40  ;;  %v1899_v2 = vpack.c.bf16 %v5509_v37, %v5518_v7 }
 0x5de   : > { %v1854_v8 = vpop.f32.mrf.mxu1 }
 0x5df   : > { %6521 = vst [vmem:[#allocation36_spill] sm:$0xff] %v5515_v56  ;;  %v1900_v14 = vpack.c.bf16 %v5515_v56, %v5512_v39  ;;  %v5534_v38 = vadd.f32 %v1854_v8, %v5451_v12 }
 0x5e0   : > { %v1856_v33 = vpop.f32.mrf.mxu1 }
 0x5e1   : > { %1965 = vmatprep.mubr.bf16.mxu0 %v1900_v14  ;;  %v5528_v3 = vadd.f32 %v1856_v33, %v5449_v40  ;;  %6526 = vst [vmem:[#allocation41_spill] sm:$0xff] %v5534_v38 }
 0x5e2   : > { %v1858_v36 = vpop.f32.mrf.mxu1  ;;  %1966 = vmatmul.mubr.bf16.gmra.mxu0 %v1899_v2 }
 0x5e3   : > { %v5525_v34 = vadd.f32 %v1858_v36, %v5451_v12  ;;  %6524 = vst [vmem:[#allocation39_spill] sm:$0xff] %v5528_v3 }
 0x5e4   : > { %v1860_v49 = vpop.f32.mrf.mxu1 }
 0x5e5   : > { %6523 = vst [vmem:[#allocation38_spill] sm:$0xff] %v5525_v34  ;;  %v5531_v32 = vadd.f32 %v1860_v49, %v5449_v40  ;;  %v1901_v14 = vpack.c.bf16 %v5525_v34, %v5534_v38 }
 0x5e6   : > { %v1864_v62 = vpop.f32.mrf.mxu1 }
 0x5e7   : > { %6525 = vst [vmem:[#allocation40_spill] sm:$0xff] %v5531_v32  ;;  %v1902_v56 = vpack.c.bf16 %v5531_v32, %v5528_v3  ;;  %v5550_v39 = vadd.f32 %v1864_v62, %v5451_v12 }
 0x5e8   : > { %v1866_v2 = vpop.f32.mrf.mxu1 }
 0x5e9   : > { %1973 = vmatprep.mubr.bf16.mxu0 %v1902_v56  ;;  %v5544_v49 = vadd.f32 %v1866_v2, %v5449_v40  ;;  %6530 = vst [vmem:[#allocation45_spill] sm:$0xff] %v5550_v39 }
 0x5ea   : > { %v1868_v36 = vpop.f32.mrf.mxu1  ;;  %1974 = vmatmul.mubr.bf16.gmra.mxu0 %v1901_v14 }
 0x5eb   : > { %v5541_v33 = vadd.f32 %v1868_v36, %v5451_v12  ;;  %6528 = vst [vmem:[#allocation43_spill] sm:$0xff] %v5544_v49 }
 0x5ec   : > { %v1870_v37 = vpop.f32.mrf.mxu1 }
 0x5ed   : > { %6527 = vst [vmem:[#allocation42_spill] sm:$0xff] %v5541_v33  ;;  %v5547_v8 = vadd.f32 %v1870_v37, %v5449_v40  ;;  %v1903_v56 = vpack.c.bf16 %v5541_v33, %v5550_v39 }
 0x5ee   : > { %v1874_v32 = vpop.f32.mrf.mxu1 }
 0x5ef   : > { %6529 = vst [vmem:[#allocation44_spill] sm:$0xff] %v5547_v8  ;;  %v1904_v34 = vpack.c.bf16 %v5547_v8, %v5544_v49  ;;  %v5566_v38 = vadd.f32 %v1874_v32, %v5451_v12 }
 0x5f0   : > { %v1876_v14 = vpop.f32.mrf.mxu1 }
 0x5f1   : > { %1981 = vmatprep.mubr.bf16.mxu0 %v1904_v34  ;;  %v5560_v37 = vadd.f32 %v1876_v14, %v5449_v40  ;;  %6534 = vst [vmem:[#allocation49_spill] sm:$0xff] %v5566_v38 }
 0x5f2   : > { %v1878_v36 = vpop.f32.mrf.mxu1  ;;  %1982 = vmatmul.mubr.bf16.gmra.mxu0 %v1903_v56 }
 0x5f3   : > { %v5557_v2 = vadd.f32 %v1878_v36, %v5451_v12  ;;  %6532 = vst [vmem:[#allocation47_spill] sm:$0xff] %v5560_v37 }
 0x5f4   : > { %v1880_v3 = vpop.f32.mrf.mxu1 }
 0x5f5   : > { %6531 = vst [vmem:[#allocation46_spill] sm:$0xff] %v5557_v2  ;;  %v5563_v62 = vadd.f32 %v1880_v3, %v5449_v40  ;;  %v1905_v34 = vpack.c.bf16 %v5557_v2, %v5566_v38 }
 0x5f6   : > { %v1884_v8 = vpop.f32.mrf.mxu1 }
 0x5f7   : > { %6533 = vst [vmem:[#allocation48_spill] sm:$0xff] %v5563_v62  ;;  %v1906_v33 = vpack.c.bf16 %v5563_v62, %v5560_v37  ;;  %v5582_v39 = vadd.f32 %v1884_v8, %v5451_v12 }
 0x5f8   : > { %v1886_v56 = vpop.f32.mrf.mxu1 }
 0x5f9   : > { %1989 = vmatprep.mubr.bf16.mxu0 %v1906_v33  ;;  %v5576_v3 = vadd.f32 %v1886_v56, %v5449_v40  ;;  %6538 = vst [vmem:[#allocation53_spill] sm:$0xff] %v5582_v39 }
 0x5fa   : > { %v1888_v36 = vpop.f32.mrf.mxu1  ;;  %1990 = vmatmul.mubr.bf16.gmra.mxu0 %v1905_v34 }
 0x5fb   : > { %v5573_v14 = vadd.f32 %v1888_v36, %v5451_v12  ;;  %6536 = vst [vmem:[#allocation51_spill] sm:$0xff] %v5576_v3 }
 0x5fc   : > { %v1890_v49 = vpop.f32.mrf.mxu1 }
 0x5fd   : > { %6535 = vst [vmem:[#allocation50_spill] sm:$0xff] %v5573_v14  ;;  %v5579_v32 = vadd.f32 %v1890_v49, %v5449_v40  ;;  %v1907_v33 = vpack.c.bf16 %v5573_v14, %v5582_v39  ;;  %v5591_v49 = vld [vmem:[%s6409_s2] ss:$0 sm:$0xff] }
 0x5ff   : > { %6537 = vst [vmem:[#allocation52_spill] sm:$0xff] %v5579_v32  ;;  %v1908_v62 = vpack.c.bf16 %v5579_v32, %v5576_v3 }
 0x601   : > { %1997 = vmatprep.mubr.bf16.mxu0 %v1908_v62 }
 0x602   : > { %1998 = vmatmul.mubr.bf16.gmra.mxu0 %v1907_v33 }
 0x68a   : > { %v4030_v34 = vpop.f32.mrf.mxu0 }
 0x68c   : > { %v4031_v36 = vpop.f32.mrf.mxu0 }
 0x68d   : > { %v4032_v2 = vadd.f32 %v4031_v36, %v4030_v34 }
 0x68e   : > { %v4033_v37 = vpop.f32.mrf.mxu0 }
 0x68f   : > { %v1944_v8 = vadd.f32 %v5591_v49, %v4032_v2 }
 0x690   : > { %v4034_v56 = vpop.f32.mrf.mxu0 }
 0x691   : > { %v4035_v38 = vadd.f32 %v4034_v56, %v4033_v37  ;;  %4508 = vtanh.f32 %v1944_v8 }
 0x692   : > { %v4036_v7 = vpop.f32.mrf.mxu0 }
 0x693   : > { %v1947_v32 = vadd.f32 %v5591_v49, %v4035_v38 }
 0x694   : > { %v4037_v14 = vpop.f32.mrf.mxu0 }
 0x695   : > { %4510 = vtanh.f32 %v1947_v32  ;;  %v4038_v62 = vadd.f32 %v4037_v14, %v4036_v7 }
 0x696   : > { %v4039_v33 = vpop.f32.mrf.mxu0 }
 0x697   : > { %v1952_v34 = vadd.f32 %v5591_v49, %v4038_v62 }
 0x698   : > { %v4040_v36 = vpop.f32.mrf.mxu0 }
 0x699   : > { %v4041_v3 = vadd.f32 %v4040_v36, %v4039_v33  ;;  %4512 = vtanh.f32 %v1952_v34 }
 0x69a   : > { %v4042_v39 = vpop.f32.mrf.mxu0 }
 0x69b   : > { %v1955_v28 = vadd.f32 %v5591_v49, %v4041_v3 }
 0x69c   : > { %v4043_v10 = vpop.f32.mrf.mxu0 }
 0x69d   : > { %4514 = vtanh.f32 %v1955_v28  ;;  %v4044_v2 = vadd.f32 %v4043_v10, %v4042_v39 }
 0x69e   : > { %v4045_v37 = vpop.f32.mrf.mxu0  ;;  %v4509_v8 = vpop.eup %4508 }
 0x69f   : > { %v1960_v56 = vadd.f32 %v5591_v49, %v4044_v2 }
 0x6a0   : > { %v4046_v38 = vpop.f32.mrf.mxu0 }
 0x6a1   : > { %v4047_v20 = vadd.f32 %v4046_v38, %v4045_v37  ;;  %4516 = vtanh.f32 %v1960_v56 }
 0x6a2   : > { %v4511_v32 = vpop.eup %4510  ;;  %v4048_v7 = vpop.f32.mrf.mxu0 }
 0x6a3   : > { %v1963_v14 = vadd.f32 %v5591_v49, %v4047_v20  ;;  %v2022_v62 = vpack.c.bf16 %v4511_v32, %v4509_v8  ;;  %v4689_v32 = vld [vmem:[%s6414_s7] sm:$0xff]  }
 0x6a4   : > { %v4049_v33 = vpop.f32.mrf.mxu0 }
 0x6a5   : > { %4518 = vtanh.f32 %v1963_v14  ;;  %v4050_v36 = vadd.f32 %v4049_v33, %v4048_v7  ;;  %4199 = vmatprep.mubr.msk.bf16.mxu1 %vm919_vm0, %v2022_v62 }
 0x6a6   : > { %v4051_v3 = vpop.f32.mrf.mxu0  ;;  %v4513_v39 = vpop.eup %4512 }
 0x6a7   : > { %v1968_v10 = vadd.f32 %v5591_v49, %v4050_v36 }
 0x6a8   : > { %v4052_v28 = vpop.f32.mrf.mxu0 }
 0x6a9   : > { %v4053_v34 = vadd.f32 %v4052_v28, %v4051_v3  ;;  %4520 = vtanh.f32 %v1968_v10 }
 0x6aa   : > { %v4515_v2 = vpop.eup %4514  ;;  %v4054_v31 = vpop.f32.mrf.mxu0 }
 0x6ab   : > { %v2023_v37 = vpack.c.bf16 %v4515_v2, %v4513_v39  ;;  %v1971_v38 = vadd.f32 %v5591_v49, %v4053_v34 }
 0x6ac   : > { %v4055_v20 = vpop.f32.mrf.mxu0 }
 0x6ad   : > { %4522 = vtanh.f32 %v1971_v38  ;;  %v4056_v56 = vadd.f32 %v4055_v20, %v4054_v31  ;;  %4200 = vmatmul.mubr.msk.bf16.vlgmr.msra.gmra.mxu1 %vm919_vm0, %v2023_v37 }
 0x6ae   : > { %v4057_v8 = vpop.f32.mrf.mxu0  ;;  %4236 = vmatpush3.bf16.msra.mxu1 %v4689_v32  ;;  %v4517_v62 = vpop.eup %4516 }
 0x6af   : > { %2822 = vmatprep.subr.bf16.mxu1 %v5313_v59  ;;  %v1976_v7 = vadd.f32 %v5591_v49, %v4056_v56 }
 0x6b0   : > { %v4058_v14 = vpop.f32.mrf.mxu0 }
 0x6b1   : > { %v4059_v33 = vadd.f32 %v4058_v14, %v4057_v8  ;;  %4524 = vtanh.f32 %v1976_v7 }
 0x6b2   : > { %v4519_v36 = vpop.eup %4518  ;;  %v4060_v3 = vpop.f32.mrf.mxu0 }
 0x6b3   : > { %v1979_v10 = vadd.f32 %v5591_v49, %v4059_v33  ;;  %v2024_v31 = vpack.c.bf16 %v4519_v36, %v4517_v62 }
 0x6b4   : > { %v4061_v28 = vpop.f32.mrf.mxu0 }
 0x6b5   : > { %4526 = vtanh.f32 %v1979_v10  ;;  %v4062_v39 = vadd.f32 %v4061_v28, %v4060_v3  ;;  %4203 = vmatprep.mubr.msk.bf16.mxu1 %vm919_vm0, %v2024_v31 }
 0x6b6   : > { %v4063_v34 = vpop.f32.mrf.mxu0  ;;  %v4521_v37 = vpop.eup %4520 }
 0x6b7   : > { %v1984_v2 = vadd.f32 %v5591_v49, %v4062_v39 }
 0x6b8   : > { %v4064_v59 = vpop.f32.mrf.mxu0 }
 0x6b9   : > { %v4065_v38 = vadd.f32 %v4064_v59, %v4063_v34  ;;  %4528 = vtanh.f32 %v1984_v2 }
 0x6ba   : > { %v4523_v20 = vpop.eup %4522  ;;  %v4066_v56 = vpop.f32.mrf.mxu0 }
 0x6bb   : > { %v1987_v8 = vadd.f32 %v5591_v49, %v4065_v38  ;;  %v2025_v32 = vpack.c.bf16 %v4523_v20, %v4521_v37 }
 0x6bc   : > { %v4067_v14 = vpop.f32.mrf.mxu0 }
 0x6bd   : > { %4530 = vtanh.f32 %v1987_v8  ;;  %v4068_v7 = vadd.f32 %v4067_v14, %v4066_v56  ;;  %4204 = vmatmul.mubr.msk.bf16.gmra.mxu1 %vm919_vm0, %v2025_v32 }
 0x6be   : > { %v4069_v62 = vpop.f32.mrf.mxu0  ;;  %v4525_v3 = vpop.eup %4524 }
 0x6bf   : > { %v1992_v33 = vadd.f32 %v5591_v49, %v4068_v7 }
 0x6c0   : > { %v4070_v36 = vpop.f32.mrf.mxu0 }
 0x6c1   : > { %v4071_v10 = vadd.f32 %v4070_v36, %v4069_v62  ;;  %4532 = vtanh.f32 %v1992_v33 }
 0x6c2   : > { %v4527_v31 = vpop.eup %4526  ;;  %v4072_v28 = vpop.f32.mrf.mxu0 }
 0x6c3   : > { %v1995_v39 = vadd.f32 %v5591_v49, %v4071_v10  ;;  %v2026_v34 = vpack.c.bf16 %v4527_v31, %v4525_v3 }
 0x6c4   : > { %v4073_v59 = vpop.f32.mrf.mxu0 }
 0x6c5   : > { %4534 = vtanh.f32 %v1995_v39  ;;  %v4074_v2 = vadd.f32 %v4073_v59, %v4072_v28  ;;  %4207 = vmatprep.mubr.msk.bf16.mxu1 %vm919_vm0, %v2026_v34  ;;  %v591_v28 = vld [vmem:[%s539_s24 + $0x8] sm:$0xff]  ;;  %v592_v39 = vld [vmem:[%s539_s24 + $0x10] sm:$0xff]  ;;  %v593_v34 = vld [vmem:[%s539_s24 + $0x18] sm:$0xff] }
 0x6c6   : > { %v4075_v37 = vpop.f32.mrf.mxu0  ;;  %v4529_v56 = vpop.eup %4528  ;;  %2346 = vrot.lane.b32.xlu1 %v591_v28, %s4791_s22  ;;  %v594_v59 = vld [vmem:[%s539_s24 + $0x20] sm:$0xff] }
 0x6c7   : > { %v2000_v38 = vadd.f32 %v5591_v49, %v4074_v2  ;;  %v595_v2 = vld [vmem:[%s539_s24 + $0x28] sm:$0xff] }
 0x6c8   : > { %v4076_v20 = vpop.f32.mrf.mxu0 }
 0x6c9   : > { %v4077_v8 = vadd.f32 %v4076_v20, %v4075_v37  ;;  %4536 = vtanh.f32 %v2000_v38  ;;  %v596_v37 = vld [vmem:[%s539_s24 + $0x30] sm:$0xff]  ;;  %v597_v38 = vld [vmem:[%s539_s24 + $0x38] sm:$0xff]  ;;  %v598_v20 = vld [vmem:[%s539_s24 + $0x40] sm:$0xff] }
 0x6ca   : > { %v4531_v32 = vpop.eup %4530  ;;  %2350 = vrot.lane.b32.xlu1 %v593_v34, %s4791_s22 }
 0x6cb   : > { %v2003_v14 = vadd.f32 %v5591_v49, %v4077_v8  ;;  %v2027_v7 = vpack.c.bf16 %v4531_v32, %v4529_v56  ;;  %v590_v49 = vld [vmem:[%s539_s24] sm:$0xff]  ;;  %v599_v56 = vld [vmem:[%s539_s24 + $0x48] sm:$0xff]  ;;  %v600_v8 = vld [vmem:[%s539_s24 + $0x50] sm:$0xff] }
 0x6cc   : > { %2344 = vrot.lane.b32.xlu0 %v590_v49, %s4791_s22  ;;  %v601_v32 = vld [vmem:[%s539_s24 + $0x58] sm:$0xff] }
 0x6cd   : > { %4538 = vtanh.f32 %v2003_v14  ;;  %4208 = vmatmul.mubr.msk.bf16.gmra.mxu1 %vm919_vm0, %v2027_v7  ;;  %v602_v14 = vld [vmem:[%s539_s24 + $0x60] sm:$0xff]  ;;  %v603_v7 = vld [vmem:[%s539_s24 + $0x68] sm:$0xff] }
 0x6ce   : > { %v4533_v62 = vpop.eup %4532  ;;  %2354 = vrot.lane.b32.xlu1 %v595_v2, %s4791_s22 }
 0x6d0   : > { %2348 = vrot.lane.b32.xlu0 %v592_v39, %s4791_s22 }
 0x6d2   : > { %v4535_v33 = vpop.eup %4534  ;;  %2358 = vrot.lane.b32.xlu1 %v597_v38, %s4791_s22 }
 0x6d3   : > { %v2028_v36 = vpack.c.bf16 %v4535_v33, %v4533_v62  ;;  %v604_v62 = vld [vmem:[%s539_s24 + $0x70] sm:$0xff]  ;;  %v605_v33 = vld [vmem:[%s539_s24 + $0x78] sm:$0xff] }
 0x6d4   : > { %2352 = vrot.lane.b32.xlu0 %v594_v59, %s4791_s22 }
 0x6d5   : > { %4211 = vmatprep.mubr.msk.bf16.mxu1 %vm919_vm0, %v2028_v36 }
 0x6d6   : > { %v4537_v3 = vpop.eup %4536  ;;  %2362 = vrot.lane.b32.xlu1 %v599_v56, %s4791_s22 }
 0x6d8   : > { %2356 = vrot.lane.b32.xlu0 %v596_v37, %s4791_s22 }
 0x6da   : > { %v4539_v10 = vpop.eup %4538  ;;  %2366 = vrot.lane.b32.xlu1 %v601_v32, %s4791_s22 }
 0x6db   : > { %v2029_v31 = vpack.c.bf16 %v4539_v10, %v4537_v3  ;;  %v5645_v10 = vld [vmem:[%s6411_s4] ss:$0 sm:$0xff] }
 0x6dc   : > { %2360 = vrot.lane.b32.xlu0 %v598_v20, %s4791_s22 }
 0x6dd   : > { %4212 = vmatmul.mubr.msk.bf16.gmra.mxu1 %vm919_vm0, %v2029_v31 }
 0x6de   : > { %2370 = vrot.lane.b32.xlu1 %v603_v7, %s4791_s22 }
 0x6e0   : > { %2364 = vrot.lane.b32.xlu0 %v600_v8, %s4791_s22 }
 0x6e2   : > { %2374 = vrot.lane.b32.xlu1 %v605_v33, %s4791_s22 }
 0x6e4   : > { %2368 = vrot.lane.b32.xlu0 %v602_v14, %s4791_s22 }
 0x6e8   : > { %2372 = vrot.lane.b32.xlu0 %v604_v62, %s4791_s22 }
 0x76d   : > { %v4201_v36 = vpop.f32.mrf.mxu1 }
 0x76e   : > { %v2097_v39 = vadd.f32 %v5645_v10, %v4201_v36 }
 0x76f   : > { %v2088_v3 = vpop.f32.mrf.mxu1 }
 0x770   : > { %v2089_v31 = vadd.f32 %v5645_v10, %v2088_v3 }
 0x771   : > { %v4202_v49 = vpop.f32.mrf.mxu1 }
 0x772   : > { %v2100_v28 = vadd.f32 %v5645_v10, %v4202_v49  ;;  %4540 = vtanh.f32 %v2089_v31 }
 0x773   : > { %v2091_v34 = vpop.f32.mrf.mxu1 }
 0x774   : > { %v2092_v59 = vadd.f32 %v5645_v10, %v2091_v34  ;;  %4542 = vtanh.f32 %v2100_v28 }
 0x776   : > { %4544 = vtanh.f32 %v2092_v59 }
 0x777   : > { %4546 = vtanh.f32 %v2097_v39 }
 0x77d   : > { %v4205_v2 = vpop.f32.mrf.mxu1 }
 0x77e   : > { %v2113_v7 = vadd.f32 %v5645_v10, %v4205_v2 }
 0x77f   : > { %v2104_v37 = vpop.f32.mrf.mxu1  ;;  %v4541_v20 = vpop.eup %4540 }
 0x780   : > { %v2105_v38 = vadd.f32 %v5645_v10, %v2104_v37 }
 0x781   : > { %v4206_v56 = vpop.f32.mrf.mxu1  ;;  %v4543_v8 = vpop.eup %4542 }
 0x782   : > { %v2116_v32 = vadd.f32 %v5645_v10, %v4206_v56  ;;  %4548 = vtanh.f32 %v2105_v38 }
 0x783   : > { %v4545_v14 = vpop.eup %4544  ;;  %v2107_v62 = vpop.f32.mrf.mxu1 }
 0x784   : > { %v4547_v33 = vpop.eup %4546  ;;  %v2108_v36 = vadd.f32 %v5645_v10, %v2107_v62  ;;  %v2167_v3 = vpack.c.bf16 %v4545_v14, %v4541_v20  ;;  %4550 = vtanh.f32 %v2116_v32 }
 0x785   : > { %v2168_v31 = vpack.c.bf16 %v4543_v8, %v4547_v33 }
 0x786   : > { %4552 = vtanh.f32 %v2108_v36  ;;  %4219 = vmatprep.mubr.msk.bf16.mxu0 %vm919_vm0, %v2167_v3 }
 0x787   : > { %4554 = vtanh.f32 %v2113_v7  ;;  %4220 = vmatmul.mubr.msk.bf16.vlgmr.msra.gmra.mxu0 %vm919_vm0, %v2168_v31 }
 0x788   : > { %4254 = vmatpush3.bf16.msra.mxu0 %v5293_v51 }
 0x789   : > { %4255 = vmatprep.subr.bf16.mxu0 %v5300_v53 }
 0x78c   : > { %4256 = vmatpush3.bf16.msra.mxu0 %v5300_v53 }
 0x78d   : > { %v4209_v49 = vpop.f32.mrf.mxu1 }
 0x78e   : > { %v2129_v20 = vadd.f32 %v5645_v10, %v4209_v49 }
 0x78f   : > { %v2120_v28 = vpop.f32.mrf.mxu1  ;;  %v4549_v34 = vpop.eup %4548 }
 0x790   : > { %v2121_v39 = vadd.f32 %v5645_v10, %v2120_v28 }
 0x791   : > { %v4210_v59 = vpop.f32.mrf.mxu1  ;;  %v4551_v2 = vpop.eup %4550 }
 0x792   : > { %v2132_v37 = vadd.f32 %v5645_v10, %v4210_v59  ;;  %4556 = vtanh.f32 %v2121_v39 }
 0x793   : > { %v4553_v38 = vpop.eup %4552  ;;  %v2123_v56 = vpop.f32.mrf.mxu1 }
 0x794   : > { %v4555_v8 = vpop.eup %4554  ;;  %v2124_v51 = vadd.f32 %v5645_v10, %v2123_v56  ;;  %v2169_v32 = vpack.c.bf16 %v4553_v38, %v4549_v34  ;;  %4558 = vtanh.f32 %v2132_v37 }
 0x795   : > { %v2170_v53 = vpack.c.bf16 %v4551_v2, %v4555_v8 }
 0x796   : > { %4560 = vtanh.f32 %v2124_v51  ;;  %4223 = vmatprep.mubr.msk.bf16.mxu0 %vm919_vm0, %v2169_v32 }
 0x797   : > { %4562 = vtanh.f32 %v2129_v20  ;;  %4224 = vmatmul.mubr.msk.bf16.gmra.mxu0 %vm919_vm0, %v2170_v53  ;;  %v5677_v53 = vld [vmem:[%s6413_s6] ss:$0 sm:$0xff] }
 0x79d   : > { %v4213_v14 = vpop.f32.mrf.mxu1 }
 0x79e   : > { %v2145_v28 = vadd.f32 %v5645_v10, %v4213_v14 }
 0x79f   : > { %v2136_v7 = vpop.f32.mrf.mxu1  ;;  %v4557_v33 = vpop.eup %4556 }
 0x7a0   : > { %v2137_v62 = vadd.f32 %v5645_v10, %v2136_v7 }
 0x7a1   : > { %v4214_v36 = vpop.f32.mrf.mxu1  ;;  %v4559_v3 = vpop.eup %4558 }
 0x7a2   : > { %v2148_v31 = vadd.f32 %v5645_v10, %v4214_v36  ;;  %4564 = vtanh.f32 %v2137_v62 }
 0x7a3   : > { %v4561_v49 = vpop.eup %4560  ;;  %v2139_v39 = vpop.f32.mrf.mxu1 }
 0x7a4   : > { %v4563_v34 = vpop.eup %4562  ;;  %v2140_v59 = vadd.f32 %v5645_v10, %v2139_v39  ;;  %v2171_v2 = vpack.c.bf16 %v4561_v49, %v4557_v33  ;;  %4566 = vtanh.f32 %v2148_v31 }
 0x7a5   : > { %v2172_v37 = vpack.c.bf16 %v4559_v3, %v4563_v34 }
 0x7a6   : > { %4568 = vtanh.f32 %v2140_v59  ;;  %4227 = vmatprep.mubr.msk.bf16.mxu0 %vm919_vm0, %v2171_v2  ;;  %v2345_v59 = vpop.permute.xlu0 %2344 }
 0x7a7   : > { %4570 = vtanh.f32 %v2145_v28  ;;  %4228 = vmatmul.mubr.msk.bf16.gmra.mxu0 %vm919_vm0, %v2172_v37 }
 0x7af   : > { %v4565_v38 = vpop.eup %4564 }
 0x7b1   : > { %v4567_v20 = vpop.eup %4566 }
 0x7b3   : > { %v4569_v56 = vpop.eup %4568 }
 0x7b4   : > { %v4571_v8 = vpop.eup %4570  ;;  %v2173_v51 = vpack.c.bf16 %v4569_v56, %v4565_v38 }
 0x7b5   : > { %v2174_v32 = vpack.c.bf16 %v4567_v20, %v4571_v8  ;;  %v2347_v8 = vpop.permute.xlu1 %2346 }
 0x7b6   : > { %4231 = vmatprep.mubr.msk.bf16.mxu0 %vm919_vm0, %v2173_v51 }
 0x7b7   : > { %4232 = vmatmul.mubr.msk.bf16.gmra.mxu0 %vm919_vm0, %v2174_v32 }
 0x7b9   : > { %v2351_v4 = vpop.permute.xlu1 %2350 }
 0x847   : > { %v4221_v10 = vpop.f32.mrf.mxu0 }
 0x848   : > { %v5680_v14 = vadd.f32 %v5677_v53, %v4221_v10 }
 0x849   : > { %v2233_v7 = vpop.f32.mrf.mxu0 }
 0x84a   : > { %v5683_v62 = vadd.f32 %v5677_v53, %v2233_v7  ;;  %v2300_v33 = vmul.f32 1.442695, %v5680_v14 }
 0x84b   : > { %v4222_v36 = vpop.f32.mrf.mxu0 }
 0x84c   : > { %v2296_v3 = vmul.f32 1.442695, %v5683_v62  ;;  %v5688_v31 = vadd.f32 %v5677_v53, %v4222_v36  ;;  %v2349_v36 = vpop.permute.xlu0 %2348 }
 0x84d   : > { %v2236_v49 = vpop.f32.mrf.mxu0 }
 0x84e   : > { %4572 = vpow2.f32 %v2296_v3  ;;  %v5691_v28 = vadd.f32 %v5677_v53, %v2236_v49  ;;  %v2302_v39 = vmul.f32 1.442695, %v5688_v31 }
 0x84f   : > { %4574 = vpow2.f32 %v2300_v33 }
 0x850   : > { %v2298_v34 = vmul.f32 1.442695, %v5691_v28 }
 0x852   : > { %4576 = vpow2.f32 %v2298_v34 }
 0x853   : > { %4578 = vpow2.f32 %v2302_v39 }
 0x857   : > { %v4225_v2 = vpop.f32.mrf.mxu0 }
 0x858   : > { %v5696_v37 = vadd.f32 %v5677_v53, %v4225_v2 }
 0x859   : > { %v2249_v38 = vpop.f32.mrf.mxu0 }
 0x85a   : > { %v5699_v20 = vadd.f32 %v5677_v53, %v2249_v38  ;;  %v2308_v7 = vmul.f32 1.442695, %v5696_v37 }
 0x85b   : > { %v5701_v56 = vpop.eup %4572  ;;  %v4226_v51 = vpop.f32.mrf.mxu0 }
 0x85c   : > { %v5703_v32 = vpop.eup %4574  ;;  %v2392_v10 = vmul.f32 %v5701_v56, %v2345_v59  ;;  %v2304_v33 = vmul.f32 1.442695, %v5699_v20  ;;  %v5709_v3 = vadd.f32 %v5677_v53, %v4226_v51 }
 0x85d   : > { %v2252_v49 = vpop.f32.mrf.mxu0  ;;  %v2394_v2 = vmul.f32 %v5703_v32, %v2349_v36 }
 0x85e   : > { %4580 = vpow2.f32 %v2304_v33  ;;  %v5712_v39 = vadd.f32 %v5677_v53, %v2252_v49  ;;  %2424 = vrot.lane.b32.xlu0 %v2392_v10, %s6539_s27  ;;  %v2310_v38 = vmul.f32 1.442695, %v5709_v3 }
 0x85f   : > { %v5715_v34 = vpop.eup %4576  ;;  %4582 = vpow2.f32 %v2308_v7  ;;  %v2353_v7 = vpop.permute.xlu0 %2352 }
 0x860   : > { %v2393_v59 = vmul.f32 %v5715_v34, %v2347_v8  ;;  %v2306_v45 = vmul.f32 1.442695, %v5712_v39  ;;  %v5721_v51 = vpop.eup %4578 }
 0x861   : > { %v2395_v10 = vmul.f32 %v5721_v51, %v2351_v4 }
 0x862   : > { %4584 = vpow2.f32 %v2306_v45  ;;  %2426 = vrot.lane.b32.xlu1 %v2393_v59, %s6539_s27  ;;  %2428 = vrot.lane.b32.xlu0 %v2394_v2, %s6539_s27  ;;  %v2355_v59 = vpop.permute.xlu1 %2354 }
 0x863   : > { %4586 = vpow2.f32 %v2310_v38 }
 0x866   : > { %2430 = vrot.lane.b32.xlu1 %v2395_v10, %s6539_s27  ;;  %v2359_v12 = vpop.permute.xlu1 %2358 }
 0x867   : > { %v4229_v33 = vpop.f32.mrf.mxu0 }
 0x868   : > { %v5728_v8 = vadd.f32 %v5677_v53, %v4229_v33  ;;  %v2357_v33 = vpop.permute.xlu0 %2356 }
 0x869   : > { %v2265_v36 = vpop.f32.mrf.mxu0 }
 0x86a   : > { %v5731_v49 = vadd.f32 %v5677_v53, %v2265_v36  ;;  %v2316_v45 = vmul.f32 1.442695, %v5728_v8 }
 0x86b   : > { %v5733_v41 = vpop.eup %4580  ;;  %v4230_v2 = vpop.f32.mrf.mxu0 }
 0x86c   : > { %v2396_v38 = vmul.f32 %v5733_v41, %v2353_v7  ;;  %v2312_v4 = vmul.f32 1.442695, %v5731_v49  ;;  %v5739_v10 = vadd.f32 %v5677_v53, %v4230_v2  ;;  %v5741_v54 = vpop.eup %4582 }
 0x86d   : > { %v2268_v23 = vpop.f32.mrf.mxu0  ;;  %v2398_v22 = vmul.f32 %v5741_v54, %v2357_v33 }
 0x86e   : > { %4588 = vpow2.f32 %v2312_v4  ;;  %v5744_v36 = vadd.f32 %v5677_v53, %v2268_v23  ;;  %2432 = vrot.lane.b32.xlu0 %v2396_v38, %s6539_s27  ;;  %v2318_v2 = vmul.f32 1.442695, %v5739_v10 }
 0x86f   : > { %v5747_v15 = vpop.eup %4584  ;;  %4590 = vpow2.f32 %v2316_v45  ;;  %v2361_v45 = vpop.permute.xlu0 %2360 }
 0x870   : > { %v2397_v7 = vmul.f32 %v5747_v15, %v2355_v59  ;;  %v2314_v40 = vmul.f32 1.442695, %v5744_v36  ;;  %v5753_v27 = vpop.eup %4586 }
 0x871   : > { %v2399_v23 = vmul.f32 %v5753_v27, %v2359_v12 }
 0x872   : > { %4592 = vpow2.f32 %v2314_v40  ;;  %2434 = vrot.lane.b32.xlu1 %v2397_v7, %s6539_s27  ;;  %2436 = vrot.lane.b32.xlu0 %v2398_v22, %s6539_s27  ;;  %v2363_v40 = vpop.permute.xlu1 %2362 }
 0x873   : > { %4594 = vpow2.f32 %v2318_v2 }
 0x876   : > { %2438 = vrot.lane.b32.xlu1 %v2399_v23, %s6539_s27  ;;  %v2365_v23 = vpop.permute.xlu0 %2364 }
 0x877   : > { %v4233_v59 = vpop.f32.mrf.mxu0 }
 0x878   : > { %v5760_v38 = vadd.f32 %v5677_v53, %v4233_v59 }
 0x879   : > { %v2281_v4 = vpop.f32.mrf.mxu0 }
 0x87a   : > { %v5763_v33 = vadd.f32 %v5677_v53, %v2281_v4  ;;  %v2324_v12 = vmul.f32 1.442695, %v5760_v38 }
 0x87b   : > { %v5765_v24 = vpop.eup %4588  ;;  %v4234_v7 = vpop.f32.mrf.mxu0 }
 0x87c   : > { %6540 = vst [vmem:[#allocation54_spill] sm:$0xff] %v5765_v24  ;;  %v5767_v17 = vpop.eup %4590  ;;  %v2400_v22 = vmul.f32 %v5765_v24, %v2361_v45  ;;  %v2320_v2 = vmul.f32 1.442695, %v5763_v33  ;;  %v5773_v59 = vadd.f32 %v5677_v53, %v4234_v7  ;;  %v2367_v24 = vpop.permute.xlu1 %2366 }
 0x87d   : > { %6541 = vst [vmem:[#allocation55_spill] sm:$0xff] %v5767_v17  ;;  %v2284_v21 = vpop.f32.mrf.mxu0  ;;  %v2402_v9 = vmul.f32 %v5767_v17, %v2365_v23 }
 0x87e   : > { %4596 = vpow2.f32 %v2320_v2  ;;  %v5776_v4 = vadd.f32 %v5677_v53, %v2284_v21  ;;  %2440 = vrot.lane.b32.xlu0 %v2400_v22, %s6539_s27  ;;  %v2326_v52 = vmul.f32 1.442695, %v5773_v59  ;;  %v2369_v53 = vpop.permute.xlu0 %2368 }
 0x87f   : > { %v5779_v13 = vpop.eup %4592  ;;  %4598 = vpow2.f32 %v2324_v12 }
 0x880   : > { %6542 = vst [vmem:[#allocation56_spill] sm:$0xff] %v5776_v4  ;;  %v2401_v45 = vmul.f32 %v5779_v13, %v2363_v40  ;;  %v2322_v0 = vmul.f32 1.442695, %v5776_v4  ;;  %v5785_v7 = vpop.eup %4594  ;;  %v2371_v40 = vpop.permute.xlu1 %2370 }
 0x881   : > { %6543 = vst [vmem:[#allocation57_spill] sm:$0xff] %v5785_v7  ;;  %v2403_v21 = vmul.f32 %v5785_v7, %v2367_v24 }
 0x882   : > { %4600 = vpow2.f32 %v2322_v0  ;;  %2442 = vrot.lane.b32.xlu1 %v2401_v45, %s6539_s27  ;;  %2444 = vrot.lane.b32.xlu0 %v2402_v9, %s6539_s27  ;;  %v2373_v23 = vpop.permute.xlu0 %2372 }
 0x883   : > { %4602 = vpow2.f32 %v2326_v52 }
 0x884   : > { %v2375_v45 = vpop.permute.xlu1 %2374 }
 0x886   : > { %2446 = vrot.lane.b32.xlu1 %v2403_v21, %s6539_s27 }
 0x88b   : > { %v5791_v22 = vpop.eup %4596 }
 0x88c   : > { %6544 = vst [vmem:[#allocation58_spill] sm:$0xff] %v5791_v22  ;;  %v2404_v12 = vmul.f32 %v5791_v22, %v2369_v53  ;;  %v5794_v2 = vpop.eup %4598  ;;  %v3147_v53 = vmul.f32 %v5142_v44, %v5142_v44 }
 0x88d   : > { %6545 = vst [vmem:[#allocation59_spill] sm:$0xff] %v5794_v2  ;;  %v2406_v52 = vmul.f32 %v5794_v2, %v2373_v23  ;;  %v3150_v23 = vmul.f32 %v5147_v48, %v5147_v48 }
 0x88e   : > { %2448 = vrot.lane.b32.xlu0 %v2404_v12, %s6539_s27  ;;  %v3149_v12 = vmul.f32 %v5139_v42, %v5139_v42 }
 0x88f   : > { %v5797_v0 = vpop.eup %4600 }
 0x890   : > { %6546 = vst [vmem:[#allocation60_spill] sm:$0xff] %v5797_v0  ;;  %v2405_v9 = vmul.f32 %v5797_v0, %v2371_v40  ;;  %v5801_v24 = vpop.eup %4602  ;;  %v3148_v40 = vmul.f32 %v5150_v50, %v5150_v50 }
 0x891   : > { %6547 = vst [vmem:[#allocation61_spill] sm:$0xff] %v5801_v24  ;;  %v2407_v21 = vmul.f32 %v5801_v24, %v2375_v45  ;;  %v3151_v45 = vmul.f32 %v5158_v57, %v5158_v57 }
 0x892   : > { %2450 = vrot.lane.b32.xlu1 %v2405_v9, %s6539_s27  ;;  %2452 = vrot.lane.b32.xlu0 %v2406_v52, %s6539_s27  ;;  %v3243_v9 = vmul.f32 %v5683_v62, %v5683_v62  ;;  %v3244_v52 = vmul.f32 %v5691_v28, %v5691_v28 }
 0x896   : > { %2454 = vrot.lane.b32.xlu1 %v2407_v21, %s6539_s27  ;;  %3179 = vrot.lane.b32.xlu0 %v3147_v53, %s4791_s22  ;;  %v3245_v21 = vmul.f32 %v5680_v14, %v5680_v14  ;;  %v3152_v53 = vmul.f32 %v5171_v5, %v5171_v5 }
 0x89a   : > { %3181 = vrot.lane.b32.xlu1 %v3148_v40, %s4791_s22  ;;  %3183 = vrot.lane.b32.xlu0 %v3149_v12, %s4791_s22  ;;  %v3246_v40 = vmul.f32 %v5688_v31, %v5688_v31  ;;  %v3153_v12 = vmul.f32 %v5155_v55, %v5155_v55 }
 0x89e   : > { %3185 = vrot.lane.b32.xlu1 %v3150_v23, %s4791_s22  ;;  %3275 = vrot.lane.b32.xlu0 %v3243_v9, %s4791_s22  ;;  %v3247_v23 = vmul.f32 %v5699_v20, %v5699_v20  ;;  %v3154_v9 = vmul.f32 %v5168_v1, %v5168_v1 }
 0x8a2   : > { %3277 = vrot.lane.b32.xlu1 %v3244_v52, %s4791_s22  ;;  %3187 = vrot.lane.b32.xlu0 %v3151_v45, %s4791_s22  ;;  %v3248_v52 = vmul.f32 %v5712_v39, %v5712_v39  ;;  %v3155_v45 = vmul.f32 %v5190_v18, %v5190_v18 }
 0x8a6   : > { %3279 = vrot.lane.b32.xlu1 %v3245_v21, %s4791_s22  ;;  %3189 = vrot.lane.b32.xlu0 %v3152_v53, %s4791_s22  ;;  %v3249_v21 = vmul.f32 %v5696_v37, %v5696_v37  ;;  %v3156_v53 = vmul.f32 %v5203_v29, %v5203_v29 }
 0x8aa   : > { %3281 = vrot.lane.b32.xlu1 %v3246_v40, %s4791_s22  ;;  %3191 = vrot.lane.b32.xlu0 %v3153_v12, %s4791_s22  ;;  %v3250_v40 = vmul.f32 %v5709_v3, %v5709_v3  ;;  %v3157_v12 = vmul.f32 %v5187_v16, %v5187_v16 }
 0x8ae   : > { %3283 = vrot.lane.b32.xlu1 %v3247_v23, %s4791_s22  ;;  %3193 = vrot.lane.b32.xlu0 %v3154_v9, %s4791_s22  ;;  %v3251_v23 = vmul.f32 %v5731_v49, %v5731_v49  ;;  %v3158_v9 = vmul.f32 %v5198_v25, %v5198_v25 }
 0x8b2   : > { %3285 = vrot.lane.b32.xlu1 %v3248_v52, %s4791_s22  ;;  %3195 = vrot.lane.b32.xlu0 %v3155_v45, %s4791_s22  ;;  %v3252_v52 = vmul.f32 %v5744_v36, %v5744_v36  ;;  %v3159_v45 = vmul.f32 %v5222_v46, %v5222_v46 }
 0x8b6   : > { %3287 = vrot.lane.b32.xlu1 %v3249_v21, %s4791_s22  ;;  %3197 = vrot.lane.b32.xlu0 %v3156_v53, %s4791_s22  ;;  %v3253_v21 = vmul.f32 %v5728_v8, %v5728_v8  ;;  %v3160_v53 = vmul.f32 %v5235_v63, %v5235_v63 }
 0x8ba   : > { %3289 = vrot.lane.b32.xlu1 %v3250_v40, %s4791_s22  ;;  %3199 = vrot.lane.b32.xlu0 %v3157_v12, %s4791_s22  ;;  %v3254_v40 = vmul.f32 %v5739_v10, %v5739_v10  ;;  %v3161_v12 = vmul.f32 %v5219_v43, %v5219_v43 }
 0x8be   : > { %3291 = vrot.lane.b32.xlu1 %v3251_v23, %s4791_s22  ;;  %3201 = vrot.lane.b32.xlu0 %v3158_v9, %s4791_s22  ;;  %v3255_v23 = vmul.f32 %v5763_v33, %v5763_v33  ;;  %v3162_v9 = vmul.f32 %v5232_v60, %v5232_v60 }
 0x8c2   : > { %3293 = vrot.lane.b32.xlu1 %v3252_v52, %s4791_s22  ;;  %3203 = vrot.lane.b32.xlu0 %v3159_v45, %s4791_s22  ;;  %v3256_v45 = vmul.f32 %v5776_v4, %v5776_v4 }
 0x8c6   : > { %3295 = vrot.lane.b32.xlu1 %v3253_v21, %s4791_s22  ;;  %3205 = vrot.lane.b32.xlu0 %v3160_v53, %s4791_s22  ;;  %v3257_v21 = vmul.f32 %v5760_v38, %v5760_v38 }
 0x8ca   : > { %3297 = vrot.lane.b32.xlu1 %v3254_v40, %s4791_s22  ;;  %3207 = vrot.lane.b32.xlu0 %v3161_v12, %s4791_s22  ;;  %v3258_v40 = vmul.f32 %v5773_v59, %v5773_v59 }
 0x8ce   : > { %3299 = vrot.lane.b32.xlu1 %v3255_v23, %s4791_s22  ;;  %3209 = vrot.lane.b32.xlu0 %v3162_v9, %s4791_s22 }
 0x8d0   : > { %v2425_v52 = vpop.permute.xlu0 %2424 }
 0x8d1   : > { %v2472_v12 = vadd.f32 %v2425_v52, %v5683_v62  ;;  %v4692_v52 = vld [vmem:[%s6418_s11 + $0x10] ss:$8 sps:$4 sm:$0xff]  }
 0x8d2   : > { %3301 = vrot.lane.b32.xlu1 %v3256_v45, %s4791_s22  ;;  %3303 = vrot.lane.b32.xlu0 %v3257_v21, %s4791_s22  ;;  %v4693_v21 = vld [vmem:[%s6418_s11 + $0x4] ss:$8 sps:$4 sm:$0xff]  }
 0x8d4   : > { %v2427_v53 = vpop.permute.xlu1 %2426  ;;  %v2429_v9 = vpop.permute.xlu0 %2428 }
 0x8d5   : > { %v2473_v23 = vadd.f32 %v2427_v53, %v5691_v28  ;;  %v2474_v2 = vadd.f32 %v2429_v9, %v5680_v14 }
 0x8d6   : > { %3305 = vrot.lane.b32.xlu1 %v3258_v40, %s4791_s22 }
 0x8d7   : > { %v2488_v24 = vpack.c.bf16 %v2473_v23, %v2472_v12 }
 0x8d8   : > { %v2431_v0 = vpop.permute.xlu1 %2430 }
 0x8d9   : > { %v2475_v22 = vadd.f32 %v2431_v0, %v5688_v31  ;;  %4237 = vmatprep.mubr.msk.bf16.mxu1 %vm1416_vm1, %v2488_v24  ;;  %v4694_v0 = vld [vmem:[%s6418_s11] ss:$8 sps:$4 sm:$0xff]  }
 0x8db   : > { %v2489_v45 = vpack.c.bf16 %v2475_v22, %v2474_v2 }
 0x8dd   : > { %4238 = vmatmul.mubr.msk.bf16.vlgmr.msra.gmra.mxu1 %vm1416_vm1, %v2489_v45 }
 0x8de   : > { %2823 = vmatpush1.bf16.msra.mxu1 %v4692_v52 }
 0x8df   : > { %2824 = vmatprep.subr.bf16.mxu1 %v4693_v21 }
 0x8e0   : > { %v2433_v53 = vpop.permute.xlu0 %2432 }
 0x8e1   : > { %v2476_v22 = vadd.f32 %v2433_v53, %v5699_v20 }
 0x8e2   : > { %2825 = vmatpush1.bf16.msra.mxu1 %v4694_v0 }
 0x8e4   : > { %v2435_v24 = vpop.permute.xlu1 %2434  ;;  %v2437_v40 = vpop.permute.xlu0 %2436 }
 0x8e5   : > { %v2477_v2 = vadd.f32 %v2435_v24, %v5712_v39  ;;  %v2478_v9 = vadd.f32 %v2437_v40, %v5696_v37 }
 0x8e7   : > { %v2490_v12 = vpack.c.bf16 %v2477_v2, %v2476_v22 }
 0x8e8   : > { %v2439_v23 = vpop.permute.xlu1 %2438 }
 0x8e9   : > { %v2479_v45 = vadd.f32 %v2439_v23, %v5709_v3  ;;  %4241 = vmatprep.mubr.msk.bf16.mxu1 %vm1416_vm1, %v2490_v12 }
 0x8eb   : > { %v2491_v52 = vpack.c.bf16 %v2479_v45, %v2478_v9 }
 0x8ed   : > { %4242 = vmatmul.mubr.msk.bf16.gmra.mxu1 %vm1416_vm1, %v2491_v52 }
 0x8f0   : > { %v2441_v21 = vpop.permute.xlu0 %2440 }
 0x8f1   : > { %v2480_v0 = vadd.f32 %v2441_v21, %v5731_v49 }
 0x8f4   : > { %v2443_v7 = vpop.permute.xlu1 %2442  ;;  %v2445_v60 = vpop.permute.xlu0 %2444 }
 0x8f5   : > { %v2481_v53 = vadd.f32 %v2443_v7, %v5744_v36  ;;  %v2482_v22 = vadd.f32 %v2445_v60, %v5728_v8  ;;  %v3099_v7 = vadd.f32 %v5683_v62, %v5142_v44  ;;  %v3101_v44 = vadd.f32 %v5680_v14, %v5139_v42 }
 0x8f6   : > { %v6548_v62 = vmov 0   ;;  %v3371_v42 = vmul.f32 %v5701_v56, %v5701_v56  ;;  %v3341_v56 = vmul.f32 %v5162_v61, %v5162_v61  ;;  %v3105_v61 = vadd.f32 %v5696_v37, %v5155_v55 }
 0x8f7   : > { %v2492_v24 = vpack.c.bf16 %v2481_v53, %v2480_v0 }
 0x8f8   : > { %v2447_v17 = vpop.permute.xlu1 %2446 }
 0x8f9   : > { %v2483_v2 = vadd.f32 %v2447_v17, %v5739_v10  ;;  %4245 = vmatprep.mubr.msk.bf16.mxu1 %vm1416_vm1, %v2492_v24  ;;  %v3115_v24 = vmul.f32 2.0, %v3099_v7 }
 0x8fb   : > { %v2493_v40 = vpack.c.bf16 %v2483_v2, %v2482_v22  ;;  %v3100_v22 = vadd.f32 %v5691_v28, %v5150_v50  ;;  %v3117_v50 = vmul.f32 2.0, %v3101_v44  ;;  %v3339_v28 = vmul.f32 %v5160_v58, %v5160_v58 }
 0x8fc   : > { %v3372_v58 = vmul.f32 %v5715_v34, %v5715_v34 }
 0x8fd   : > { %4246 = vmatmul.mubr.msk.bf16.gmra.mxu1 %vm1416_vm1, %v2493_v40 }
 0x900   : > { %v2449_v12 = vpop.permute.xlu0 %2448 }
 0x901   : > { %v2484_v45 = vadd.f32 %v2449_v12, %v5763_v33 }
 0x904   : > { %v2451_v23 = vpop.permute.xlu1 %2450  ;;  %v2453_v9 = vpop.permute.xlu0 %2452 }
 0x905   : > { %v2485_v52 = vadd.f32 %v2451_v23, %v5776_v4  ;;  %v2486_v17 = vadd.f32 %v2453_v9, %v5760_v38  ;;  %v3131_v23 = vadd.f32 2.0, %v3115_v24  ;;  %v3116_v4 = vmul.f32 2.0, %v3100_v22 }
 0x907   : > { %v2494_v21 = vpack.c.bf16 %v2485_v52, %v2484_v45  ;;  %v3102_v45 = vadd.f32 %v5688_v31, %v5147_v48  ;;  %v3133_v48 = vadd.f32 2.0, %v3117_v50  ;;  %v3104_v50 = vadd.f32 %v5712_v39, %v5171_v5 }
 0x908   : > { %v2455_v0 = vpop.permute.xlu1 %2454  ;;  %v3180_v60 = vpop.permute.xlu0 %3179  ;;  %v3374_v5 = vmul.f32 %v5721_v51, %v5721_v51  ;;  %v3106_v39 = vadd.f32 %v5709_v3, %v5168_v1 }
 0x909   : > { %v2487_v53 = vadd.f32 %v2455_v0, %v5773_v59  ;;  %4249 = vmatprep.mubr.msk.bf16.mxu1 %vm1416_vm1, %v2494_v21  ;;  %v3227_v9 = vsub.f32 %v3131_v23, %v3180_v60  ;;  %v3132_v21 = vadd.f32 2.0, %v3116_v4  ;;  %v3340_v60 = vmul.f32 %v5174_v6, %v5174_v6 }
 0x90a   : > { %v3103_v4 = vadd.f32 %v5699_v20, %v5158_v57  ;;  %v3373_v57 = vmul.f32 %v5703_v32, %v5703_v32  ;;  %v3342_v20 = vmul.f32 %v5180_v11, %v5180_v11  ;;  %v3343_v32 = vmul.f32 %v5192_v19, %v5192_v19 }
 0x90b   : > { %v2495_v2 = vpack.c.bf16 %v2487_v53, %v2486_v17  ;;  %v3118_v53 = vmul.f32 2.0, %v3102_v45  ;;  %v3122_v51 = vmul.f32 2.0, %v3106_v39  ;;  %v3344_v19 = vmul.f32 %v5206_v30, %v5206_v30 }
 0x90c   : > { %v3182_v40 = vpop.permute.xlu1 %3181  ;;  %v3184_v12 = vpop.permute.xlu0 %3183 }
 0x90d   : > { %4250 = vmatmul.mubr.msk.bf16.gmra.mxu1 %vm1416_vm1, %v2495_v2  ;;  %v3228_v17 = vsub.f32 %v3132_v21, %v3182_v40  ;;  %v3229_v23 = vsub.f32 %v3133_v48, %v3184_v12  ;;  %v3134_v44 = vadd.f32 2.0, %v3118_v53 }
 0x90e   : > { %2842 = vmatprep.mubr.bf16.mxu1 %v6548_v62 }
 0x910   : > { %v3186_v52 = vpop.permute.xlu1 %3185  ;;  %v3276_v7 = vpop.permute.xlu0 %3275 }
 0x911   : > { %v3323_v0 = vsub.f32 %v3227_v9, %v3276_v7  ;;  %v3119_v7 = vmul.f32 2.0, %v3103_v4 }
 0x913   : > { %v3355_v14 = vsub.f32 %v3323_v0, %v3339_v28  ;;  %v3230_v28 = vsub.f32 %v3134_v44, %v3186_v52  ;;  %v3121_v52 = vmul.f32 2.0, %v3105_v61 }
 0x914   : > { %v3278_v24 = vpop.permute.xlu1 %3277  ;;  %v3188_v22 = vpop.permute.xlu0 %3187 }
 0x915   : > { %v3387_v31 = vsub.f32 %v3355_v14, %v3371_v42  ;;  %v3324_v2 = vsub.f32 %v3228_v17, %v3278_v24  ;;  %v3135_v17 = vadd.f32 2.0, %v3119_v7  ;;  %v3120_v42 = vmul.f32 2.0, %v3104_v50 }
 0x916   : > { %v3137_v3 = vadd.f32 2.0, %v3121_v52  ;;  %v3345_v7 = vmul.f32 %v5200_v26, %v5200_v26  ;;  %v3109_v26 = vadd.f32 %v5728_v8, %v5187_v16  ;;  %v3111_v52 = vadd.f32 %v5763_v33, %v5222_v46 }
 0x917   : > { %v3356_v40 = vsub.f32 %v3324_v2, %v3340_v60  ;;  %v3231_v60 = vsub.f32 %v3135_v17, %v3188_v22  ;;  %v3136_v37 = vadd.f32 2.0, %v3120_v42  ;;  %v3375_v22 = vmul.f32 %v5733_v41, %v5733_v41 }
 0x918   : > { %v3280_v9 = vpop.permute.xlu1 %3279  ;;  %v3190_v45 = vpop.permute.xlu0 %3189  ;;  %v3376_v41 = vmul.f32 %v5747_v15, %v5747_v15  ;;  %v3113_v46 = vadd.f32 %v5760_v38, %v5219_v43 }
 0x919   : > { %v3388_v6 = vsub.f32 %v3356_v40, %v3372_v58  ;;  %v3325_v21 = vsub.f32 %v3229_v23, %v3280_v9  ;;  %v3232_v4 = vsub.f32 %v3136_v37, %v3190_v45 }
 0x91b   : > { %v3357_v0 = vsub.f32 %v3325_v21, %v3341_v56  ;;  %v3107_v56 = vadd.f32 %v5731_v49, %v5190_v18  ;;  %v3377_v49 = vmul.f32 %v5741_v54, %v5741_v54  ;;  %v3125_v54 = vmul.f32 2.0, %v3109_v26 }
 0x91c   : > { %v3282_v34 = vpop.permute.xlu1 %3281  ;;  %v3192_v12 = vpop.permute.xlu0 %3191 }
 0x91d   : > { %v3326_v14 = vsub.f32 %v3230_v28, %v3282_v34  ;;  %v3389_v53 = vsub.f32 %v3357_v0, %v3373_v57  ;;  %v3233_v9 = vsub.f32 %v3137_v3, %v3192_v12  ;;  %v3123_v28 = vmul.f32 2.0, %v3107_v56 }
 0x91e   : > { %v3108_v57 = vadd.f32 %v5744_v36, %v5203_v29  ;;  %v3378_v29 = vmul.f32 %v5753_v27, %v5753_v27 }
 0x91f   : > { %v3358_v24 = vsub.f32 %v3326_v14, %v3342_v20  ;;  %3423 = vrot.lane.b32.xlu0 %v3389_v53, %s6539_s27  ;;  %v3139_v61 = vadd.f32 2.0, %v3123_v28 }
 0x920   : > { %v3284_v11 = vpop.permute.xlu1 %3283  ;;  %v3194_v55 = vpop.permute.xlu0 %3193  ;;  %v3124_v17 = vmul.f32 2.0, %v3108_v57 }
 0x921   : > { %v3327_v48 = vsub.f32 %v3231_v60, %v3284_v11  ;;  %v3390_v2 = vsub.f32 %v3358_v24, %v3374_v5  ;;  %v3110_v5 = vadd.f32 %v5739_v10, %v5198_v25  ;;  %v6549_v11 = vld [vmem:[#allocation54_spill] sm:$0xff] }
 0x922   : > { %v3140_v24 = vadd.f32 2.0, %v3124_v17  ;;  %v3379_v39 = vmul.f32 %v6549_v11, %v6549_v11 }
 0x923   : > { %v3359_v23 = vsub.f32 %v3327_v48, %v3343_v32  ;;  %3425 = vrot.lane.b32.xlu1 %v3390_v2, %s6539_s27  ;;  %3419 = vrot.lane.b32.xlu0 %v3387_v31, %s6539_s27  ;;  %v3138_v31 = vadd.f32 2.0, %v3122_v51  ;;  %v3141_v2 = vadd.f32 2.0, %v3125_v54  ;;  %v3126_v25 = vmul.f32 2.0, %v3110_v5 }
 0x924   : > { %v3286_v58 = vpop.permute.xlu1 %3285  ;;  %v3196_v1 = vpop.permute.xlu0 %3195 }
 0x925   : > { %v3391_v40 = vsub.f32 %v3359_v23, %v3375_v22  ;;  %v3328_v44 = vsub.f32 %v3232_v4, %v3286_v58  ;;  %v3234_v18 = vsub.f32 %v3138_v31, %v3194_v55  ;;  %v3235_v14 = vsub.f32 %v3139_v61, %v3196_v1  ;;  %v6550_v55 = vld [vmem:[#allocation13_spill] sm:$0xff]  ;;  %v6551_v58 = vld [vmem:[#allocation11_spill] sm:$0xff] }
 0x926   : > { %v3380_v23 = vmul.f32 %v5779_v13, %v5779_v13  ;;  %v3349_v1 = vmul.f32 %v6551_v58, %v6551_v58  ;;  %v3142_v33 = vadd.f32 2.0, %v3126_v25  ;;  %v6553_v13 = vld [vmem:[#allocation55_spill] sm:$0xff]  ;;  %v6562_v25 = vld [vmem:[#allocation60_spill] sm:$0xff]  ;;  %v6563_v58 = vld [vmem:[#allocation18_spill] sm:$0xff] }
 0x927   : > { %v3360_v45 = vsub.f32 %v3328_v44, %v3344_v19  ;;  %3421 = vrot.lane.b32.xlu1 %v3388_v6, %s6539_s27  ;;  %v3346_v6 = vmul.f32 %v5212_v35, %v5212_v35  ;;  %v3347_v35 = vmul.f32 %v5224_v47, %v5224_v47  ;;  %v3348_v47 = vmul.f32 %v6550_v55, %v6550_v55  ;;  %v6557_v61 = vld [vmem:[#allocation15_spill] sm:$0xff] }
 0x928   : > { %v3288_v30 = vpop.permute.xlu1 %3287  ;;  %v3198_v21 = vpop.permute.xlu0 %3197  ;;  %v3127_v19 = vmul.f32 2.0, %v3111_v52  ;;  %v3381_v31 = vmul.f32 %v6553_v13, %v6553_v13  ;;  %v6561_v52 = vld [vmem:[#allocation59_spill] sm:$0xff] }
 0x929   : > { %v3392_v50 = vsub.f32 %v3360_v45, %v3376_v41  ;;  %v3329_v0 = vsub.f32 %v3233_v9, %v3288_v30  ;;  %v3236_v32 = vsub.f32 %v3140_v24, %v3198_v21  ;;  %v6552_v9 = vld [vmem:[#allocation56_spill] sm:$0xff]  ;;  %v6554_v21 = vld [vmem:[#allocation14_spill] sm:$0xff] }
 0x92a   : > { %v3112_v41 = vadd.f32 %v6552_v9, %v5235_v63  ;;  %v3143_v30 = vadd.f32 2.0, %v3127_v19  ;;  %v6556_v63 = vld [vmem:[#allocation57_spill] sm:$0xff] }
 0x92b   : > { %v3361_v15 = vsub.f32 %v3329_v0, %v3345_v7  ;;  %v3129_v0 = vmul.f32 2.0, %v3113_v46 }
 0x92c   : > { %v3290_v20 = vpop.permute.xlu1 %3289  ;;  %v3200_v34 = vpop.permute.xlu0 %3199  ;;  %v3128_v43 = vmul.f32 2.0, %v3112_v41 }
 0x92d   : > { %v3393_v12 = vsub.f32 %v3361_v15, %v3377_v49  ;;  %v3330_v42 = vsub.f32 %v3234_v18, %v3290_v20  ;;  %v3237_v22 = vsub.f32 %v3141_v2, %v3200_v34  ;;  %v6555_v49 = vld [vmem:[#allocation12_spill] sm:$0xff]  ;;  %v3382_v20 = vmul.f32 %v6556_v63, %v6556_v63 }
 0x92e   : > { %v3114_v15 = vadd.f32 %v5773_v59, %v6555_v49  ;;  %v3145_v34 = vadd.f32 2.0, %v3129_v0 }
 0x92f   : > { %v3362_v36 = vsub.f32 %v3330_v42, %v3346_v6  ;;  %3431 = vrot.lane.b32.xlu0 %v3393_v12, %s6539_s27  ;;  %v3351_v12 = vmul.f32 %v6557_v61, %v6557_v61 }
 0x930   : > { %v3292_v53 = vpop.permute.xlu1 %3291  ;;  %v3202_v60 = vpop.permute.xlu0 %3201  ;;  %v3130_v54 = vmul.f32 2.0, %v3114_v15 }
 0x931   : > { %v3394_v16 = vsub.f32 %v3362_v36, %v3378_v29  ;;  %v3331_v8 = vsub.f32 %v3235_v14, %v3292_v53  ;;  %v3238_v45 = vsub.f32 %v3142_v33, %v3202_v60  ;;  %v3144_v14 = vadd.f32 2.0, %v3128_v43 }
 0x932   : > { %v3146_v55 = vadd.f32 2.0, %v3130_v54 }
 0x933   : > { %v3363_v27 = vsub.f32 %v3331_v8, %v3347_v35  ;;  %3427 = vrot.lane.b32.xlu0 %v3391_v40, %s6539_s27  ;;  %3433 = vrot.lane.b32.xlu1 %v3394_v16, %s6539_s27  ;;  %v6558_v35 = vld [vmem:[#allocation58_spill] sm:$0xff]  ;;  %v6559_v16 = vld [vmem:[#allocation17_spill] sm:$0xff] }
 0x934   : > { %v3294_v37 = vpop.permute.xlu1 %3293  ;;  %v3204_v48 = vpop.permute.xlu0 %3203  ;;  %v3383_v59 = vmul.f32 %v6558_v35, %v6558_v35  ;;  %v3352_v8 = vmul.f32 %v6559_v16, %v6559_v16 }
 0x935   : > { %v3395_v4 = vsub.f32 %v3363_v27, %v3379_v39  ;;  %v3332_v10 = vsub.f32 %v3236_v32, %v3294_v37  ;;  %v3239_v6 = vsub.f32 %v3143_v30, %v3204_v48  ;;  %v6560_v32 = vld [vmem:[#allocation16_spill] sm:$0xff]  ;;  %v3385_v48 = vmul.f32 %v6561_v52, %v6561_v52 }
 0x936   : > { %v3353_v11 = vmul.f32 %v6560_v32, %v6560_v32 }
 0x937   : > { %v3364_v51 = vsub.f32 %v3332_v10, %v3348_v47  ;;  %3429 = vrot.lane.b32.xlu1 %v3392_v50, %s6539_s27  ;;  %v3350_v50 = vmul.f32 %v6554_v21, %v6554_v21 }
 0x938   : > { %v3296_v3 = vpop.permute.xlu1 %3295  ;;  %v3206_v40 = vpop.permute.xlu0 %3205 }
 0x939   : > { %v3396_v44 = vsub.f32 %v3364_v51, %v3380_v23  ;;  %v3333_v56 = vsub.f32 %v3237_v22, %v3296_v3  ;;  %v3240_v53 = vsub.f32 %v3144_v14, %v3206_v40  ;;  %v6564_v40 = vld [vmem:[#allocation61_spill] sm:$0xff] }
 0x93a   : > { %v3386_v46 = vmul.f32 %v6564_v40, %v6564_v40 }
 0x93b   : > { %v3365_v7 = vsub.f32 %v3333_v56, %v3349_v1  ;;  %v3354_v1 = vmul.f32 %v6563_v58, %v6563_v58 }
 0x93c   : > { %v3298_v28 = vpop.permute.xlu1 %3297  ;;  %v3208_v57 = vpop.permute.xlu0 %3207 }
 0x93d   : > { %v3397_v18 = vsub.f32 %v3365_v7, %v3381_v31  ;;  %v3334_v38 = vsub.f32 %v3238_v45, %v3298_v28  ;;  %v3241_v60 = vsub.f32 %v3145_v34, %v3208_v57  ;;  %v6056_v28 = vld [vmem:[%s6415_s8] ss:$0 sm:$0xff] }
 0x93f   : > { %v3366_v26 = vsub.f32 %v3334_v38, %v3350_v50  ;;  %3439 = vrot.lane.b32.xlu0 %v3397_v18, %s6539_s27 }
 0x940   : > { %v3300_v17 = vpop.permute.xlu1 %3299  ;;  %v3210_v42 = vpop.permute.xlu0 %3209 }
 0x941   : > { %v3398_v29 = vsub.f32 %v3366_v26, %v3382_v20  ;;  %v3335_v36 = vsub.f32 %v3239_v6, %v3300_v17  ;;  %v3242_v2 = vsub.f32 %v3146_v55, %v3210_v42 }
 0x943   : > { %v3367_v24 = vsub.f32 %v3335_v36, %v3351_v12  ;;  %3435 = vrot.lane.b32.xlu0 %v3395_v4, %s6539_s27  ;;  %3441 = vrot.lane.b32.xlu1 %v3398_v29, %s6539_s27  ;;  %v3384_v4 = vmul.f32 %v6562_v25, %v6562_v25 }
 0x944   : > { %v3302_v5 = vpop.permute.xlu1 %3301  ;;  %v3304_v39 = vpop.permute.xlu0 %3303 }
 0x945   : > { %v3399_v27 = vsub.f32 %v3367_v24, %v3383_v59  ;;  %v3336_v47 = vsub.f32 %v3240_v53, %v3302_v5  ;;  %v3337_v37 = vsub.f32 %v3241_v60, %v3304_v39 }
 0x947   : > { %v3368_v10 = vsub.f32 %v3336_v47, %v3352_v8  ;;  %v3369_v22 = vsub.f32 %v3337_v37, %v3353_v11  ;;  %3437 = vrot.lane.b32.xlu1 %v3396_v44, %s6539_s27 }
 0x948   : > { %v3306_v23 = vpop.permute.xlu1 %3305 }
 0x949   : > { %v3400_v51 = vsub.f32 %v3368_v10, %v3384_v4  ;;  %v3401_v19 = vsub.f32 %v3369_v22, %v3385_v48  ;;  %v3338_v3 = vsub.f32 %v3242_v2, %v3306_v23 }
 0x94b   : > { %v3370_v33 = vsub.f32 %v3338_v3, %v3354_v1  ;;  %3447 = vrot.lane.b32.xlu0 %v3401_v19, %s6539_s27 }
 0x94d   : > { %v3402_v56 = vsub.f32 %v3370_v33, %v3386_v46 }
 0x94f   : > { %3449 = vrot.lane.b32.xlu1 %v3402_v56, %s6539_s27  ;;  %3443 = vrot.lane.b32.xlu0 %v3399_v27, %s6539_s27 }
 0x953   : > { %3445 = vrot.lane.b32.xlu1 %v3400_v51, %s6539_s27 }
 0x991   : > { %v3424_v44 = vpop.permute.xlu0 %3423 }
 0x992   : > { %v3473_v9 = vsel %vm1416_vm1, %v3424_v44, 0.0 }
 0x993   : > { %3474 = vadd.xlane.f32.xlu0 %v3473_v9 }
 0x995   : > { %v3426_v41 = vpop.permute.xlu1 %3425  ;;  %v3420_v45 = vpop.permute.xlu0 %3419 }
 0x996   : > { %v3476_v13 = vsel %vm1416_vm1, %v3426_v41, 0.0  ;;  %v3467_v31 = vsel %vm1416_vm1, %v3420_v45, 0.0 }
 0x997   : > { %3477 = vadd.xlane.f32.xlu0 %v3476_v13  ;;  %3468 = vadd.xlane.f32.xlu1 %v3467_v31 }
 0x999   : > { %v3422_v7 = vpop.permute.xlu1 %3421 }
 0x99a   : > { %v3470_v30 = vsel %vm1416_vm1, %v3422_v7, 0.0 }
 0x99b   : > { %3471 = vadd.xlane.f32.xlu0 %v3470_v30 }
 0x99d   : > { %v4239_v21 = vpop.f32.mrf.mxu1 }
 0x99e   : > { %v2563_v49 = vadd.f32 %v6056_v28, %v4239_v21 }
 0x99f   : > { %v2554_v50 = vpop.f32.mrf.mxu1 }
 0x9a0   : > { %v2555_v0 = vadd.f32 %v6056_v28, %v2554_v50 }
 0x9a1   : > { %v4240_v57 = vpop.f32.mrf.mxu1  ;;  %v3432_v18 = vpop.permute.xlu0 %3431 }
 0x9a2   : > { %v2566_v43 = vadd.f32 %v6056_v28, %v4240_v57  ;;  %v3485_v38 = vsel %vm1416_vm1, %v3432_v18, 0.0  ;;  %4604 = vtanh.f32 %v2555_v0 }
 0x9a3   : > { %v2557_v15 = vpop.f32.mrf.mxu1  ;;  %3486 = vadd.xlane.f32.xlu0 %v3485_v38 }
 0x9a4   : > { %v2558_v6 = vadd.f32 %v6056_v28, %v2557_v15  ;;  %4606 = vtanh.f32 %v2566_v43 }
 0x9a5   : > { %v3434_v63 = vpop.permute.xlu1 %3433  ;;  %v3428_v20 = vpop.permute.xlu0 %3427 }
 0x9a6   : > { %4608 = vtanh.f32 %v2558_v6  ;;  %v3479_v26 = vsel %vm1416_vm1, %v3428_v20, 0.0  ;;  %v3488_v34 = vsel %vm1416_vm1, %v3434_v63, 0.0  ;;  %v6094_v63 = vld [vmem:[%s6417_s10] ss:$0 sm:$0xff] }
 0x9a7   : > { %4610 = vtanh.f32 %v2563_v49  ;;  %3480 = vadd.xlane.f32.xlu0 %v3479_v26 }
 0x9a9   : > { %v3430_v61 = vpop.permute.xlu1 %3429 }
 0x9aa   : > { %v3482_v17 = vsel %vm1416_vm1, %v3430_v61, 0.0 }
 0x9ab   : > { %3489 = vadd.xlane.f32.xlu0 %v3488_v34 }
 0x9ad   : > { %v4243_v12 = vpop.f32.mrf.mxu1 }
 0x9ae   : > { %v2579_v24 = vadd.f32 %v6056_v28, %v4243_v12 }
 0x9af   : > { %v2570_v42 = vpop.f32.mrf.mxu1  ;;  %3483 = vadd.xlane.f32.xlu0 %v3482_v17  ;;  %v4605_v29 = vpop.eup %4604 }
 0x9b0   : > { %v2571_v14 = vadd.f32 %v6056_v28, %v2570_v42 }
 0x9b1   : > { %v4244_v36 = vpop.f32.mrf.mxu1  ;;  %v3440_v54 = vpop.permute.xlu0 %3439 }
 0x9b2   : > { %v4607_v35 = vpop.eup %4606  ;;  %v2582_v59 = vadd.f32 %v6056_v28, %v4244_v36  ;;  %v3497_v53 = vsel %vm1416_vm1, %v3440_v54, 0.0  ;;  %4612 = vtanh.f32 %v2571_v14 }
 0x9b3   : > { %v4609_v60 = vpop.eup %4608  ;;  %v2573_v16 = vpop.f32.mrf.mxu1  ;;  %3498 = vadd.xlane.f32.xlu0 %v3497_v53 }
 0x9b4   : > { %v4611_v8 = vpop.eup %4610  ;;  %v2574_v5 = vadd.f32 %v6056_v28, %v2573_v16  ;;  %v2633_v32 = vpack.c.bf16 %v4609_v60, %v4605_v29  ;;  %4614 = vtanh.f32 %v2582_v59 }
 0x9b5   : > { %v2634_v11 = vpack.c.bf16 %v4607_v35, %v4611_v8  ;;  %v6071_v39 = vpop.permute.xlu1 %3441  ;;  %v3436_v27 = vpop.permute.xlu0 %3435 }
 0x9b6   : > { %4616 = vtanh.f32 %v2574_v5  ;;  %v3491_v55 = vsel %vm1416_vm1, %v3436_v27, 0.0  ;;  %4257 = vmatprep.mubr.msk.bf16.mxu0 %vm919_vm0, %v2633_v32 }
 0x9b7   : > { %4618 = vtanh.f32 %v2579_v24  ;;  %4258 = vmatmul.mubr.msk.bf16.vlgmr.msra.gmra.mxu0 %vm919_vm0, %v2634_v11  ;;  %3492 = vadd.xlane.f32.xlu0 %v3491_v55 }
 0x9b9   : > { %v3438_v47 = vpop.permute.xlu1 %3437 }
 0x9ba   : > { %v3494_v37 = vsel %vm1416_vm1, %v3438_v47, 0.0 }
 0x9bb   : > { %3495 = vadd.xlane.f32.xlu0 %v3494_v37 }
 0x9bd   : > { %v4247_v52 = vpop.f32.mrf.mxu1 }
 0x9be   : > { %v2595_v51 = vadd.f32 %v6056_v28, %v4247_v52 }
 0x9bf   : > { %v2586_v48 = vpop.f32.mrf.mxu1  ;;  %v4613_v25 = vpop.eup %4612 }
 0x9c0   : > { %v2587_v2 = vadd.f32 %v6056_v28, %v2586_v48 }
 0x9c1   : > { %v4248_v4 = vpop.f32.mrf.mxu1  ;;  %v4615_v10 = vpop.eup %4614 }
 0x9c2   : > { %v2598_v22 = vadd.f32 %v6056_v28, %v4248_v4  ;;  %4620 = vtanh.f32 %v2587_v2 }
 0x9c3   : > { %v4617_v23 = vpop.eup %4616  ;;  %v2589_v19 = vpop.f32.mrf.mxu1 }
 0x9c4   : > { %v4619_v58 = vpop.eup %4618  ;;  %v2590_v1 = vadd.f32 %v6056_v28, %v2589_v19  ;;  %v2635_v3 = vpack.c.bf16 %v4617_v23, %v4613_v25  ;;  %4622 = vtanh.f32 %v2598_v22 }
 0x9c5   : > { %v2636_v40 = vpack.c.bf16 %v4615_v10, %v4619_v58 }
 0x9c6   : > { %4624 = vtanh.f32 %v2590_v1  ;;  %4261 = vmatprep.mubr.msk.bf16.mxu0 %vm919_vm0, %v2635_v3 }
 0x9c7   : > { %4626 = vtanh.f32 %v2595_v51  ;;  %4262 = vmatmul.mubr.msk.bf16.gmra.mxu0 %vm919_vm0, %v2636_v40 }
 0x9cd   : > { %v4251_v46 = vpop.f32.mrf.mxu1 }
 0x9ce   : > { %v2611_v31 = vadd.f32 %v6056_v28, %v4251_v46 }
 0x9cf   : > { %v2602_v33 = vpop.f32.mrf.mxu1  ;;  %v4621_v44 = vpop.eup %4620 }
 0x9d0   : > { %v2603_v56 = vadd.f32 %v6056_v28, %v2602_v33 }
 0x9d1   : > { %v4252_v9 = vpop.f32.mrf.mxu1  ;;  %v4623_v41 = vpop.eup %4622 }
 0x9d2   : > { %v2614_v45 = vadd.f32 %v6056_v28, %v4252_v9  ;;  %4628 = vtanh.f32 %v2603_v56 }
 0x9d3   : > { %v4625_v13 = vpop.eup %4624  ;;  %v2605_v7 = vpop.f32.mrf.mxu1 }
 0x9d4   : > { %v4627_v30 = vpop.eup %4626  ;;  %v2606_v21 = vadd.f32 %v6056_v28, %v2605_v7  ;;  %v2637_v50 = vpack.c.bf16 %v4625_v13, %v4621_v44  ;;  %4630 = vtanh.f32 %v2614_v45 }
 0x9d5   : > { %v2638_v0 = vpack.c.bf16 %v4623_v41, %v4627_v30 }
 0x9d6   : > { %4632 = vtanh.f32 %v2606_v21  ;;  %4265 = vmatprep.mubr.msk.bf16.mxu0 %vm919_vm0, %v2637_v50 }
 0x9d7   : > { %4634 = vtanh.f32 %v2611_v31  ;;  %4266 = vmatmul.mubr.msk.bf16.gmra.mxu0 %vm919_vm0, %v2638_v0 }
 0x9df   : > { %v4629_v57 = vpop.eup %4628 }
 0x9e1   : > { %v4631_v18 = vpop.eup %4630 }
 0x9e3   : > { %v4633_v43 = vpop.eup %4632 }
 0x9e4   : > { %v4635_v38 = vpop.eup %4634  ;;  %v2639_v49 = vpack.c.bf16 %v4633_v43, %v4629_v57  ;;  %v6565_v43 = vld [vmem:[#allocation21_spill] sm:$0xff] }
 0x9e5   : > { %v2640_v15 = vpack.c.bf16 %v4631_v18, %v4635_v38 }
 0x9e6   : > { %4269 = vmatprep.mubr.msk.bf16.mxu0 %vm919_vm0, %v2639_v49 }
 0x9e7   : > { %4270 = vmatmul.mubr.msk.bf16.gmra.mxu0 %vm919_vm0, %v2640_v15  ;;  %v6566_v15 = vld [vmem:[#allocation25_spill] sm:$0xff] }
 0xa77   : > { %v4259_v28 = vpop.f32.mrf.mxu0 }
 0xa78   : > { %v2708_v17 = vadd.f32 %v6094_v63, %v4259_v28 }
 0xa79   : > { %v2699_v6 = vpop.f32.mrf.mxu0 }
 0xa7a   : > { %v2700_v20 = vadd.f32 %v6094_v63, %v2699_v6  ;;  %v6567_v6 = vld [vmem:[#allocation20_spill] sm:$0xff] }
 0xa7b   : > { %v4260_v26 = vpop.f32.mrf.mxu0 }
 0xa7c   : > { %4636 = vtanh.f32 %v2700_v20  ;;  %v2711_v12 = vadd.f32 %v6094_v63, %v4260_v26  ;;  %v6568_v26 = vld [vmem:[#allocation23_spill] sm:$0xff] }
 0xa7d   : > { %v2702_v34 = vpop.f32.mrf.mxu0 }
 0xa7e   : > { %v2703_v61 = vadd.f32 %v6094_v63, %v2702_v34 }
 0xa80   : > { %4638 = vtanh.f32 %v2703_v61  ;;  %v4697_v61 = vld [vmem:[%s4957_s23] sm:$0xff] }
 0xa81   : > { %4640 = vtanh.f32 %v2711_v12 }
 0xa82   : > { %4642 = vtanh.f32 %v2708_v17 }
 0xa87   : > { %v4263_v42 = vpop.f32.mrf.mxu0 }
 0xa88   : > { %v2724_v8 = vadd.f32 %v6094_v63, %v4263_v42  ;;  %v4698_v42 = vld [vmem:[%s4957_s23 + $0x8] sm:$0xff] }
 0xa89   : > { %v2715_v14 = vpop.f32.mrf.mxu0  ;;  %v4637_v54 = vpop.eup %4636 }
 0xa8a   : > { %v2716_v29 = vadd.f32 %v6094_v63, %v2715_v14 }
 0xa8b   : > { %v4264_v36 = vpop.f32.mrf.mxu0 }
 0xa8c   : > { %4644 = vtanh.f32 %v2716_v29  ;;  %v2727_v24 = vadd.f32 %v6094_v63, %v4264_v36  ;;  %v6569_v29 = vld [vmem:[#allocation22_spill] sm:$0xff] }
 0xa8d   : > { %v4639_v35 = vpop.eup %4638  ;;  %v2718_v59 = vpop.f32.mrf.mxu0 }
 0xa8e   : > { %v2778_v53 = vpack.c.bf16 %v4639_v35, %v4637_v54  ;;  %v2719_v60 = vadd.f32 %v6094_v63, %v2718_v59  ;;  %v4641_v16 = vpop.eup %4640 }
 0xa8f   : > { %v4643_v5 = vpop.eup %4642 }
 0xa90   : > { %4646 = vtanh.f32 %v2719_v60  ;;  %3883 = vmatmul.mubr.msk.bf16.vlgmr.msra.gmra.mxu1 %vm919_vm0, %v2778_v53  ;;  %v2779_v32 = vpack.c.bf16 %v4641_v16, %v4643_v5  ;;  %v6570_v53 = vld [vmem:[#allocation24_spill] sm:$0xff] }
 0xa91   : > { %2852 = vmatprep.mubr.bf16.mxu1 %v6548_v62  ;;  %4648 = vtanh.f32 %v2727_v24 }
 0xa92   : > { %4650 = vtanh.f32 %v2724_v8  ;;  %v4699_v8 = vld [vmem:[%s4957_s23 + $0x10] sm:$0xff] }
 0xa97   : > { %v4267_v11 = vpop.f32.mrf.mxu0 }
 0xa98   : > { %3884 = vmatmul.mubr.msk.bf16.gmra.mxu1 %vm919_vm0, %v2779_v32  ;;  %v2740_v22 = vadd.f32 %v6094_v63, %v4267_v11  ;;  %v4700_v11 = vld [vmem:[%s4957_s23 + $0x18] sm:$0xff] }
 0xa99   : > { %v2731_v27 = vpop.f32.mrf.mxu0  ;;  %2862 = vmatprep.mubr.bf16.mxu1 %v6548_v62  ;;  %v4645_v37 = vpop.eup %4644 }
 0xa9a   : > { %v2732_v55 = vadd.f32 %v6094_v63, %v2731_v27 }
 0xa9b   : > { %v4268_v47 = vpop.f32.mrf.mxu0 }
 0xa9c   : > { %4652 = vtanh.f32 %v2732_v55  ;;  %v2743_v4 = vadd.f32 %v6094_v63, %v4268_v47  ;;  %v6571_v55 = vld [vmem:[#allocation29_spill] sm:$0xff] }
 0xa9d   : > { %v4647_v52 = vpop.eup %4646  ;;  %v2734_v48 = vpop.f32.mrf.mxu0 }
 0xa9e   : > { %v2735_v2 = vadd.f32 %v6094_v63, %v2734_v48  ;;  %v2780_v25 = vpack.c.bf16 %v4647_v52, %v4645_v37  ;;  %v4649_v10 = vpop.eup %4648 }
 0xa9f   : > { %v4651_v23 = vpop.eup %4650 }
 0xaa0   : > { %4654 = vtanh.f32 %v2735_v2  ;;  %3885 = vmatmul.mubr.msk.bf16.gmra.mxu1 %vm919_vm0, %v2780_v25  ;;  %v2781_v51 = vpack.c.bf16 %v4649_v10, %v4651_v23  ;;  %v6572_v25 = vld [vmem:[#allocation27_spill] sm:$0xff] }
 0xaa1   : > { %2872 = vmatprep.mubr.bf16.mxu1 %v6548_v62  ;;  %4656 = vtanh.f32 %v2743_v4  ;;  %v4701_v23 = vld [vmem:[%s4957_s23 + $0x20] sm:$0xff] }
 0xaa2   : > { %4658 = vtanh.f32 %v2740_v22 }
 0xaa7   : > { %v4271_v19 = vpop.f32.mrf.mxu0 }
 0xaa8   : > { %3886 = vmatmul.mubr.msk.bf16.gmra.mxu1 %vm919_vm0, %v2781_v51  ;;  %v2756_v45 = vadd.f32 %v6094_v63, %v4271_v19 }
 0xaa9   : > { %v2747_v58 = vpop.f32.mrf.mxu0  ;;  %2882 = vmatprep.mubr.bf16.mxu1 %v6548_v62  ;;  %v4653_v40 = vpop.eup %4652 }
 0xaaa   : > { %v2748_v1 = vadd.f32 %v6094_v63, %v2747_v58  ;;  %v4702_v58 = vld [vmem:[%s4957_s23 + $0x28] sm:$0xff] }
 0xaab   : > { %v4272_v3 = vpop.f32.mrf.mxu0 }
 0xaac   : > { %4660 = vtanh.f32 %v2748_v1  ;;  %v2759_v9 = vadd.f32 %v6094_v63, %v4272_v3  ;;  %v6573_v3 = vld [vmem:[#allocation26_spill] sm:$0xff] }
 0xaad   : > { %v4655_v46 = vpop.eup %4654  ;;  %v2750_v33 = vpop.f32.mrf.mxu0 }
 0xaae   : > { %v2751_v56 = vadd.f32 %v6094_v63, %v2750_v33  ;;  %v2782_v44 = vpack.c.bf16 %v4655_v46, %v4653_v40  ;;  %v4657_v41 = vpop.eup %4656 }
 0xaaf   : > { %v4659_v13 = vpop.eup %4658 }
 0xab0   : > { %4662 = vtanh.f32 %v2751_v56  ;;  %3887 = vmatmul.mubr.msk.bf16.gmra.mxu1 %vm919_vm0, %v2782_v44  ;;  %v2783_v31 = vpack.c.bf16 %v4657_v41, %v4659_v13 }
 0xab1   : > { %2892 = vmatprep.mubr.bf16.mxu1 %v6548_v62  ;;  %4664 = vtanh.f32 %v2759_v9  ;;  %v6574_v9 = vld [vmem:[#allocation28_spill] sm:$0xff] }
 0xab2   : > { %4666 = vtanh.f32 %v2756_v45 }
 0xab8   : > { %3888 = vmatmul.mubr.msk.bf16.gmra.mxu1 %vm919_vm0, %v2783_v31  ;;  %v4703_v31 = vld [vmem:[%s4957_s23 + $0x30] sm:$0xff] }
 0xab9   : > { %2902 = vmatprep.mubr.bf16.mxu1 %v6548_v62  ;;  %v4661_v7 = vpop.eup %4660 }
 0xabd   : > { %v4663_v30 = vpop.eup %4662 }
 0xabe   : > { %v2784_v21 = vpack.c.bf16 %v4663_v30, %v4661_v7  ;;  %v4665_v50 = vpop.eup %4664 }
 0xabf   : > { %v4667_v0 = vpop.eup %4666 }
 0xac0   : > { %3889 = vmatmul.mubr.msk.bf16.gmra.mxu1 %vm919_vm0, %v2784_v21  ;;  %v2785_v57 = vpack.c.bf16 %v4665_v50, %v4667_v0  ;;  %v4704_v21 = vld [vmem:[%s4957_s23 + $0x38] sm:$0xff] }
 0xac1   : > { %2912 = vmatprep.mubr.bf16.mxu1 %v6548_v62  ;;  %v6575_v0 = vld [vmem:[#allocation33_spill] sm:$0xff] }
 0xac8   : > { %3890 = vmatmul.mubr.msk.bf16.gmra.mxu1 %vm919_vm0, %v2785_v57  ;;  %vm3672_vm0 = vcmask 1048512  }
 0xb50   : > { %v2844_v18 = vpop.f32.mrf.mxu1 }
 0xb51   : > { %v2845_v38 = vadd.f32 %v2844_v18, %v6565_v43 }
 0xb52   : > { %v2846_v49 = vpop.f32.mrf.mxu1 }
 0xb53   : > { %v2923_v28 = vadd.f32 %v2845_v38, %v6566_v15  ;;  %v2847_v63 = vadd.f32 %v2846_v49, %v6567_v6 }
 0xb54   : > { %v2848_v20 = vpop.f32.mrf.mxu1 }
 0xb55   : > { %v2924_v34 = vadd.f32 %v2847_v63, %v6568_v26  ;;  %v2849_v62 = vadd.f32 %v2848_v20, %v6565_v43  ;;  %v2955_v12 = vsub.f32 %v4697_v61, %v2923_v28  ;;  %v6576_v28 = vld [vmem:[#allocation31_spill] sm:$0xff] }
 0xb56   : > { %v2850_v17 = vpop.f32.mrf.mxu1 }
 0xb57   : > { %v2956_v14 = vsub.f32 %v4698_v42, %v2924_v34  ;;  %v2925_v36 = vadd.f32 %v2849_v62, %v6569_v29  ;;  %v2851_v54 = vadd.f32 %v2850_v17, %v6567_v6  ;;  %v2987_v16 = vmul.f32 %v2955_v12, %v2955_v12  ;;  %v4705_v34 = vld [vmem:[%s4957_s23 + $0x40] sm:$0xff]  ;;  %v4706_v12 = vld [vmem:[%s4957_s23 + $0x48] sm:$0xff] }
 0xb58   : > { %v2854_v35 = vpop.f32.mrf.mxu1  ;;  %v6577_v42 = vld [vmem:[#allocation30_spill] sm:$0xff] }
 0xb59   : > { %v2988_v59 = vmul.f32 %v2956_v14, %v2956_v14  ;;  %v2926_v60 = vadd.f32 %v2851_v54, %v6570_v53  ;;  %v2855_v24 = vadd.f32 %v2854_v35, %v6565_v43  ;;  %v2957_v5 = vsub.f32 %v4699_v8, %v2925_v36  ;;  %v6160_v36 = vpop.permute.xlu0 %3447  ;;  %v6578_v53 = vld [vmem:[#allocation32_spill] sm:$0xff] }
 0xb5a   : > { %v2856_v32 = vpop.f32.mrf.mxu1  ;;  %v4707_v8 = vld [vmem:[%s4957_s23 + $0x50] sm:$0xff] }
 0xb5b   : > { %v2958_v27 = vsub.f32 %v4700_v11, %v2926_v60  ;;  %v2927_v47 = vadd.f32 %v2855_v24, %v6571_v55  ;;  %v2857_v37 = vadd.f32 %v2856_v32, %v6567_v6  ;;  %v3019_v48 = vadd.f32 %v2988_v59, %v2987_v16  ;;  %v4708_v11 = vld [vmem:[%s4957_s23 + $0x58] sm:$0xff] }
 0xb5c   : > { %v2858_v52 = vpop.f32.mrf.mxu1  ;;  %v2989_v22 = vmul.f32 %v2957_v5, %v2957_v5  ;;  %v6579_v55 = vld [vmem:[#allocation37_spill] sm:$0xff] }
 0xb5d   : > { %v2990_v2 = vmul.f32 %v2958_v27, %v2958_v27  ;;  %v2928_v4 = vadd.f32 %v2857_v37, %v6572_v25  ;;  %v2859_v10 = vadd.f32 %v2858_v52, %v6565_v43  ;;  %v2959_v51 = vsub.f32 %v4701_v23, %v2927_v47  ;;  %3020 = vadd.xlane.f32.xlu0 %v3019_v48  ;;  %v3450_v52 = vpop.permute.xlu1 %3449 }
 0xb5e   : > { %v2860_v19 = vpop.f32.mrf.mxu1  ;;  %v3500_v25 = vsel %vm1416_vm1, %v6071_v39, 0.0 }
 0xb5f   : > { %v2960_v1 = vsub.f32 %v4702_v58, %v2928_v4  ;;  %v2929_v40 = vadd.f32 %v2859_v10, %v6573_v3  ;;  %v2861_v46 = vadd.f32 %v2860_v19, %v6567_v6  ;;  %v3022_v56 = vadd.f32 %v2990_v2, %v2989_v22  ;;  %v6580_v10 = vld [vmem:[#allocation35_spill] sm:$0xff] }
 0xb60   : > { %v2864_v33 = vpop.f32.mrf.mxu1  ;;  %v2991_v13 = vmul.f32 %v2959_v51, %v2959_v51  ;;  %v3444_v51 = vpop.permute.xlu0 %3443  ;;  %v4709_v58 = vld [vmem:[%s4957_s23 + $0x60] sm:$0xff] }
 0xb61   : > { %v2992_v44 = vmul.f32 %v2960_v1, %v2960_v1  ;;  %v2930_v41 = vadd.f32 %v2861_v46, %v6574_v9  ;;  %v2865_v45 = vadd.f32 %v2864_v33, %v6565_v43  ;;  %v2961_v7 = vsub.f32 %v4703_v31, %v2929_v40  ;;  %3023 = vadd.xlane.f32.xlu1 %v3022_v56  ;;  %v4710_v40 = vld [vmem:[%s4957_s23 + $0x68] sm:$0xff]  ;;  %v6581_v33 = vld [vmem:[#allocation34_spill] sm:$0xff] }
 0xb62   : > { %v2866_v30 = vpop.f32.mrf.mxu1 }
 0xb63   : > { %v2962_v50 = vsub.f32 %v4704_v21, %v2930_v41  ;;  %v2931_v57 = vadd.f32 %v2865_v45, %v6575_v0  ;;  %v2867_v18 = vadd.f32 %v2866_v30, %v6567_v6  ;;  %v3025_v49 = vadd.f32 %v2992_v44, %v2991_v13  ;;  %v6582_v13 = vld [vmem:[#allocation36_spill] sm:$0xff]  ;;  %v3446_v30 = vpop.permute.xlu1 %3445 }
 0xb64   : > { %v2868_v38 = vpop.f32.mrf.mxu1  ;;  %v2993_v26 = vmul.f32 %v2961_v7, %v2961_v7  ;;  %v3503_v41 = vsel %vm1416_vm1, %v3444_v51, 0.0 }
 0xb65   : > { %v2994_v15 = vmul.f32 %v2962_v50, %v2962_v50  ;;  %v2932_v63 = vadd.f32 %v2867_v18, %v6576_v28  ;;  %v2869_v20 = vadd.f32 %v2868_v38, %v6565_v43  ;;  %v2963_v62 = vsub.f32 %v4705_v34, %v2931_v57  ;;  %3026 = vadd.xlane.f32.xlu0 %v3025_v49  ;;  %v4711_v50 = vld [vmem:[%s4957_s23 + $0x70] sm:$0xff]  ;;  %v4712_v18 = vld [vmem:[%s4957_s23 + $0x78] sm:$0xff] }
 0xb66   : > { %v2870_v61 = vpop.f32.mrf.mxu1  ;;  %v6583_v49 = vld [vmem:[#allocation41_spill] sm:$0xff] }
 0xb67   : > { %v2964_v17 = vsub.f32 %v4706_v12, %v2932_v63  ;;  %v2933_v14 = vadd.f32 %v2869_v20, %v6577_v42  ;;  %v2871_v29 = vadd.f32 %v2870_v61, %v6567_v6  ;;  %v3028_v35 = vadd.f32 %v2994_v15, %v2993_v26  ;;  %v4713_v42 = vld [vmem:[%s4957_s23 + $0x80] sm:$0xff] }
 0xb68   : > { %v2874_v54 = vpop.f32.mrf.mxu1  ;;  %v2995_v16 = vmul.f32 %v2963_v62, %v2963_v62  ;;  %v3506_v26 = vsel %vm1416_vm1, %v3446_v30, 0.0  ;;  %v6584_v62 = vld [vmem:[#allocation39_spill] sm:$0xff] }
 0xb69   : > { %v2996_v59 = vmul.f32 %v2964_v17, %v2964_v17  ;;  %v2934_v60 = vadd.f32 %v2871_v29, %v6578_v53  ;;  %v2875_v24 = vadd.f32 %v2874_v54, %v6565_v43  ;;  %v2965_v5 = vsub.f32 %v4707_v8, %v2933_v14  ;;  %3029 = vadd.xlane.f32.xlu0 %v3028_v35  ;;  %v4714_v54 = vld [vmem:[%s4957_s23 + $0x88] sm:$0xff] }
 0xb6a   : > { %v2876_v32 = vpop.f32.mrf.mxu1  ;;  %v3512_v8 = vsel %vm1416_vm1, %v3450_v52, 0.0 }
 0xb6b   : > { %v2966_v27 = vsub.f32 %v4708_v11, %v2934_v60  ;;  %v2935_v47 = vadd.f32 %v2875_v24, %v6579_v55  ;;  %v2877_v37 = vadd.f32 %v2876_v32, %v6567_v6  ;;  %v3031_v2 = vadd.f32 %v2996_v59, %v2995_v16  ;;  %v6585_v59 = vld [vmem:[#allocation38_spill] sm:$0xff]  ;;  %v6586_v32 = vld [vmem:[#allocation40_spill] sm:$0xff] }
 0xb6c   : > { %v2878_v48 = vpop.f32.mrf.mxu1  ;;  %v2997_v19 = vmul.f32 %v2965_v5, %v2965_v5 }
 0xb6d   : > { %v2998_v4 = vmul.f32 %v2966_v27, %v2966_v27  ;;  %v2936_v22 = vadd.f32 %v2877_v37, %v6580_v10  ;;  %v2879_v23 = vadd.f32 %v2878_v48, %v6565_v43  ;;  %v2967_v1 = vsub.f32 %v4709_v58, %v2935_v47  ;;  %3032 = vadd.xlane.f32.xlu1 %v3031_v2  ;;  %v4715_v47 = vld [vmem:[%s4957_s23 + $0x90] sm:$0xff]  ;;  %v4716_v2 = vld [vmem:[%s4957_s23 + $0x98] sm:$0xff] }
 0xb6e   : > { %3501 = vadd.xlane.f32.xlu0 %v3500_v25  ;;  %v2880_v3 = vpop.f32.mrf.mxu1 }
 0xb6f   : > { %v2968_v46 = vsub.f32 %v4710_v40, %v2936_v22  ;;  %v2937_v56 = vadd.f32 %v2879_v23, %v6581_v33  ;;  %v2881_v39 = vadd.f32 %v2880_v3, %v6567_v6  ;;  %v3034_v9 = vadd.f32 %v2998_v4, %v2997_v19  ;;  %v6587_v4 = vld [vmem:[#allocation45_spill] sm:$0xff]  ;;  %v6588_v19 = vld [vmem:[#allocation43_spill] sm:$0xff] }
 0xb70   : > { %v2884_v44 = vpop.f32.mrf.mxu1  ;;  %v2999_v21 = vmul.f32 %v2967_v1, %v2967_v1  ;;  %v4717_v40 = vld [vmem:[%s4957_s23 + $0xa0] sm:$0xff] }
 0xb71   : > { %v3000_v45 = vmul.f32 %v2968_v46, %v2968_v46  ;;  %v2938_v31 = vadd.f32 %v2881_v39, %v6582_v13  ;;  %v2885_v7 = vadd.f32 %v2884_v44, %v6565_v43  ;;  %v2969_v0 = vsub.f32 %v4711_v50, %v2937_v56  ;;  %3035 = vadd.xlane.f32.xlu1 %v3034_v9  ;;  %v4718_v56 = vld [vmem:[%s4957_s23 + $0xa8] sm:$0xff]  ;;  %v6589_v44 = vld [vmem:[#allocation42_spill] sm:$0xff] }
 0xb72   : > { %3504 = vadd.xlane.f32.xlu0 %v3503_v41  ;;  %v2886_v57 = vpop.f32.mrf.mxu1 }
 0xb73   : > { %v2970_v38 = vsub.f32 %v4712_v18, %v2938_v31  ;;  %v2939_v15 = vadd.f32 %v2885_v7, %v6583_v49  ;;  %v2887_v28 = vadd.f32 %v2886_v57, %v6567_v6  ;;  %v3037_v20 = vadd.f32 %v3000_v45, %v2999_v21  ;;  %v6590_v7 = vld [vmem:[#allocation44_spill] sm:$0xff] }
 0xb74   : > { %v2888_v63 = vpop.f32.mrf.mxu1  ;;  %v3001_v17 = vmul.f32 %v2969_v0, %v2969_v0  ;;  %v4719_v0 = vld [vmem:[%s4957_s23 + $0xb0] sm:$0xff] }
 0xb75   : > { %v3002_v34 = vmul.f32 %v2970_v38, %v2970_v38  ;;  %v2940_v61 = vadd.f32 %v2887_v28, %v6584_v62  ;;  %v2889_v12 = vadd.f32 %v2888_v63, %v6565_v43  ;;  %v2971_v14 = vsub.f32 %v4713_v42, %v2939_v15  ;;  %3038 = vadd.xlane.f32.xlu1 %v3037_v20  ;;  %v4720_v38 = vld [vmem:[%s4957_s23 + $0xb8] sm:$0xff]  ;;  %v6592_v62 = vld [vmem:[#allocation47_spill] sm:$0xff] }
 0xb76   : > { %3507 = vadd.xlane.f32.xlu0 %v3506_v26  ;;  %v2890_v29 = vpop.f32.mrf.mxu1  ;;  %v6591_v15 = vld [vmem:[#allocation49_spill] sm:$0xff]  ;;  %v4721_v42 = vld [vmem:[%s4957_s23 + $0xc0] sm:$0xff] }
 0xb77   : > { %v2972_v35 = vsub.f32 %v4714_v54, %v2940_v61  ;;  %v2941_v53 = vadd.f32 %v2889_v12, %v6585_v59  ;;  %v2891_v60 = vadd.f32 %v2890_v29, %v6567_v6  ;;  %v3040_v16 = vadd.f32 %v3002_v34, %v3001_v17  ;;  %v4722_v54 = vld [vmem:[%s4957_s23 + $0xc8] sm:$0xff]  ;;  %v6593_v59 = vld [vmem:[#allocation46_spill] sm:$0xff] }
 0xb78   : > { %v2894_v24 = vpop.f32.mrf.mxu1  ;;  %v3003_v55 = vmul.f32 %v2971_v14, %v2971_v14 }
 0xb79   : > { %v3004_v5 = vmul.f32 %v2972_v35, %v2972_v35  ;;  %v2942_v11 = vadd.f32 %v2891_v60, %v6586_v32  ;;  %v2895_v27 = vadd.f32 %v2894_v24, %v6565_v43  ;;  %v2973_v37 = vsub.f32 %v4715_v47, %v2941_v53  ;;  %3041 = vadd.xlane.f32.xlu1 %v3040_v16 }
 0xb7a   : > { %3513 = vadd.xlane.f32.xlu0 %v3512_v8  ;;  %v2896_v48 = vpop.f32.mrf.mxu1 }
 0xb7b   : > { %v2974_v25 = vsub.f32 %v4716_v2, %v2942_v11  ;;  %v2943_v10 = vadd.f32 %v2895_v27, %v6587_v4  ;;  %v2897_v22 = vadd.f32 %v2896_v48, %v6567_v6  ;;  %v3043_v23 = vadd.f32 %v3004_v5, %v3003_v55  ;;  %v6594_v5 = vld [vmem:[#allocation48_spill] sm:$0xff]  ;;  %v4724_v48 = vld [vmem:[%s4957_s23 + $0xd8] sm:$0xff] }
 0xb7c   : > { %v2898_v52 = vpop.f32.mrf.mxu1  ;;  %v3005_v3 = vmul.f32 %v2973_v37, %v2973_v37  ;;  %v4723_v55 = vld [vmem:[%s4957_s23 + $0xd0] sm:$0xff] }
 0xb7d   : > { %v3006_v51 = vmul.f32 %v2974_v25, %v2974_v25  ;;  %v2944_v58 = vadd.f32 %v2897_v22, %v6588_v19  ;;  %v2899_v1 = vadd.f32 %v2898_v52, %v6565_v43  ;;  %v2975_v46 = vsub.f32 %v4717_v40, %v2943_v10  ;;  %3044 = vadd.xlane.f32.xlu1 %v3043_v23  ;;  %v6595_v25 = vld [vmem:[#allocation53_spill] sm:$0xff] }
 0xb7e   : > { %v2900_v33 = vpop.f32.mrf.mxu1 }
 0xb7f   : > { %v2976_v39 = vsub.f32 %v4718_v56, %v2944_v58  ;;  %v2945_v9 = vadd.f32 %v2899_v1, %v6589_v44  ;;  %v2901_v41 = vadd.f32 %v2900_v33, %v6567_v6  ;;  %v3046_v13 = vadd.f32 %v3006_v51, %v3005_v3  ;;  %v4725_v51 = vld [vmem:[%s4957_s23 + $0xe0] sm:$0xff]  ;;  %v4726_v33 = vld [vmem:[%s4957_s23 + $0xe8] sm:$0xff] }
 0xb80   : > { %v2904_v45 = vpop.f32.mrf.mxu1  ;;  %v3007_v50 = vmul.f32 %v2975_v46, %v2975_v46  ;;  %v6596_v58 = vld [vmem:[#allocation51_spill] sm:$0xff] }
 0xb81   : > { %v3008_v31 = vmul.f32 %v2976_v39, %v2976_v39  ;;  %v2946_v30 = vadd.f32 %v2901_v41, %v6590_v7  ;;  %v2905_v21 = vadd.f32 %v2904_v45, %v6565_v43  ;;  %v2977_v57 = vsub.f32 %v4719_v0, %v2945_v9  ;;  %3047 = vadd.xlane.f32.xlu1 %v3046_v13  ;;  %v6597_v39 = vld [vmem:[#allocation50_spill] sm:$0xff] }
 0xb82   : > { %v2906_v18 = vpop.f32.mrf.mxu1 }
 0xb83   : > { %v2978_v49 = vsub.f32 %v4720_v38, %v2946_v30  ;;  %v2947_v28 = vadd.f32 %v2905_v21, %v6591_v15  ;;  %v2907_v63 = vadd.f32 %v2906_v18, %v6567_v6  ;;  %v3049_v26 = vadd.f32 %v3008_v31, %v3007_v50  ;;  %v4727_v31 = vld [vmem:[%s4957_s23 + $0xf0] sm:$0xff]  ;;  %v4728_v50 = vld [vmem:[%s4957_s23 + $0xf8] sm:$0xff]  ;;  %s520_s23 = sand.u32 1, %s4781_s19  }
 0xb84   : > { %v2908_v20 = vpop.f32.mrf.mxu1  ;;  %v3009_v17 = vmul.f32 %v2977_v57, %v2977_v57  ;;  %v6598_v30 = vld [vmem:[#allocation52_spill] sm:$0xff]  ;;  %s521_s27 = scalar_lea.vmem [#allocation2], %s520_s23  ;;  %s3677_s22 = scalar_lea.sflag [#allocation3], %s520_s23 }
 0xb85   : > { %v3010_v34 = vmul.f32 %v2978_v49, %v2978_v49  ;;  %v2948_v61 = vadd.f32 %v2907_v63, %v6592_v62  ;;  %v2909_v12 = vadd.f32 %v2908_v20, %v6565_v43  ;;  %v2979_v14 = vsub.f32 %v4721_v42, %v2947_v28  ;;  %3050 = vadd.xlane.f32.xlu1 %v3049_v26  ;;  %v3469_v62 = vpop.xlane.xlu1 %3468  ;;  %s3689_s20 = sshll.u32 %s521_s27, 4  ;;  %s3690_s20 = int_to_ptr.vmem [resolvable:$true] %s3689_s20 }
 0xb86   : > { %v2910_v29 = vpop.f32.mrf.mxu1  ;;  %v3509_v49 = vsel %vm1416_vm1, %v6160_v36, 0.0  ;;  %s4729_s24 = scalar_lea.vmem %s3690_s20, 16  ;;  %p4736_p0 = scmp.lt.s32.totalorder %s3690_s20, %s4734_s18 }
 0xb87   : > { %v2980_v35 = vsub.f32 %v4722_v54, %v2948_v61  ;;  %v2949_v53 = vadd.f32 %v2909_v12, %v6593_v59  ;;  %v2911_v60 = vadd.f32 %v2910_v29, %v6567_v6  ;;  %v3052_v16 = vadd.f32 %v3010_v34, %v3009_v17  ;;  %p4730_p11 = scmp.ne.s32.totalorder %s3690_s20, %s4729_s24  ;;  %p4737_p1 = scmp.lt.s32.totalorder %s4735_s30, %s4729_s24 }
 0xb88   : > { %v2914_v24 = vpop.f32.mrf.mxu1  ;;  %v3011_v27 = vmul.f32 %v2979_v14, %v2979_v14 }
 0xb89   : > { %v3012_v8 = vmul.f32 %v2980_v35, %v2980_v35  ;;  %v2950_v32 = vadd.f32 %v2911_v60, %v6594_v5  ;;  %v2915_v11 = vadd.f32 %v2914_v24, %v6565_v43  ;;  %v2981_v47 = vsub.f32 %v4723_v55, %v2949_v53  ;;  %3053 = vadd.xlane.f32.xlu1 %v3052_v16  ;;  %p4731_p12 = pnand %p4730_p11, %p4910_p5  ;;  %p4738_p2 = por %p4737_p1, %p4736_p0 }
 0xb8a   : > { %v2916_v37 = vpop.f32.mrf.mxu1  ;;  %v6599_v60 = vlaneseq  ;;  %v3515_v5 = vmul.f32 0.5, %v3469_v62 }
 0xb8b   : > { %v2982_v2 = vsub.f32 %v4724_v48, %v2950_v32  ;;  %v2951_v4 = vadd.f32 %v2915_v11, %v6595_v25  ;;  %v2917_v10 = vadd.f32 %v2916_v37, %v6567_v6  ;;  %v3055_v52 = vadd.f32 %v3012_v8, %v3011_v27  ;;  %p4732_p13 = pneg %p4731_p12 }
 0xb8c   : > { %v2918_v22 = vpop.f32.mrf.mxu1  ;;  %v3013_v40 = vmul.f32 %v2981_v47, %v2981_v47  ;;  %v6233_v24 = vand.u32 127, %v6599_v60 }
 0xb8d   : > { %v3014_v23 = vmul.f32 %v2982_v2, %v2982_v2  ;;  %v2983_v19 = vsub.f32 %v4725_v51, %v2951_v4  ;;  %v2952_v1 = vadd.f32 %v2917_v10, %v6596_v58  ;;  %v2919_v3 = vadd.f32 %v2918_v22, %v6565_v43  ;;  %3056 = vadd.xlane.f32.xlu1 %v3055_v52  ;;  %p4739_p3 = pnand %p4738_p2, %p4732_p13 }
 0xb8e   : > { %v2920_v46 = vpop.f32.mrf.mxu1  ;;  %v6238_v47 = vadd.s32 4294967288, %v6233_v24  ;;  %v6247_v25 = vadd.s32 4294967280, %v6233_v24  ;;  %v6254_v52 = vadd.s32 4294967272, %v6233_v24  ;;  %v6259_v58 = vadd.s32 4294967264, %v6233_v24 }
 0xb8f   : > { %v2984_v56 = vsub.f32 %v4726_v33, %v2952_v1  ;;  %v2953_v44 = vadd.f32 %v2919_v3, %v6597_v39  ;;  %v2921_v9 = vadd.f32 %v2920_v46, %v6567_v6  ;;  %v3058_v41 = vadd.f32 %v3014_v23, %v3013_v40  ;;  %v3475_v6 = vpop.xlane.xlu0 %3474  ;;  %v6600_v3 = vld [vmem:[#allocation19_spill] sm:$0xff] }
 0xb90   : > { %v3015_v45 = vmul.f32 %v2983_v19, %v2983_v19  ;;  %v3517_v8 = vmul.f32 0.5, %v3475_v6  ;;  %v6262_v1 = vadd.s32 4294967256, %v6233_v24  ;;  %v3567_v40 = vsub.s32 %v6233_v24, %v6600_v3 }
 0xb91   : > { %v3016_v13 = vmul.f32 %v2984_v56, %v2984_v56  ;;  %v2985_v7 = vsub.f32 %v4727_v31, %v2953_v44  ;;  %v2954_v21 = vadd.f32 %v2921_v9, %v6598_v30  ;;  %3059 = vadd.xlane.f32.xlu1 %v3058_v41  ;;  %v3572_v33 = vsub.s32 %v6238_v47, %v6600_v3 }
 0xb92   : > { %v6269_v56 = vadd.s32 4294967248, %v6233_v24  ;;  %v3579_v39 = vsub.s32 %v6247_v25, %v6600_v3  ;;  %v6276_v41 = vadd.s32 4294967240, %v6233_v24  ;;  %v3586_v31 = vsub.s32 %v6254_v52, %v6600_v3 }
 0xb93   : > { %v2986_v0 = vsub.f32 %v4728_v50, %v2954_v21  ;;  %v3061_v43 = vadd.f32 %v3016_v13, %v3015_v45  ;;  %v3017_v57 = vmul.f32 %v2985_v7, %v2985_v7  ;;  %v3478_v15 = vpop.xlane.xlu0 %3477  ;;  %v6279_v45 = vadd.s32 4294967232, %v6233_v24 }
 0xb94   : > { %v3518_v11 = vmul.f32 0.5, %v3478_v15  ;;  %v6284_v30 = vadd.s32 4294967224, %v6233_v24  ;;  %v6296_v6 = vadd.s32 4294967208, %v6233_v24 }
 0xb95   : > { %v3018_v18 = vmul.f32 %v2986_v0, %v2986_v0  ;;  %3062 = vadd.xlane.f32.xlu1 %v3061_v43  ;;  %v3593_v0 = vsub.s32 %v6259_v58, %v6600_v3  ;;  %v3600_v43 = vsub.s32 %v6262_v1, %v6600_v3 }
 0xb97   : > { %v3064_v38 = vadd.f32 %v3018_v18, %v3017_v57  ;;  %v3472_v28 = vpop.xlane.xlu0 %3471  ;;  %v6291_v57 = vadd.s32 4294967216, %v6233_v24 }
 0xb98   : > { %v3516_v27 = vmul.f32 0.5, %v3472_v28 }
 0xb99   : > { %3065 = vadd.xlane.f32.xlu1 %v3064_v38 }
 0xb9b   : > { %v3487_v63 = vpop.xlane.xlu0 %3486 }
 0xb9c   : > { %v6235_v55 = vmul.f32 0.5, %v3487_v63  ;;  %v3614_v63 = vsub.s32 %v6276_v41, %v6600_v3  ;;  %v3667_v41 = vadd.s32 4294967176, %v6233_v24 }
 0xb9d   : > { %3510 = vadd.xlane.f32.xlu1 %v3509_v49  ;;  %v3607_v49 = vsub.s32 %v6269_v56, %v6600_v3 }
 0xb9f   : > { %v3481_v20 = vpop.xlane.xlu0 %3480 }
 0xba0   : > { %v6240_v37 = vmul.f32 0.5, %v3481_v20  ;;  %v3621_v20 = vsub.s32 %v6279_v45, %v6600_v3 }
 0xba3   : > { %v3490_v26 = vpop.xlane.xlu0 %3489 }
 0xba4   : > { %v6242_v48 = vmul.f32 0.5, %v3490_v26 }
 0xba7   : > { %v3484_v34 = vpop.xlane.xlu0 %3483 }
 0xba8   : > { %v6244_v2 = vmul.f32 0.5, %v3484_v34 }
 0xbab   : > { %v3499_v61 = vpop.xlane.xlu0 %3498 }
 0xbac   : > { %v6249_v4 = vmul.f32 0.5, %v3499_v61  ;;  %v3628_v61 = vsub.s32 %v6284_v30, %v6600_v3 }
 0xbaf   : > { %v3493_v42 = vpop.xlane.xlu0 %3492 }
 0xbb0   : > { %v6251_v10 = vmul.f32 0.5, %v3493_v42 }
 0xbb3   : > { %v3496_v29 = vpop.xlane.xlu0 %3495 }
 0xbb4   : > { %v6256_v51 = vmul.f32 0.5, %v3496_v29  ;;  %v3635_v29 = vsub.s32 %v6291_v57, %v6600_v3 }
 0xbe6   : > { %v3021_v35 = vpop.xlane.xlu0 %3020 }
 0xbe7   : > { %v3067_v46 = vmul.f32 -0.5, %v3021_v35 }
 0xbe9   : > { %v3891_v18 = vadd.f32 -235.24826, %v3067_v46 }
 0xbea   : > { %v3024_v12 = vpop.xlane.xlu1 %3023 }
 0xbeb   : > { %v3068_v22 = vmul.f32 -0.5, %v3024_v12  ;;  %v3531_v35 = vadd.f32 %v3891_v18, %v3515_v5 }
 0xbed   : > { %v3892_v13 = vadd.f32 -235.24826, %v3068_v22  ;;  %v3568_v46 = vrot.slane %v3531_v35, %v3567_v40 }
 0xbee   : > { %v3027_v53 = vpop.xlane.xlu0 %3026 }
 0xbef   : > { %v3069_v19 = vmul.f32 -0.5, %v3027_v53  ;;  %v3532_v26 = vadd.f32 %v3892_v13, %v3516_v27 }
 0xbf1   : > { %v3893_v50 = vadd.f32 -235.24826, %v3069_v19 }
 0xbf2   : > { %v3030_v32 = vpop.xlane.xlu0 %3029 }
 0xbf3   : > { %v3070_v44 = vmul.f32 -0.5, %v3030_v32 }
 0xbf5   : > { %v3894_v15 = vadd.f32 -235.24826, %v3070_v44 }
 0xbf6   : > { %v3033_v17 = vpop.xlane.xlu1 %3032 }
 0xbf7   : > { %v6273_v9 = vpop.xlane.xlu0 %3501  ;;  %v3071_v7 = vmul.f32 -0.5, %v3033_v17  ;;  %v3533_v17 = vadd.f32 %v3893_v50, %v3517_v8  ;;  %v3534_v32 = vadd.f32 %v3894_v15, %v3518_v11  ;;  %v6312_v8 = vadd.s32 4294967192, %v6233_v24 }
 0xbf9   : > { %v3895_v34 = vadd.f32 -235.24826, %v3071_v7  ;;  %v3580_v5 = vrot.slane %v3533_v17, %v3579_v39  ;;  %v3656_v39 = vsub.s32 %v6312_v8, %v6600_v3 }
 0xbfa   : > { %v3036_v14 = vpop.xlane.xlu1 %3035 }
 0xbfb   : > { %v3072_v38 = vmul.f32 -0.5, %v3036_v14  ;;  %v3505_v42 = vpop.xlane.xlu0 %3504  ;;  %v3535_v25 = vadd.f32 %v3895_v34, %v6240_v37 }
 0xbfd   : > { %v3896_v53 = vadd.f32 -235.24826, %v3072_v38  ;;  %v3594_v18 = vrot.slane %v3535_v25, %v3593_v0 }
 0xbfe   : > { %v3039_v54 = vpop.xlane.xlu1 %3038 }
 0xbff   : > { %v3073_v28 = vmul.f32 -0.5, %v3039_v54  ;;  %v6307_v54 = vadd.s32 4294967200, %v6233_v24  ;;  %v3508_v7 = vpop.xlane.xlu0 %3507 }
 0xc01   : > { %v3897_v27 = vadd.f32 -235.24826, %v3073_v28  ;;  %v3649_v58 = vsub.s32 %v6307_v54, %v6600_v3  ;;  %v3660_v28 = vadd.s32 4294967184, %v6233_v24 }
 0xc02   : > { %v3042_v59 = vpop.xlane.xlu1 %3041 }
 0xc03   : > { %v3074_v62 = vmul.f32 -0.5, %v3042_v59  ;;  %v3642_v59 = vsub.s32 %v6296_v6, %v6600_v3  ;;  %v3537_v37 = vadd.f32 %v3897_v27, %v6235_v55  ;;  %v3514_v54 = vpop.xlane.xlu0 %3513 }
 0xc04   : > { %v3530_v27 = vmul.f32 0.5, %v3514_v54 }
 0xc05   : > { %v3898_v22 = vadd.f32 -235.24826, %v3074_v62 }
 0xc06   : > { %v3045_v36 = vpop.xlane.xlu1 %3044 }
 0xc07   : > { %v3075_v14 = vmul.f32 -0.5, %v3045_v36  ;;  %v3573_v36 = vrot.slane %v3532_v26, %v3572_v33  ;;  %v3587_v33 = vrot.slane %v3534_v32, %v3586_v31  ;;  %v3538_v38 = vadd.f32 %v3898_v22, %v6242_v48 }
 0xc08   : > { %v3526_v26 = vmul.f32 0.5, %v6273_v9  ;;  %v3528_v9 = vmul.f32 0.5, %v3508_v7  ;;  %v3670_v22 = vsub.s32 %v3667_v41, %v6600_v3 }
 0xc09   : > { %v3575_v50 = vsel %vm3574_vm2, %v3573_v36, %v3568_v46  ;;  %v3615_v1 = vrot.slane %v3538_v38, %v3614_v63 }
 0xc0a   : > { %v3048_v16 = vpop.xlane.xlu1 %3047  ;;  %v3582_v15 = vsel %vm3581_vm3, %v3580_v5, %v3575_v50 }
 0xc0b   : > { %v3076_v60 = vmul.f32 -0.5, %v3048_v16  ;;  %v3899_v16 = vadd.f32 -235.24826, %v3075_v14  ;;  %v3589_v62 = vsel %vm3588_vm4, %v3587_v33, %v3582_v15 }
 0xc0c   : > { %v3596_v14 = vsel %vm3595_vm5, %v3594_v18, %v3589_v62 }
 0xc0d   : > { %v3900_v44 = vadd.f32 -235.24826, %v3076_v60  ;;  %v3539_v31 = vadd.f32 %v3899_v16, %v6251_v10  ;;  %v3608_v10 = vrot.slane %v3537_v37, %v3607_v49 }
 0xc0e   : > { %v3051_v23 = vpop.xlane.xlu1 %3050 }
 0xc0f   : > { %v3077_v47 = vmul.f32 -0.5, %v3051_v23  ;;  %v3536_v23 = vadd.f32 %v3896_v53, %v6244_v2  ;;  %v3540_v0 = vadd.f32 %v3900_v44, %v6256_v51 }
 0xc11   : > { %v3601_v34 = vrot.slane %v3536_v23, %v3600_v43 }
 0xc12   : > { %v3054_v21 = vpop.xlane.xlu1 %3053 }
 0xc13   : > { %v3078_v52 = vmul.f32 -0.5, %v3054_v21  ;;  %v3901_v21 = vadd.f32 -235.24826, %v3077_v47  ;;  %v3603_v53 = vsel %vm3602_vm6, %v3601_v34, %v3596_v14 }
 0xc14   : > { %v3610_v63 = vsel %vm3609_vm7, %v3608_v10, %v3603_v53 }
 0xc15   : > { %v3902_v40 = vadd.f32 -235.24826, %v3078_v52  ;;  %v3541_v17 = vadd.f32 %v3901_v21, %v6249_v4  ;;  %v3629_v4 = vrot.slane %v3540_v0, %v3628_v61  ;;  %v3617_v32 = vsel %vm3616_vm8, %v3615_v1, %v3610_v63 }
 0xc16   : > { %v3057_v12 = vpop.xlane.xlu1 %3056  ;;  %v3663_v61 = vsub.s32 %v3660_v28, %v6600_v3 }
 0xc17   : > { %v3079_v11 = vmul.f32 -0.5, %v3057_v12  ;;  %v3527_v12 = vmul.f32 0.5, %v3505_v42  ;;  %v3542_v43 = vadd.f32 %v3902_v40, %v3526_v26  ;;  %v3622_v42 = vrot.slane %v3539_v31, %v3621_v20 }
 0xc18   : > { %v3636_v45 = vrot.slane %v3541_v17, %v3635_v29 }
 0xc19   : > { %v3903_v55 = vadd.f32 -235.24826, %v3079_v11  ;;  %v3643_v30 = vrot.slane %v3542_v43, %v3642_v59  ;;  %v3624_v47 = vsel %vm3623_vm9, %v3622_v42, %v3617_v32 }
 0xc1a   : > { %v3060_v19 = vpop.xlane.xlu1 %3059  ;;  %v3631_v57 = vsel %vm3630_vm10, %v3629_v4, %v3624_v47 }
 0xc1b   : > { %v3080_v13 = vmul.f32 -0.5, %v3060_v19  ;;  %v3543_v35 = vadd.f32 %v3903_v55, %v3527_v12  ;;  %v3638_v19 = vsel %vm3637_vm11, %v3636_v45, %v3631_v57 }
 0xc1c   : > { %v3645_v59 = vsel %vm3644_vm12, %v3643_v30, %v3638_v19 }
 0xc1d   : > { %v3904_v48 = vadd.f32 -235.24826, %v3080_v13  ;;  %v3650_v8 = vrot.slane %v3543_v35, %v3649_v58 }
 0xc1e   : > { %v3063_v2 = vpop.xlane.xlu1 %3062 }
 0xc1f   : > { %v3081_v56 = vmul.f32 -0.5, %v3063_v2  ;;  %v3544_v60 = vadd.f32 %v3904_v48, %v3528_v9  ;;  %v3652_v5 = vsel %vm3651_vm13, %v3650_v8, %v3645_v59 }
 0xc21   : > { %v3905_v36 = vadd.f32 -235.24826, %v3081_v56  ;;  %v3657_v29 = vrot.slane %v3544_v60, %v3656_v39 }
 0xc22   : > { %v3066_v51 = vpop.xlane.xlu1 %3065 }
 0xc23   : > { %v3082_v49 = vmul.f32 -0.5, %v3066_v51  ;;  %v3659_v11 = vsel %vm3658_vm14, %v3657_v29, %v3652_v5 }
 0xc25   : > { %v3906_v20 = vadd.f32 -235.24826, %v3082_v49 }
 0xc26   : > { %v3511_v24 = vpop.xlane.xlu1 %3510 }
 0xc27   : > { %v3529_v25 = vmul.f32 0.5, %v3511_v24  ;;  %v3546_v52 = vadd.f32 %v3906_v20, %v3530_v27 }
 0xc29   : > { %v3545_v6 = vadd.f32 %v3905_v36, %v3529_v25  ;;  %v3671_v58 = vrot.slane %v3546_v52, %v3670_v22 }
 0xc2b   : > { %v3664_v16 = vrot.slane %v3545_v6, %v3663_v61 }
 0xc2d   : > { %v3666_v3 = vsel %vm3665_vm15, %v3664_v16, %v3659_v11 }
 0xc2e   : > { %v3673_v46 = vsel %vm3672_vm0, %v3671_v58, %v3666_v3 }
 0xc2f   : > { %3675 = vst [vmem:[%s521_s27] sm:$0x1] %v3673_v46 }
 0xc30   : > { %4742 = shalt.err (!%p4739_p3)
}
 0xc31   : > { %s4743_s17 = scalar_lea.hbm %s6370_s21, 16  ;;  %s4747_s27 = scalar_lea.hbm %s6422_s15, 32 }
 0xc32   : > { %p4744_p4 = scmp.ne.s32.totalorder %s6370_s21, %s4743_s17  ;;  %p4748_p9 = scmp.lt.s32.totalorder %s6370_s21, %s6422_s15 }
 0xc33   : > { %p4749_p10 = scmp.lt.s32.totalorder %s4747_s27, %s4743_s17 }
 0xc34   : > { %p4745_p7 = pnand %p4744_p4, %p4910_p5 }
 0xc35   : > { %p4750_p11 = por %p4749_p10, %p4748_p9 }
 0xc36   : > { %p4746_p8 = pneg %p4745_p7 }
 0xc38   : > { %p4751_p12 = pnand %p4750_p11, %p4746_p8 }
 0xc3a   : > { %4754 = shalt.err (!%p4751_p12)
}
 0xc3b   : > { %4277 = dma.vmem_to_hbm [thread:$0]  (%p4910_p5), %s3690_s20, 16, %s6370_s21, %s3677_s22  }
 0xc3c PF: > { %s6601_s24 = sld [smem:[#allocation7_spill]] }
 0xc3d   : > { %s6602_s16 = sld [smem:[#allocation5_spill]] }
 0xc42   : > { %p4283_p13 = scmp.ge.s32.totalorder %s6601_s24, 2 }
 0xc43   : > { %s3701_s30 = sand.u32 1, %s6602_s16  }
 0xc44   : > { %p4280_p0 = pnand %p4283_p13, %p4914_p6  ;;  %s3702_s25 = scalar_lea.sflag [#allocation3], %s3701_s30 }
 0xc46   : > { %p4281_p1 = pneg %p4280_p0 }
 0xc48   : > { %4772 = dma.done.wait (%p4281_p1), %s3702_s25, 16  }
 0xc49   : > { %4774 = vsyncadd (%p4281_p1), %s3702_s25, 4294967280  ;;  %s6604_s21 = sld [smem:[#allocation8_spill]]  ;;  %s6607_s18 = smov %s4781_s19 }
 0xc4a   : > { %s6605_s17 = sld [smem:[#allocation6_spill]] }
 0xc4b   : > { %s6606_s20 = sld [smem:[#allocation9_spill]] }
 0xc4f   : > { %p25_p2 = scmp.ge.s32.totalorder %s6604_s21, 4  }
 0xc50   : > { %s6608_s19 = smov %s6605_s17 }
 0xc51   :  { %27 = sbr.rel (!%p25_p2) target bundleno = 3 (0x3), region = 121 }
 0xc56   :  { %3706 = vsyncpa [#allocation3], 1 }
 0xc57   :  { %3708 = vsyncpa [#allocation3 + $0x1], 1 }

</bundles_post_ra>
